<compile_context>
chip_gen: v5e
topology: v5e:2x2
jax: 0.10.0
libtpu: 0.0.40
codegen_flags: <defaults>
</compile_context>

<pallas_src>
import functools

import jax
import jax.numpy as jnp
from jax.experimental import pallas as pl
from jax.experimental.pallas import tpu as pltpu

_BN_EPS = 1e-5


# ----------------------------------------------------------------------------
# Fused whole-ResBlock kernel (one grid step == one image through all blocks)
# ----------------------------------------------------------------------------
def _resblock_kernel(*args, cfgs):
    n_params = sum(c["n_arrs"] for c in cfgs)
    x_ref = args[0]
    param_refs = args[1:1 + n_params]
    o_ref = args[1 + n_params]
    pad_refs = args[2 + n_params:]

    x = x_ref[0]  # (H, W, Cin), f32, this image's full tile (VMEM resident)

    pos = 0
    for li, cfg in enumerate(cfgs):
        H, W, Cin = cfg["H"], cfg["W"], cfg["Cin"]
        mid, out_ch = cfg["mid"], cfg["out_ch"]
        d = cfg["dilation"]
        Ho, Wo = cfg["Ho"], cfg["Wo"]

        refs = param_refs[pos:pos + cfg["n_arrs"]]
        pos += cfg["n_arrs"]
        w1_ref, b1_ref, w2_ref, b2_ref, w3_ref, b3_ref = refs[:6]
        ri = 6
        if cfg["downsample"]:
            wd_ref, bd_ref = refs[ri:ri + 2]
            ri += 2
        if cfg["has_sub"]:
            sub_ref = refs[ri]
            ri += 1

        ypad_ref = pad_refs[li]  # (H+2d, W+2d, mid) f32 scratch

        # ---- conv1: 1x1 + folded BN + ReLU --------------------------------
        x2d = x.reshape(H * W, Cin)
        y1 = jnp.dot(x2d.astype(jnp.bfloat16), w1_ref[...],
                     preferred_element_type=jnp.float32) + b1_ref[...]
        y1 = jnp.maximum(y1, 0.0)

        # ---- conv2: 3x3 (padding=dilation) as 9 in-VMEM tap matmuls -------
        ypad_ref[...] = jnp.zeros(ypad_ref.shape, ypad_ref.dtype)
        ypad_ref[d:d + H, d:d + W, :] = y1.reshape(H, W, mid)
        acc = jnp.zeros((H * W, mid), jnp.float32)
        for ky in range(3):
            for kx in range(3):
                tap = ypad_ref[ky * d:ky * d + H, kx * d:kx * d + W, :]
                acc = acc + jnp.dot(
                    tap.reshape(H * W, mid).astype(jnp.bfloat16),
                    w2_ref[ky * 3 + kx],
                    preferred_element_type=jnp.float32)
        y2_full = jnp.maximum(acc + b2_ref[...], 0.0)  # stride-1 resolution
        if cfg["has_sub"]:
            # exact stride-s spatial subsample via one-hot selection matmul
            y2 = jnp.dot(sub_ref[...], y2_full,
                         preferred_element_type=jnp.float32)
        else:
            y2 = y2_full  # (Ho*Wo, mid)

        # ---- identity path ------------------------------------------------
        if cfg["downsample"]:
            if cfg["has_sub"]:
                xs = jnp.dot(sub_ref[...], x2d,
                             preferred_element_type=jnp.float32)
            else:
                xs = x2d
            identity = jnp.dot(xs.astype(jnp.bfloat16), wd_ref[...],
                               preferred_element_type=jnp.float32) + bd_ref[...]
        else:
            identity = x2d  # in_ch == out_ch, stride == 1

        # ---- conv3: 1x1 + folded BN + residual add + final ReLU -----------
        out2d = jnp.dot(y2.astype(jnp.bfloat16), w3_ref[...],
                        preferred_element_type=jnp.float32) + b3_ref[...]
        out2d = jnp.maximum(out2d + identity, 0.0)

        x = out2d.reshape(Ho, Wo, out_ch)  # input to the next bottleneck

    o_ref[0] = x.astype(o_ref.dtype)


# ----------------------------------------------------------------------------
# Host-side helpers
# ----------------------------------------------------------------------------
def _subsample_matrix(H, W, s):
    """One-hot (Ho*Wo, H*W) matrix selecting pixels (ho*s, wo*s)."""
    Ho = (H - 1) // s + 1
    Wo = (W - 1) // s + 1
    rows = jnp.arange(Ho * Wo)
    src = (rows // Wo) * s * W + (rows % Wo) * s
    return (src[:, None] == jnp.arange(H * W)[None, :]).astype(jnp.float32)


def resblock_forward_nchw(x_nchw, params, *, stride, dilation):
    """Full ResBlock forward.  x_nchw: [N, Cin, H, W] f32 -> [N, Cout, Ho, Wo]."""
    N, Cin, H, W = x_nchw.shape
    x = jnp.transpose(x_nchw, (0, 2, 3, 1))  # NHWC for the kernel

    cfgs = []
    flat = []
    in_specs = [pl.BlockSpec((1, H, W, Cin), lambda n: (n, 0, 0, 0))]
    scratch = []

    h, w, cin = H, W, Cin
    for i, p in enumerate(params):
        s = stride if i == 0 else 1
        d = dilation
        mid = p["w1"].shape[-1]
        out_ch = p["w3"].shape[-1]
        ho = (h - 1) // s + 1
        wo = (w - 1) // s + 1
        downsample = "wd" in p
        has_sub = s > 1

        arrs = [p["w1"], p["b1"], p["w2"], p["b2"], p["w3"], p["b3"]]
        if downsample:
            arrs += [p["wd"], p["bd"]]
        if has_sub:
            arrs.append(_subsample_matrix(h, w, s))

        flat.extend(arrs)
        for a in arrs:
            in_specs.append(
                pl.BlockSpec(a.shape, lambda n, nd=a.ndim: (0,) * nd))

        cfgs.append(dict(H=h, W=w, Cin=cin, mid=mid, out_ch=out_ch,
                         stride=s, dilation=d, Ho=ho, Wo=wo,
                         downsample=downsample, has_sub=has_sub,
                         n_arrs=len(arrs)))
        scratch.append(pltpu.VMEM((h + 2 * d, w + 2 * d, mid), jnp.float32))

        h, w, cin = ho, wo, out_ch

    Ho_f, Wo_f, Cout_f = h, w, cin
    kernel = functools.partial(_resblock_kernel, cfgs=tuple(cfgs))

    out_nhwc = pl.pallas_call(
        kernel,
        out_shape=jax.ShapeDtypeStruct((N, Ho_f, Wo_f, Cout_f), jnp.float32),
        grid=(N,),
        in_specs=in_specs,
        out_specs=pl.BlockSpec((1, Ho_f, Wo_f, Cout_f),
                               lambda n: (n, 0, 0, 0)),
        scratch_shapes=scratch,
        compiler_params=pltpu.CompilerParams(
            dimension_semantics=("parallel",)),
    )(x, *flat)

    return jnp.transpose(out_nhwc, (0, 3, 1, 2))  # back to NCHW


# ----------------------------------------------------------------------------
# Deterministic parameter construction (conv HWIO weights + folded BN)
# ----------------------------------------------------------------------------
def make_conv_bn_params(key, kh, kw, cin, cout):
    k1, k2, k3, k4, k5 = jax.random.split(key, 5)
    w = 0.05 * jax.random.normal(k1, (kh, kw, cin, cout), jnp.float32)
    gamma = 1.0 + 0.1 * jax.random.normal(k2, (cout,), jnp.float32)
    beta = 0.1 * jax.random.normal(k3, (cout,), jnp.float32)
    run_mean = 0.1 * jax.random.normal(k4, (cout,), jnp.float32)
    run_var = 1.0 + 0.1 * jnp.abs(jax.random.normal(k5, (cout,), jnp.float32))
    scale = gamma / jnp.sqrt(run_var + _BN_EPS)
    bias = beta - run_mean * scale
    w_folded = w * scale  # fold BN scale into the conv weight (host side)
    return w_folded, bias


def make_bottleneck_params(key, in_ch, out_ch, downsample):
    mid = out_ch // 4
    keys = jax.random.split(key, 4)
    w1, b1 = make_conv_bn_params(keys[0], 1, 1, in_ch, mid)
    w2, b2 = make_conv_bn_params(keys[1], 3, 3, mid, mid)
    w3, b3 = make_conv_bn_params(keys[2], 1, 1, mid, out_ch)
    p = {
        "w1": w1.reshape(in_ch, mid).astype(jnp.bfloat16),
        "b1": b1.reshape(1, mid),
        "w2": w2.reshape(9, mid, mid).astype(jnp.bfloat16),
        "b2": b2.reshape(1, mid),
        "w3": w3.reshape(mid, out_ch).astype(jnp.bfloat16),
        "b3": b3.reshape(1, out_ch),
    }
    if downsample:
        wd, bd = make_conv_bn_params(keys[3], 1, 1, in_ch, out_ch)
        p["wd"] = wd.reshape(in_ch, out_ch).astype(jnp.bfloat16)
        p["bd"] = bd.reshape(1, out_ch)
    return p


def make_resblock_params(key, in_ch, out_ch, num_layers):
    keys = jax.random.split(key, num_layers)
    return [
        make_bottleneck_params(keys[i], in_ch if i == 0 else out_ch, out_ch,
                               downsample=(i == 0))
        for i in range(num_layers)
    ]


# ----------------------------------------------------------------------------
# Main
# ----------------------------------------------------------------------------
if __name__ == "__main__":
    # ResBlock(in_ch=8, out_ch=32, stride=2, dilation=1, num_layers=2)
    in_ch, out_ch, stride, dilation, num_layers = 8, 32, 2, 1, 2
    N, H, W = 2, 16, 16

    key = jax.random.PRNGKey(0)
    k_x, k_p = jax.random.split(key)

    x_nchw = jax.random.normal(k_x, (N, in_ch, H, W), jnp.float32)
    params = make_resblock_params(k_p, in_ch, out_ch, num_layers)

    fwd = jax.jit(functools.partial(resblock_forward_nchw,
                                    stride=stride, dilation=dilation))
    out_nchw = fwd(x_nchw, params)
    jax.block_until_ready(out_nchw)

    expected = (N, out_ch, (H - 1) // stride + 1, (W - 1) // stride + 1)
    assert out_nchw.shape == expected, (out_nchw.shape, expected)
    print("KERNEL_OK")
</pallas_src>

<mosaic_0001>
module attributes {stable_mosaic.version = 11 : i64} {
  func.func @_resblock_kernel(%arg0: i32, %arg1: memref<1x16x16x8xf32, #tpu.memory_space<vmem>>, %arg2: memref<8x8xbf16, #tpu.memory_space<vmem>>, %arg3: memref<1x8xf32, #tpu.memory_space<vmem>>, %arg4: memref<9x8x8xbf16, #tpu.memory_space<vmem>>, %arg5: memref<1x8xf32, #tpu.memory_space<vmem>>, %arg6: memref<8x32xbf16, #tpu.memory_space<vmem>>, %arg7: memref<1x32xf32, #tpu.memory_space<vmem>>, %arg8: memref<8x32xbf16, #tpu.memory_space<vmem>>, %arg9: memref<1x32xf32, #tpu.memory_space<vmem>>, %arg10: memref<64x256xf32, #tpu.memory_space<vmem>>, %arg11: memref<32x8xbf16, #tpu.memory_space<vmem>>, %arg12: memref<1x8xf32, #tpu.memory_space<vmem>>, %arg13: memref<9x8x8xbf16, #tpu.memory_space<vmem>>, %arg14: memref<1x8xf32, #tpu.memory_space<vmem>>, %arg15: memref<8x32xbf16, #tpu.memory_space<vmem>>, %arg16: memref<1x32xf32, #tpu.memory_space<vmem>>, %arg17: memref<1x8x8x32xf32, #tpu.memory_space<vmem>>, %arg18: memref<18x18x8xf32, #tpu.memory_space<vmem>>, %arg19: memref<10x10x8xf32, #tpu.memory_space<vmem>>) attributes {dimension_semantics = [#tpu.dimension_semantics<parallel>], iteration_bounds = array<i64: 2>, scalar_prefetch = 0 : i64, scratch_operands = 2 : i64, tpu.core_type = #tpu.core_type<tc>, window_params = [{transform_indices = @transform_0, window_bounds = array<i64: 1, 16, 16, 8>}, {pipeline_mode = #tpu.pipeline_mode<synchronous>, transform_indices = @transform_1, window_bounds = array<i64: 8, 8>}, {pipeline_mode = #tpu.pipeline_mode<synchronous>, transform_indices = @transform_2, window_bounds = array<i64: 1, 8>}, {pipeline_mode = #tpu.pipeline_mode<synchronous>, transform_indices = @transform_3, window_bounds = array<i64: 9, 8, 8>}, {pipeline_mode = #tpu.pipeline_mode<synchronous>, transform_indices = @transform_4, window_bounds = array<i64: 1, 8>}, {pipeline_mode = #tpu.pipeline_mode<synchronous>, transform_indices = @transform_5, window_bounds = array<i64: 8, 32>}, {pipeline_mode = #tpu.pipeline_mode<synchronous>, transform_indices = @transform_6, window_bounds = array<i64: 1, 32>}, {pipeline_mode = #tpu.pipeline_mode<synchronous>, transform_indices = @transform_7, window_bounds = array<i64: 8, 32>}, {pipeline_mode = #tpu.pipeline_mode<synchronous>, transform_indices = @transform_8, window_bounds = array<i64: 1, 32>}, {pipeline_mode = #tpu.pipeline_mode<synchronous>, transform_indices = @transform_9, window_bounds = array<i64: 64, 256>}, {pipeline_mode = #tpu.pipeline_mode<synchronous>, transform_indices = @transform_10, window_bounds = array<i64: 32, 8>}, {pipeline_mode = #tpu.pipeline_mode<synchronous>, transform_indices = @transform_11, window_bounds = array<i64: 1, 8>}, {pipeline_mode = #tpu.pipeline_mode<synchronous>, transform_indices = @transform_12, window_bounds = array<i64: 9, 8, 8>}, {pipeline_mode = #tpu.pipeline_mode<synchronous>, transform_indices = @transform_13, window_bounds = array<i64: 1, 8>}, {pipeline_mode = #tpu.pipeline_mode<synchronous>, transform_indices = @transform_14, window_bounds = array<i64: 8, 32>}, {pipeline_mode = #tpu.pipeline_mode<synchronous>, transform_indices = @transform_15, window_bounds = array<i64: 1, 32>}, {transform_indices = @transform_16, window_bounds = array<i64: 1, 8, 8, 32>}]} {
    %c0 = arith.constant 0 : index
    %c0_0 = arith.constant 0 : index
    %c0_1 = arith.constant 0 : index
    %c0_2 = arith.constant 0 : index
    %0 = vector.load %arg1[%c0, %c0_0, %c0_1, %c0_2] : memref<1x16x16x8xf32, #tpu.memory_space<vmem>>, vector<1x16x16x8xf32>
    %1 = vector.shape_cast %0 : vector<1x16x16x8xf32> to vector<16x16x8xf32>
    %2 = vector.shape_cast %1 : vector<16x16x8xf32> to vector<256x8xf32>
    %3 = arith.truncf %2 : vector<256x8xf32> to vector<256x8xbf16>
    %c0_3 = arith.constant 0 : index
    %c0_4 = arith.constant 0 : index
    %4 = vector.load %arg2[%c0_3, %c0_4] : memref<8x8xbf16, #tpu.memory_space<vmem>>, vector<8x8xbf16>
    %cst = arith.constant dense<0.000000e+00> : vector<256x8xf32>
    %5 = tpu.matmul %3, %4, %cst {dimension_numbers = #tpu.dot_dimension_numbers<[1], [0], [0], [1], [0, 0, 1, 1], [], []>} : vector<256x8xbf16>, vector<8x8xbf16>, vector<256x8xf32> -> vector<256x8xf32>
    %c0_5 = arith.constant 0 : index
    %c0_6 = arith.constant 0 : index
    %6 = vector.load %arg3[%c0_5, %c0_6] : memref<1x8xf32, #tpu.memory_space<vmem>>, vector<1x8xf32>
    %7 = vector.broadcast %6 : vector<1x8xf32> to vector<256x8xf32>
    %8 = arith.addf %5, %7 : vector<256x8xf32>
    %cst_7 = arith.constant 0.000000e+00 : f32
    %9 = vector.broadcast %cst_7 : f32 to vector<256x8xf32>
    %10 = arith.maximumf %8, %9 : vector<256x8xf32>
    %cst_8 = arith.constant 0.000000e+00 : f32
    %11 = vector.broadcast %cst_8 : f32 to vector<18x18x8xf32>
    %c0_9 = arith.constant 0 : index
    %c0_10 = arith.constant 0 : index
    %c0_11 = arith.constant 0 : index
    %12 = vector.load %arg18[%c0_9, %c0_10, %c0_11] : memref<18x18x8xf32, #tpu.memory_space<vmem>>, vector<18x18x8xf32>
    tpu.vector_store %arg18[%c0_9, %c0_10, %c0_11], %11 {strides = array<i32>} : memref<18x18x8xf32, #tpu.memory_space<vmem>>, vector<18x18x8xf32>,
    %13 = vector.shape_cast %10 : vector<256x8xf32> to vector<16x16x8xf32>
    %c1 = arith.constant 1 : index
    %c1_12 = arith.constant 1 : index
    %c0_13 = arith.constant 0 : index
    %14 = vector.load %arg18[%c1, %c1_12, %c0_13] : memref<18x18x8xf32, #tpu.memory_space<vmem>>, vector<16x16x8xf32>
    tpu.vector_store %arg18[%c1, %c1_12, %c0_13], %13 {strides = array<i32>} : memref<18x18x8xf32, #tpu.memory_space<vmem>>, vector<16x16x8xf32>,
    %cst_14 = arith.constant 0.000000e+00 : f32
    %15 = vector.broadcast %cst_14 : f32 to vector<256x8xf32>
    %c0_15 = arith.constant 0 : index
    %c0_16 = arith.constant 0 : index
    %c0_17 = arith.constant 0 : index
    %16 = vector.load %arg18[%c0_15, %c0_16, %c0_17] : memref<18x18x8xf32, #tpu.memory_space<vmem>>, vector<16x16x8xf32>
    %17 = vector.shape_cast %16 : vector<16x16x8xf32> to vector<256x8xf32>
    %18 = arith.truncf %17 : vector<256x8xf32> to vector<256x8xbf16>
    %c0_18 = arith.constant 0 : index
    %c0_19 = arith.constant 0 : index
    %c0_20 = arith.constant 0 : index
    %19 = vector.load %arg4[%c0_18, %c0_19, %c0_20] : memref<9x8x8xbf16, #tpu.memory_space<vmem>>, vector<1x8x8xbf16>
    %20 = vector.shape_cast %19 : vector<1x8x8xbf16> to vector<8x8xbf16>
    %cst_21 = arith.constant dense<0.000000e+00> : vector<256x8xf32>
    %21 = tpu.matmul %18, %20, %cst_21 {dimension_numbers = #tpu.dot_dimension_numbers<[1], [0], [0], [1], [0, 0, 1, 1], [], []>} : vector<256x8xbf16>, vector<8x8xbf16>, vector<256x8xf32> -> vector<256x8xf32>
    %22 = arith.addf %15, %21 : vector<256x8xf32>
    %c0_22 = arith.constant 0 : index
    %c1_23 = arith.constant 1 : index
    %c0_24 = arith.constant 0 : index
    %23 = vector.load %arg18[%c0_22, %c1_23, %c0_24] : memref<18x18x8xf32, #tpu.memory_space<vmem>>, vector<16x16x8xf32>
    %24 = vector.shape_cast %23 : vector<16x16x8xf32> to vector<256x8xf32>
    %25 = arith.truncf %24 : vector<256x8xf32> to vector<256x8xbf16>
    %c1_25 = arith.constant 1 : index
    %c0_26 = arith.constant 0 : index
    %c0_27 = arith.constant 0 : index
    %26 = vector.load %arg4[%c1_25, %c0_26, %c0_27] : memref<9x8x8xbf16, #tpu.memory_space<vmem>>, vector<1x8x8xbf16>
    %27 = vector.shape_cast %26 : vector<1x8x8xbf16> to vector<8x8xbf16>
    %cst_28 = arith.constant dense<0.000000e+00> : vector<256x8xf32>
    %28 = tpu.matmul %25, %27, %cst_28 {dimension_numbers = #tpu.dot_dimension_numbers<[1], [0], [0], [1], [0, 0, 1, 1], [], []>} : vector<256x8xbf16>, vector<8x8xbf16>, vector<256x8xf32> -> vector<256x8xf32>
    %29 = arith.addf %22, %28 : vector<256x8xf32>
    %c0_29 = arith.constant 0 : index
    %c2 = arith.constant 2 : index
    %c0_30 = arith.constant 0 : index
    %30 = vector.load %arg18[%c0_29, %c2, %c0_30] : memref<18x18x8xf32, #tpu.memory_space<vmem>>, vector<16x16x8xf32>
    %31 = vector.shape_cast %30 : vector<16x16x8xf32> to vector<256x8xf32>
    %32 = arith.truncf %31 : vector<256x8xf32> to vector<256x8xbf16>
    %c2_31 = arith.constant 2 : index
    %c0_32 = arith.constant 0 : index
    %c0_33 = arith.constant 0 : index
    %33 = vector.load %arg4[%c2_31, %c0_32, %c0_33] : memref<9x8x8xbf16, #tpu.memory_space<vmem>>, vector<1x8x8xbf16>
    %34 = vector.shape_cast %33 : vector<1x8x8xbf16> to vector<8x8xbf16>
    %cst_34 = arith.constant dense<0.000000e+00> : vector<256x8xf32>
    %35 = tpu.matmul %32, %34, %cst_34 {dimension_numbers = #tpu.dot_dimension_numbers<[1], [0], [0], [1], [0, 0, 1, 1], [], []>} : vector<256x8xbf16>, vector<8x8xbf16>, vector<256x8xf32> -> vector<256x8xf32>
    %36 = arith.addf %29, %35 : vector<256x8xf32>
    %c1_35 = arith.constant 1 : index
    %c0_36 = arith.constant 0 : index
    %c0_37 = arith.constant 0 : index
    %37 = vector.load %arg18[%c1_35, %c0_36, %c0_37] : memref<18x18x8xf32, #tpu.memory_space<vmem>>, vector<16x16x8xf32>
    %38 = vector.shape_cast %37 : vector<16x16x8xf32> to vector<256x8xf32>
    %39 = arith.truncf %38 : vector<256x8xf32> to vector<256x8xbf16>
    %c3 = arith.constant 3 : index
    %c0_38 = arith.constant 0 : index
    %c0_39 = arith.constant 0 : index
    %40 = vector.load %arg4[%c3, %c0_38, %c0_39] : memref<9x8x8xbf16, #tpu.memory_space<vmem>>, vector<1x8x8xbf16>
    %41 = vector.shape_cast %40 : vector<1x8x8xbf16> to vector<8x8xbf16>
    %cst_40 = arith.constant dense<0.000000e+00> : vector<256x8xf32>
    %42 = tpu.matmul %39, %41, %cst_40 {dimension_numbers = #tpu.dot_dimension_numbers<[1], [0], [0], [1], [0, 0, 1, 1], [], []>} : vector<256x8xbf16>, vector<8x8xbf16>, vector<256x8xf32> -> vector<256x8xf32>
    %43 = arith.addf %36, %42 : vector<256x8xf32>
    %c1_41 = arith.constant 1 : index
    %c1_42 = arith.constant 1 : index
    %c0_43 = arith.constant 0 : index
    %44 = vector.load %arg18[%c1_41, %c1_42, %c0_43] : memref<18x18x8xf32, #tpu.memory_space<vmem>>, vector<16x16x8xf32>
    %45 = vector.shape_cast %44 : vector<16x16x8xf32> to vector<256x8xf32>
    %46 = arith.truncf %45 : vector<256x8xf32> to vector<256x8xbf16>
    %c4 = arith.constant 4 : index
    %c0_44 = arith.constant 0 : index
    %c0_45 = arith.constant 0 : index
    %47 = vector.load %arg4[%c4, %c0_44, %c0_45] : memref<9x8x8xbf16, #tpu.memory_space<vmem>>, vector<1x8x8xbf16>
    %48 = vector.shape_cast %47 : vector<1x8x8xbf16> to vector<8x8xbf16>
    %cst_46 = arith.constant dense<0.000000e+00> : vector<256x8xf32>
    %49 = tpu.matmul %46, %48, %cst_46 {dimension_numbers = #tpu.dot_dimension_numbers<[1], [0], [0], [1], [0, 0, 1, 1], [], []>} : vector<256x8xbf16>, vector<8x8xbf16>, vector<256x8xf32> -> vector<256x8xf32>
    %50 = arith.addf %43, %49 : vector<256x8xf32>
    %c1_47 = arith.constant 1 : index
    %c2_48 = arith.constant 2 : index
    %c0_49 = arith.constant 0 : index
    %51 = vector.load %arg18[%c1_47, %c2_48, %c0_49] : memref<18x18x8xf32, #tpu.memory_space<vmem>>, vector<16x16x8xf32>
    %52 = vector.shape_cast %51 : vector<16x16x8xf32> to vector<256x8xf32>
    %53 = arith.truncf %52 : vector<256x8xf32> to vector<256x8xbf16>
    %c5 = arith.constant 5 : index
    %c0_50 = arith.constant 0 : index
    %c0_51 = arith.constant 0 : index
    %54 = vector.load %arg4[%c5, %c0_50, %c0_51] : memref<9x8x8xbf16, #tpu.memory_space<vmem>>, vector<1x8x8xbf16>
    %55 = vector.shape_cast %54 : vector<1x8x8xbf16> to vector<8x8xbf16>
    %cst_52 = arith.constant dense<0.000000e+00> : vector<256x8xf32>
    %56 = tpu.matmul %53, %55, %cst_52 {dimension_numbers = #tpu.dot_dimension_numbers<[1], [0], [0], [1], [0, 0, 1, 1], [], []>} : vector<256x8xbf16>, vector<8x8xbf16>, vector<256x8xf32> -> vector<256x8xf32>
    %57 = arith.addf %50, %56 : vector<256x8xf32>
    %c2_53 = arith.constant 2 : index
    %c0_54 = arith.constant 0 : index
    %c0_55 = arith.constant 0 : index
    %58 = vector.load %arg18[%c2_53, %c0_54, %c0_55] : memref<18x18x8xf32, #tpu.memory_space<vmem>>, vector<16x16x8xf32>
    %59 = vector.shape_cast %58 : vector<16x16x8xf32> to vector<256x8xf32>
    %60 = arith.truncf %59 : vector<256x8xf32> to vector<256x8xbf16>
    %c6 = arith.constant 6 : index
    %c0_56 = arith.constant 0 : index
    %c0_57 = arith.constant 0 : index
    %61 = vector.load %arg4[%c6, %c0_56, %c0_57] : memref<9x8x8xbf16, #tpu.memory_space<vmem>>, vector<1x8x8xbf16>
    %62 = vector.shape_cast %61 : vector<1x8x8xbf16> to vector<8x8xbf16>
    %cst_58 = arith.constant dense<0.000000e+00> : vector<256x8xf32>
    %63 = tpu.matmul %60, %62, %cst_58 {dimension_numbers = #tpu.dot_dimension_numbers<[1], [0], [0], [1], [0, 0, 1, 1], [], []>} : vector<256x8xbf16>, vector<8x8xbf16>, vector<256x8xf32> -> vector<256x8xf32>
    %64 = arith.addf %57, %63 : vector<256x8xf32>
    %c2_59 = arith.constant 2 : index
    %c1_60 = arith.constant 1 : index
    %c0_61 = arith.constant 0 : index
    %65 = vector.load %arg18[%c2_59, %c1_60, %c0_61] : memref<18x18x8xf32, #tpu.memory_space<vmem>>, vector<16x16x8xf32>
    %66 = vector.shape_cast %65 : vector<16x16x8xf32> to vector<256x8xf32>
    %67 = arith.truncf %66 : vector<256x8xf32> to vector<256x8xbf16>
    %c7 = arith.constant 7 : index
    %c0_62 = arith.constant 0 : index
    %c0_63 = arith.constant 0 : index
    %68 = vector.load %arg4[%c7, %c0_62, %c0_63] : memref<9x8x8xbf16, #tpu.memory_space<vmem>>, vector<1x8x8xbf16>
    %69 = vector.shape_cast %68 : vector<1x8x8xbf16> to vector<8x8xbf16>
    %cst_64 = arith.constant dense<0.000000e+00> : vector<256x8xf32>
    %70 = tpu.matmul %67, %69, %cst_64 {dimension_numbers = #tpu.dot_dimension_numbers<[1], [0], [0], [1], [0, 0, 1, 1], [], []>} : vector<256x8xbf16>, vector<8x8xbf16>, vector<256x8xf32> -> vector<256x8xf32>
    %71 = arith.addf %64, %70 : vector<256x8xf32>
    %c2_65 = arith.constant 2 : index
    %c2_66 = arith.constant 2 : index
    %c0_67 = arith.constant 0 : index
    %72 = vector.load %arg18[%c2_65, %c2_66, %c0_67] : memref<18x18x8xf32, #tpu.memory_space<vmem>>, vector<16x16x8xf32>
    %73 = vector.shape_cast %72 : vector<16x16x8xf32> to vector<256x8xf32>
    %74 = arith.truncf %73 : vector<256x8xf32> to vector<256x8xbf16>
    %c8 = arith.constant 8 : index
    %c0_68 = arith.constant 0 : index
    %c0_69 = arith.constant 0 : index
    %75 = vector.load %arg4[%c8, %c0_68, %c0_69] : memref<9x8x8xbf16, #tpu.memory_space<vmem>>, vector<1x8x8xbf16>
    %76 = vector.shape_cast %75 : vector<1x8x8xbf16> to vector<8x8xbf16>
    %cst_70 = arith.constant dense<0.000000e+00> : vector<256x8xf32>
    %77 = tpu.matmul %74, %76, %cst_70 {dimension_numbers = #tpu.dot_dimension_numbers<[1], [0], [0], [1], [0, 0, 1, 1], [], []>} : vector<256x8xbf16>, vector<8x8xbf16>, vector<256x8xf32> -> vector<256x8xf32>
    %78 = arith.addf %71, %77 : vector<256x8xf32>
    %c0_71 = arith.constant 0 : index
    %c0_72 = arith.constant 0 : index
    %79 = vector.load %arg5[%c0_71, %c0_72] : memref<1x8xf32, #tpu.memory_space<vmem>>, vector<1x8xf32>
    %80 = vector.broadcast %79 : vector<1x8xf32> to vector<256x8xf32>
    %81 = arith.addf %78, %80 : vector<256x8xf32>
    %cst_73 = arith.constant 0.000000e+00 : f32
    %82 = vector.broadcast %cst_73 : f32 to vector<256x8xf32>
    %83 = arith.maximumf %81, %82 : vector<256x8xf32>
    %c0_74 = arith.constant 0 : index
    %c0_75 = arith.constant 0 : index
    %84 = vector.load %arg10[%c0_74, %c0_75] : memref<64x256xf32, #tpu.memory_space<vmem>>, vector<64x256xf32>
    %cst_76 = arith.constant dense<0.000000e+00> : vector<64x8xf32>
    %85 = tpu.matmul %84, %83, %cst_76 {dimension_numbers = #tpu.dot_dimension_numbers<[1], [0], [0], [1], [0, 0, 1, 1], [], []>} : vector<64x256xf32>, vector<256x8xf32>, vector<64x8xf32> -> vector<64x8xf32>
    %c0_77 = arith.constant 0 : index
    %c0_78 = arith.constant 0 : index
    %86 = vector.load %arg10[%c0_77, %c0_78] : memref<64x256xf32, #tpu.memory_space<vmem>>, vector<64x256xf32>
    %cst_79 = arith.constant dense<0.000000e+00> : vector<64x8xf32>
    %87 = tpu.matmul %86, %2, %cst_79 {dimension_numbers = #tpu.dot_dimension_numbers<[1], [0], [0], [1], [0, 0, 1, 1], [], []>} : vector<64x256xf32>, vector<256x8xf32>, vector<64x8xf32> -> vector<64x8xf32>
    %88 = arith.truncf %87 : vector<64x8xf32> to vector<64x8xbf16>
    %c0_80 = arith.constant 0 : index
    %c0_81 = arith.constant 0 : index
    %89 = vector.load %arg8[%c0_80, %c0_81] : memref<8x32xbf16, #tpu.memory_space<vmem>>, vector<8x32xbf16>
    %cst_82 = arith.constant dense<0.000000e+00> : vector<64x32xf32>
    %90 = tpu.matmul %88, %89, %cst_82 {dimension_numbers = #tpu.dot_dimension_numbers<[1], [0], [0], [1], [0, 0, 1, 1], [], []>} : vector<64x8xbf16>, vector<8x32xbf16>, vector<64x32xf32> -> vector<64x32xf32>
    %c0_83 = arith.constant 0 : index
    %c0_84 = arith.constant 0 : index
    %91 = vector.load %arg9[%c0_83, %c0_84] : memref<1x32xf32, #tpu.memory_space<vmem>>, vector<1x32xf32>
    %92 = vector.broadcast %91 : vector<1x32xf32> to vector<64x32xf32>
    %93 = arith.addf %90, %92 : vector<64x32xf32>
    %94 = arith.truncf %85 : vector<64x8xf32> to vector<64x8xbf16>
    %c0_85 = arith.constant 0 : index
    %c0_86 = arith.constant 0 : index
    %95 = vector.load %arg6[%c0_85, %c0_86] : memref<8x32xbf16, #tpu.memory_space<vmem>>, vector<8x32xbf16>
    %cst_87 = arith.constant dense<0.000000e+00> : vector<64x32xf32>
    %96 = tpu.matmul %94, %95, %cst_87 {dimension_numbers = #tpu.dot_dimension_numbers<[1], [0], [0], [1], [0, 0, 1, 1], [], []>} : vector<64x8xbf16>, vector<8x32xbf16>, vector<64x32xf32> -> vector<64x32xf32>
    %c0_88 = arith.constant 0 : index
    %c0_89 = arith.constant 0 : index
    %97 = vector.load %arg7[%c0_88, %c0_89] : memref<1x32xf32, #tpu.memory_space<vmem>>, vector<1x32xf32>
    %98 = vector.broadcast %97 : vector<1x32xf32> to vector<64x32xf32>
    %99 = arith.addf %96, %98 : vector<64x32xf32>
    %100 = arith.addf %99, %93 : vector<64x32xf32>
    %cst_90 = arith.constant 0.000000e+00 : f32
    %101 = vector.broadcast %cst_90 : f32 to vector<64x32xf32>
    %102 = arith.maximumf %100, %101 : vector<64x32xf32>
    %103 = vector.shape_cast %102 : vector<64x32xf32> to vector<8x8x32xf32>
    %104 = vector.shape_cast %103 : vector<8x8x32xf32> to vector<64x32xf32>
    %105 = arith.truncf %104 : vector<64x32xf32> to vector<64x32xbf16>
    %c0_91 = arith.constant 0 : index
    %c0_92 = arith.constant 0 : index
    %106 = vector.load %arg11[%c0_91, %c0_92] : memref<32x8xbf16, #tpu.memory_space<vmem>>, vector<32x8xbf16>
    %cst_93 = arith.constant dense<0.000000e+00> : vector<64x8xf32>
    %107 = tpu.matmul %105, %106, %cst_93 {dimension_numbers = #tpu.dot_dimension_numbers<[1], [0], [0], [1], [0, 0, 1, 1], [], []>} : vector<64x32xbf16>, vector<32x8xbf16>, vector<64x8xf32> -> vector<64x8xf32>
    %c0_94 = arith.constant 0 : index
    %c0_95 = arith.constant 0 : index
    %108 = vector.load %arg12[%c0_94, %c0_95] : memref<1x8xf32, #tpu.memory_space<vmem>>, vector<1x8xf32>
    %109 = vector.broadcast %108 : vector<1x8xf32> to vector<64x8xf32>
    %110 = arith.addf %107, %109 : vector<64x8xf32>
    %cst_96 = arith.constant 0.000000e+00 : f32
    %111 = vector.broadcast %cst_96 : f32 to vector<64x8xf32>
    %112 = arith.maximumf %110, %111 : vector<64x8xf32>
    %cst_97 = arith.constant 0.000000e+00 : f32
    %113 = vector.broadcast %cst_97 : f32 to vector<10x10x8xf32>
    %c0_98 = arith.constant 0 : index
    %c0_99 = arith.constant 0 : index
    %c0_100 = arith.constant 0 : index
    %114 = vector.load %arg19[%c0_98, %c0_99, %c0_100] : memref<10x10x8xf32, #tpu.memory_space<vmem>>, vector<10x10x8xf32>
    tpu.vector_store %arg19[%c0_98, %c0_99, %c0_100], %113 {strides = array<i32>} : memref<10x10x8xf32, #tpu.memory_space<vmem>>, vector<10x10x8xf32>,
    %115 = vector.shape_cast %112 : vector<64x8xf32> to vector<8x8x8xf32>
    %c1_101 = arith.constant 1 : index
    %c1_102 = arith.constant 1 : index
    %c0_103 = arith.constant 0 : index
    %116 = vector.load %arg19[%c1_101, %c1_102, %c0_103] : memref<10x10x8xf32, #tpu.memory_space<vmem>>, vector<8x8x8xf32>
    tpu.vector_store %arg19[%c1_101, %c1_102, %c0_103], %115 {strides = array<i32>} : memref<10x10x8xf32, #tpu.memory_space<vmem>>, vector<8x8x8xf32>,
    %cst_104 = arith.constant 0.000000e+00 : f32
    %117 = vector.broadcast %cst_104 : f32 to vector<64x8xf32>
    %c0_105 = arith.constant 0 : index
    %c0_106 = arith.constant 0 : index
    %c0_107 = arith.constant 0 : index
    %118 = vector.load %arg19[%c0_105, %c0_106, %c0_107] : memref<10x10x8xf32, #tpu.memory_space<vmem>>, vector<8x8x8xf32>
    %119 = vector.shape_cast %118 : vector<8x8x8xf32> to vector<64x8xf32>
    %120 = arith.truncf %119 : vector<64x8xf32> to vector<64x8xbf16>
    %c0_108 = arith.constant 0 : index
    %c0_109 = arith.constant 0 : index
    %c0_110 = arith.constant 0 : index
    %121 = vector.load %arg13[%c0_108, %c0_109, %c0_110] : memref<9x8x8xbf16, #tpu.memory_space<vmem>>, vector<1x8x8xbf16>
    %122 = vector.shape_cast %121 : vector<1x8x8xbf16> to vector<8x8xbf16>
    %cst_111 = arith.constant dense<0.000000e+00> : vector<64x8xf32>
    %123 = tpu.matmul %120, %122, %cst_111 {dimension_numbers = #tpu.dot_dimension_numbers<[1], [0], [0], [1], [0, 0, 1, 1], [], []>} : vector<64x8xbf16>, vector<8x8xbf16>, vector<64x8xf32> -> vector<64x8xf32>
    %124 = arith.addf %117, %123 : vector<64x8xf32>
    %c0_112 = arith.constant 0 : index
    %c1_113 = arith.constant 1 : index
    %c0_114 = arith.constant 0 : index
    %125 = vector.load %arg19[%c0_112, %c1_113, %c0_114] : memref<10x10x8xf32, #tpu.memory_space<vmem>>, vector<8x8x8xf32>
    %126 = vector.shape_cast %125 : vector<8x8x8xf32> to vector<64x8xf32>
    %127 = arith.truncf %126 : vector<64x8xf32> to vector<64x8xbf16>
    %c1_115 = arith.constant 1 : index
    %c0_116 = arith.constant 0 : index
    %c0_117 = arith.constant 0 : index
    %128 = vector.load %arg13[%c1_115, %c0_116, %c0_117] : memref<9x8x8xbf16, #tpu.memory_space<vmem>>, vector<1x8x8xbf16>
    %129 = vector.shape_cast %128 : vector<1x8x8xbf16> to vector<8x8xbf16>
    %cst_118 = arith.constant dense<0.000000e+00> : vector<64x8xf32>
    %130 = tpu.matmul %127, %129, %cst_118 {dimension_numbers = #tpu.dot_dimension_numbers<[1], [0], [0], [1], [0, 0, 1, 1], [], []>} : vector<64x8xbf16>, vector<8x8xbf16>, vector<64x8xf32> -> vector<64x8xf32>
    %131 = arith.addf %124, %130 : vector<64x8xf32>
    %c0_119 = arith.constant 0 : index
    %c2_120 = arith.constant 2 : index
    %c0_121 = arith.constant 0 : index
    %132 = vector.load %arg19[%c0_119, %c2_120, %c0_121] : memref<10x10x8xf32, #tpu.memory_space<vmem>>, vector<8x8x8xf32>
    %133 = vector.shape_cast %132 : vector<8x8x8xf32> to vector<64x8xf32>
    %134 = arith.truncf %133 : vector<64x8xf32> to vector<64x8xbf16>
    %c2_122 = arith.constant 2 : index
    %c0_123 = arith.constant 0 : index
    %c0_124 = arith.constant 0 : index
    %135 = vector.load %arg13[%c2_122, %c0_123, %c0_124] : memref<9x8x8xbf16, #tpu.memory_space<vmem>>, vector<1x8x8xbf16>
    %136 = vector.shape_cast %135 : vector<1x8x8xbf16> to vector<8x8xbf16>
    %cst_125 = arith.constant dense<0.000000e+00> : vector<64x8xf32>
    %137 = tpu.matmul %134, %136, %cst_125 {dimension_numbers = #tpu.dot_dimension_numbers<[1], [0], [0], [1], [0, 0, 1, 1], [], []>} : vector<64x8xbf16>, vector<8x8xbf16>, vector<64x8xf32> -> vector<64x8xf32>
    %138 = arith.addf %131, %137 : vector<64x8xf32>
    %c1_126 = arith.constant 1 : index
    %c0_127 = arith.constant 0 : index
    %c0_128 = arith.constant 0 : index
    %139 = vector.load %arg19[%c1_126, %c0_127, %c0_128] : memref<10x10x8xf32, #tpu.memory_space<vmem>>, vector<8x8x8xf32>
    %140 = vector.shape_cast %139 : vector<8x8x8xf32> to vector<64x8xf32>
    %141 = arith.truncf %140 : vector<64x8xf32> to vector<64x8xbf16>
    %c3_129 = arith.constant 3 : index
    %c0_130 = arith.constant 0 : index
    %c0_131 = arith.constant 0 : index
    %142 = vector.load %arg13[%c3_129, %c0_130, %c0_131] : memref<9x8x8xbf16, #tpu.memory_space<vmem>>, vector<1x8x8xbf16>
    %143 = vector.shape_cast %142 : vector<1x8x8xbf16> to vector<8x8xbf16>
    %cst_132 = arith.constant dense<0.000000e+00> : vector<64x8xf32>
    %144 = tpu.matmul %141, %143, %cst_132 {dimension_numbers = #tpu.dot_dimension_numbers<[1], [0], [0], [1], [0, 0, 1, 1], [], []>} : vector<64x8xbf16>, vector<8x8xbf16>, vector<64x8xf32> -> vector<64x8xf32>
    %145 = arith.addf %138, %144 : vector<64x8xf32>
    %c1_133 = arith.constant 1 : index
    %c1_134 = arith.constant 1 : index
    %c0_135 = arith.constant 0 : index
    %146 = vector.load %arg19[%c1_133, %c1_134, %c0_135] : memref<10x10x8xf32, #tpu.memory_space<vmem>>, vector<8x8x8xf32>
    %147 = vector.shape_cast %146 : vector<8x8x8xf32> to vector<64x8xf32>
    %148 = arith.truncf %147 : vector<64x8xf32> to vector<64x8xbf16>
    %c4_136 = arith.constant 4 : index
    %c0_137 = arith.constant 0 : index
    %c0_138 = arith.constant 0 : index
    %149 = vector.load %arg13[%c4_136, %c0_137, %c0_138] : memref<9x8x8xbf16, #tpu.memory_space<vmem>>, vector<1x8x8xbf16>
    %150 = vector.shape_cast %149 : vector<1x8x8xbf16> to vector<8x8xbf16>
    %cst_139 = arith.constant dense<0.000000e+00> : vector<64x8xf32>
    %151 = tpu.matmul %148, %150, %cst_139 {dimension_numbers = #tpu.dot_dimension_numbers<[1], [0], [0], [1], [0, 0, 1, 1], [], []>} : vector<64x8xbf16>, vector<8x8xbf16>, vector<64x8xf32> -> vector<64x8xf32>
    %152 = arith.addf %145, %151 : vector<64x8xf32>
    %c1_140 = arith.constant 1 : index
    %c2_141 = arith.constant 2 : index
    %c0_142 = arith.constant 0 : index
    %153 = vector.load %arg19[%c1_140, %c2_141, %c0_142] : memref<10x10x8xf32, #tpu.memory_space<vmem>>, vector<8x8x8xf32>
    %154 = vector.shape_cast %153 : vector<8x8x8xf32> to vector<64x8xf32>
    %155 = arith.truncf %154 : vector<64x8xf32> to vector<64x8xbf16>
    %c5_143 = arith.constant 5 : index
    %c0_144 = arith.constant 0 : index
    %c0_145 = arith.constant 0 : index
    %156 = vector.load %arg13[%c5_143, %c0_144, %c0_145] : memref<9x8x8xbf16, #tpu.memory_space<vmem>>, vector<1x8x8xbf16>
    %157 = vector.shape_cast %156 : vector<1x8x8xbf16> to vector<8x8xbf16>
    %cst_146 = arith.constant dense<0.000000e+00> : vector<64x8xf32>
    %158 = tpu.matmul %155, %157, %cst_146 {dimension_numbers = #tpu.dot_dimension_numbers<[1], [0], [0], [1], [0, 0, 1, 1], [], []>} : vector<64x8xbf16>, vector<8x8xbf16>, vector<64x8xf32> -> vector<64x8xf32>
    %159 = arith.addf %152, %158 : vector<64x8xf32>
    %c2_147 = arith.constant 2 : index
    %c0_148 = arith.constant 0 : index
    %c0_149 = arith.constant 0 : index
    %160 = vector.load %arg19[%c2_147, %c0_148, %c0_149] : memref<10x10x8xf32, #tpu.memory_space<vmem>>, vector<8x8x8xf32>
    %161 = vector.shape_cast %160 : vector<8x8x8xf32> to vector<64x8xf32>
    %162 = arith.truncf %161 : vector<64x8xf32> to vector<64x8xbf16>
    %c6_150 = arith.constant 6 : index
    %c0_151 = arith.constant 0 : index
    %c0_152 = arith.constant 0 : index
    %163 = vector.load %arg13[%c6_150, %c0_151, %c0_152] : memref<9x8x8xbf16, #tpu.memory_space<vmem>>, vector<1x8x8xbf16>
    %164 = vector.shape_cast %163 : vector<1x8x8xbf16> to vector<8x8xbf16>
    %cst_153 = arith.constant dense<0.000000e+00> : vector<64x8xf32>
    %165 = tpu.matmul %162, %164, %cst_153 {dimension_numbers = #tpu.dot_dimension_numbers<[1], [0], [0], [1], [0, 0, 1, 1], [], []>} : vector<64x8xbf16>, vector<8x8xbf16>, vector<64x8xf32> -> vector<64x8xf32>
    %166 = arith.addf %159, %165 : vector<64x8xf32>
    %c2_154 = arith.constant 2 : index
    %c1_155 = arith.constant 1 : index
    %c0_156 = arith.constant 0 : index
    %167 = vector.load %arg19[%c2_154, %c1_155, %c0_156] : memref<10x10x8xf32, #tpu.memory_space<vmem>>, vector<8x8x8xf32>
    %168 = vector.shape_cast %167 : vector<8x8x8xf32> to vector<64x8xf32>
    %169 = arith.truncf %168 : vector<64x8xf32> to vector<64x8xbf16>
    %c7_157 = arith.constant 7 : index
    %c0_158 = arith.constant 0 : index
    %c0_159 = arith.constant 0 : index
    %170 = vector.load %arg13[%c7_157, %c0_158, %c0_159] : memref<9x8x8xbf16, #tpu.memory_space<vmem>>, vector<1x8x8xbf16>
    %171 = vector.shape_cast %170 : vector<1x8x8xbf16> to vector<8x8xbf16>
    %cst_160 = arith.constant dense<0.000000e+00> : vector<64x8xf32>
    %172 = tpu.matmul %169, %171, %cst_160 {dimension_numbers = #tpu.dot_dimension_numbers<[1], [0], [0], [1], [0, 0, 1, 1], [], []>} : vector<64x8xbf16>, vector<8x8xbf16>, vector<64x8xf32> -> vector<64x8xf32>
    %173 = arith.addf %166, %172 : vector<64x8xf32>
    %c2_161 = arith.constant 2 : index
    %c2_162 = arith.constant 2 : index
    %c0_163 = arith.constant 0 : index
    %174 = vector.load %arg19[%c2_161, %c2_162, %c0_163] : memref<10x10x8xf32, #tpu.memory_space<vmem>>, vector<8x8x8xf32>
    %175 = vector.shape_cast %174 : vector<8x8x8xf32> to vector<64x8xf32>
    %176 = arith.truncf %175 : vector<64x8xf32> to vector<64x8xbf16>
    %c8_164 = arith.constant 8 : index
    %c0_165 = arith.constant 0 : index
    %c0_166 = arith.constant 0 : index
    %177 = vector.load %arg13[%c8_164, %c0_165, %c0_166] : memref<9x8x8xbf16, #tpu.memory_space<vmem>>, vector<1x8x8xbf16>
    %178 = vector.shape_cast %177 : vector<1x8x8xbf16> to vector<8x8xbf16>
    %cst_167 = arith.constant dense<0.000000e+00> : vector<64x8xf32>
    %179 = tpu.matmul %176, %178, %cst_167 {dimension_numbers = #tpu.dot_dimension_numbers<[1], [0], [0], [1], [0, 0, 1, 1], [], []>} : vector<64x8xbf16>, vector<8x8xbf16>, vector<64x8xf32> -> vector<64x8xf32>
    %180 = arith.addf %173, %179 : vector<64x8xf32>
    %c0_168 = arith.constant 0 : index
    %c0_169 = arith.constant 0 : index
    %181 = vector.load %arg14[%c0_168, %c0_169] : memref<1x8xf32, #tpu.memory_space<vmem>>, vector<1x8xf32>
    %182 = vector.broadcast %181 : vector<1x8xf32> to vector<64x8xf32>
    %183 = arith.addf %180, %182 : vector<64x8xf32>
    %cst_170 = arith.constant 0.000000e+00 : f32
    %184 = vector.broadcast %cst_170 : f32 to vector<64x8xf32>
    %185 = arith.maximumf %183, %184 : vector<64x8xf32>
    %186 = arith.truncf %185 : vector<64x8xf32> to vector<64x8xbf16>
    %c0_171 = arith.constant 0 : index
    %c0_172 = arith.constant 0 : index
    %187 = vector.load %arg15[%c0_171, %c0_172] : memref<8x32xbf16, #tpu.memory_space<vmem>>, vector<8x32xbf16>
    %cst_173 = arith.constant dense<0.000000e+00> : vector<64x32xf32>
    %188 = tpu.matmul %186, %187, %cst_173 {dimension_numbers = #tpu.dot_dimension_numbers<[1], [0], [0], [1], [0, 0, 1, 1], [], []>} : vector<64x8xbf16>, vector<8x32xbf16>, vector<64x32xf32> -> vector<64x32xf32>
    %c0_174 = arith.constant 0 : index
    %c0_175 = arith.constant 0 : index
    %189 = vector.load %arg16[%c0_174, %c0_175] : memref<1x32xf32, #tpu.memory_space<vmem>>, vector<1x32xf32>
    %190 = vector.broadcast %189 : vector<1x32xf32> to vector<64x32xf32>
    %191 = arith.addf %188, %190 : vector<64x32xf32>
    %192 = arith.addf %191, %104 : vector<64x32xf32>
    %cst_176 = arith.constant 0.000000e+00 : f32
    %193 = vector.broadcast %cst_176 : f32 to vector<64x32xf32>
    %194 = arith.maximumf %192, %193 : vector<64x32xf32>
    %195 = vector.shape_cast %194 : vector<64x32xf32> to vector<8x8x32xf32>
    %c0_177 = arith.constant 0 : index
    %c0_178 = arith.constant 0 : index
    %c0_179 = arith.constant 0 : index
    %c0_180 = arith.constant 0 : index
    %196 = vector.load %arg17[%c0_177, %c0_178, %c0_179, %c0_180] : memref<1x8x8x32xf32, #tpu.memory_space<vmem>>, vector<1x8x8x32xf32>
    %197 = vector.shape_cast %196 : vector<1x8x8x32xf32> to vector<8x8x32xf32>
    %198 = vector.shape_cast %195 : vector<8x8x32xf32> to vector<1x8x8x32xf32>
    tpu.vector_store %arg17[%c0_177, %c0_178, %c0_179, %c0_180], %198 {strides = array<i32>} : memref<1x8x8x32xf32, #tpu.memory_space<vmem>>, vector<1x8x8x32xf32>,
    return
  }
  func.func @transform_0(%arg0: i32) -> (i32, i32, i32, i32) {
    %c0_i32 = arith.constant 0 : i32
    %c0_i32_0 = arith.constant 0 : i32
    %c0_i32_1 = arith.constant 0 : i32
    %c0_i32_2 = arith.constant 0 : i32
    return %arg0, %c0_i32, %c0_i32_0, %c0_i32_1 : i32, i32, i32, i32
  }
  func.func @transform_1(%arg0: i32) -> (i32, i32) {
    %c0_i32 = arith.constant 0 : i32
    %c0_i32_0 = arith.constant 0 : i32
    %c0_i32_1 = arith.constant 0 : i32
    return %c0_i32, %c0_i32_0 : i32, i32
  }
  func.func @transform_2(%arg0: i32) -> (i32, i32) {
    %c0_i32 = arith.constant 0 : i32
    %c0_i32_0 = arith.constant 0 : i32
    %c0_i32_1 = arith.constant 0 : i32
    return %c0_i32, %c0_i32_0 : i32, i32
  }
  func.func @transform_3(%arg0: i32) -> (i32, i32, i32) {
    %c0_i32 = arith.constant 0 : i32
    %c0_i32_0 = arith.constant 0 : i32
    %c0_i32_1 = arith.constant 0 : i32
    %c0_i32_2 = arith.constant 0 : i32
    return %c0_i32, %c0_i32_0, %c0_i32_1 : i32, i32, i32
  }
  func.func @transform_4(%arg0: i32) -> (i32, i32) {
    %c0_i32 = arith.constant 0 : i32
    %c0_i32_0 = arith.constant 0 : i32
    %c0_i32_1 = arith.constant 0 : i32
    return %c0_i32, %c0_i32_0 : i32, i32
  }
  func.func @transform_5(%arg0: i32) -> (i32, i32) {
    %c0_i32 = arith.constant 0 : i32
    %c0_i32_0 = arith.constant 0 : i32
    %c0_i32_1 = arith.constant 0 : i32
    return %c0_i32, %c0_i32_0 : i32, i32
  }
  func.func @transform_6(%arg0: i32) -> (i32, i32) {
    %c0_i32 = arith.constant 0 : i32
    %c0_i32_0 = arith.constant 0 : i32
    %c0_i32_1 = arith.constant 0 : i32
    return %c0_i32, %c0_i32_0 : i32, i32
  }
  func.func @transform_7(%arg0: i32) -> (i32, i32) {
    %c0_i32 = arith.constant 0 : i32
    %c0_i32_0 = arith.constant 0 : i32
    %c0_i32_1 = arith.constant 0 : i32
    return %c0_i32, %c0_i32_0 : i32, i32
  }
  func.func @transform_8(%arg0: i32) -> (i32, i32) {
    %c0_i32 = arith.constant 0 : i32
    %c0_i32_0 = arith.constant 0 : i32
    %c0_i32_1 = arith.constant 0 : i32
    return %c0_i32, %c0_i32_0 : i32, i32
  }
  func.func @transform_9(%arg0: i32) -> (i32, i32) {
    %c0_i32 = arith.constant 0 : i32
    %c0_i32_0 = arith.constant 0 : i32
    %c0_i32_1 = arith.constant 0 : i32
    return %c0_i32, %c0_i32_0 : i32, i32
  }
  func.func @transform_10(%arg0: i32) -> (i32, i32) {
    %c0_i32 = arith.constant 0 : i32
    %c0_i32_0 = arith.constant 0 : i32
    %c0_i32_1 = arith.constant 0 : i32
    return %c0_i32, %c0_i32_0 : i32, i32
  }
  func.func @transform_11(%arg0: i32) -> (i32, i32) {
    %c0_i32 = arith.constant 0 : i32
    %c0_i32_0 = arith.constant 0 : i32
    %c0_i32_1 = arith.constant 0 : i32
    return %c0_i32, %c0_i32_0 : i32, i32
  }
  func.func @transform_12(%arg0: i32) -> (i32, i32, i32) {
    %c0_i32 = arith.constant 0 : i32
    %c0_i32_0 = arith.constant 0 : i32
    %c0_i32_1 = arith.constant 0 : i32
    %c0_i32_2 = arith.constant 0 : i32
    return %c0_i32, %c0_i32_0, %c0_i32_1 : i32, i32, i32
  }
  func.func @transform_13(%arg0: i32) -> (i32, i32) {
    %c0_i32 = arith.constant 0 : i32
    %c0_i32_0 = arith.constant 0 : i32
    %c0_i32_1 = arith.constant 0 : i32
    return %c0_i32, %c0_i32_0 : i32, i32
  }
  func.func @transform_14(%arg0: i32) -> (i32, i32) {
    %c0_i32 = arith.constant 0 : i32
    %c0_i32_0 = arith.constant 0 : i32
    %c0_i32_1 = arith.constant 0 : i32
    return %c0_i32, %c0_i32_0 : i32, i32
  }
  func.func @transform_15(%arg0: i32) -> (i32, i32) {
    %c0_i32 = arith.constant 0 : i32
    %c0_i32_0 = arith.constant 0 : i32
    %c0_i32_1 = arith.constant 0 : i32
    return %c0_i32, %c0_i32_0 : i32, i32
  }
  func.func @transform_16(%arg0: i32) -> (i32, i32, i32, i32) {
    %c0_i32 = arith.constant 0 : i32
    %c0_i32_0 = arith.constant 0 : i32
    %c0_i32_1 = arith.constant 0 : i32
    %c0_i32_2 = arith.constant 0 : i32
    return %arg0, %c0_i32, %c0_i32_0, %c0_i32_1 : i32, i32, i32, i32
  }
}

</mosaic_0001>

<bundles_post_ra>
// kernel: resblock_forward_nchw.1
= control target key start
LH: loop header
LB: loop body
LE: loop exit
PB: predicated region body
PF: predicated region fallthrough
CT: control target
= control target key end

     0   :  { %s6164_s0 = inlined_call_operand.vmem [shape: f32[2,16,16,8], index: 0, kind: input, shape index: {}]   ;;  %s6165_s1 = inlined_call_operand.vmem [shape: bf16[8,8], index: 1, kind: input, shape index: {}]   ;;  %s6166_s2 = inlined_call_operand.vmem [shape: f32[1,8], index: 2, kind: input, shape index: {}]   ;;  %s6167_s3 = inlined_call_operand.vmem [shape: bf16[9,8,8], index: 3, kind: input, shape index: {}]   ;;  %s6168_s4 = inlined_call_operand.vmem [shape: f32[1,8], index: 4, kind: input, shape index: {}]   ;;  %s6169_s5 = inlined_call_operand.vmem [shape: bf16[8,32], index: 5, kind: input, shape index: {}]   ;;  %s6170_s6 = inlined_call_operand.vmem [shape: f32[1,32], index: 6, kind: input, shape index: {}]   ;;  %s6171_s7 = inlined_call_operand.vmem [shape: bf16[8,32], index: 7, kind: input, shape index: {}]   ;;  %s6172_s8 = inlined_call_operand.vmem [shape: f32[1,32], index: 8, kind: input, shape index: {}]   ;;  %s6173_s9 = inlined_call_operand.vmem [shape: f32[64,256], index: 9, kind: input, shape index: {}]   ;;  %s6174_s10 = inlined_call_operand.vmem [shape: bf16[32,8], index: 10, kind: input, shape index: {}]   ;;  %s6175_s11 = inlined_call_operand.vmem [shape: f32[1,8], index: 11, kind: input, shape index: {}]   ;;  %s6176_s12 = inlined_call_operand.vmem [shape: bf16[9,8,8], index: 12, kind: input, shape index: {}]   ;;  %s6177_s13 = inlined_call_operand.vmem [shape: f32[1,8], index: 13, kind: input, shape index: {}]   ;;  %s6178_s14 = inlined_call_operand.vmem [shape: bf16[8,32], index: 14, kind: input, shape index: {}]   ;;  %s6179_s15 = inlined_call_operand.vmem [shape: f32[1,32], index: 15, kind: input, shape index: {}]   ;;  %s6180_s16 = inlined_call_operand.hbm [shape: f32[2,8,8,32], index: 16, kind: output, shape index: {}]  }
   0x1   :  { %6192 = sst [smem:[#allocation31_spill]] %s6164_s0 }
   0x2   :  { %6193 = sst [smem:[#allocation32_spill]] %s6165_s1 }
   0x3   :  { %6194 = sst [smem:[#allocation33_spill]] %s6166_s2 }
   0x4   :  { %6195 = sst [smem:[#allocation34_spill]] %s6167_s3 }
   0x5   :  { %21 = vsyncpa [#allocation5], 0 }
   0x6   :  { %23 = vsyncpa [#allocation5 + $0x1], 0  ;;  %s4484_s21 = smov 0   ;;  %s4486_s22 = smov 0  }
   0x7   :  { %s4488_s23 = smov 0   ;;  %s4490_s24 = smov 0  }
   0x8 LB: > { %6196 = sst [smem:[#allocation7_spill]] %s4390_s23  ;;  %s4505_s25 = sadd.s32 4294967295, %s4394_s24   ;;  %s4394_s24 = sphi %s4490_s24, %s6276_s24   ;;  %s4390_s23 = sphi %s4488_s23, %s6273_s23   ;;  %s4386_s22 = sphi %s4486_s22, %s6275_s22   ;;  %s4382_s21 = sphi %s4484_s21, %s6274_s21  }
   0x9   : > { %s3996_s26 = sadd.s32 4294967294, %s4394_s24   ;;  %s4509_s27 = sadd.s32 1, %s4394_s24  }
   0xa   : > { %s377_s28 = sadd.s32 1, %s4390_s23  ;;  %s374_s29 = ssub.s32 %s4394_s24, %s4509_s27 }
   0xb   : > { %p387_p0 = scmp.ne.s32.totalorder %s4390_s23, %s4386_s22  ;;  %p375_p1 = scmp.eq.s32.totalorder %s374_s29, 0 }
   0xc   : > { %p388_p2 = scmp.eq.s32.totalorder %s4505_s25, 1  ;;  %p393_p3 = scmp.ne.s32.totalorder %s4386_s22, %s4382_s21 }
   0xd   : > { %p394_p4 = scmp.eq.s32.totalorder %s3996_s26, 1  ;;  %p3999_p7 = scmp.ge.s32.totalorder %s4394_s24, 1 }
   0xe   : > { %s4520_s30 = scalar_select %p375_p1, %s4390_s23, %s377_s28  }
   0xf   : > { %p4522_p5 = por %p388_p2, %p387_p0  ;;  %p4526_p6 = por %p394_p4, %p393_p3 }
  0x10   : > { %6197 = sst [smem:[#allocation8_spill]] %s4520_s30  ;;  %p465_p8 = scmp.lt.s32.totalorder %s4394_s24, 3 }
  0x12   : > { %p466_p9 = pnand %p3999_p7, %p465_p8 }
  0x14   : > { %469 = sbr.rel (%p466_p9) target bundleno = 2067 (0x813), region = 84 }
  0x19   : > { %s6200_s1 = sld [smem:[#allocation32_spill]]  ;;  %vm623_vm0 = vcmask 1043456   ;;  %p515_p10 = scmp.lt.s32.totalorder %s4505_s25, 1  ;;  %vm574_vm1 = vcmask 64512   ;;  %v4396_v29 = vmov 0.0   ;;  %vm750_vm2 = vcmask 58368  }
  0x1a   : > { %s6201_s30 = sld [smem:[#allocation31_spill]]  ;;  %748 = vst.msk [vmem:[#allocation2] sm:$0xff] %vm574_vm1, %v4396_v29  ;;  %vm3164_vm3 = vcmask 261120   ;;  %s4247_s28 = sshll.u32 %s4505_s25, 6 }
  0x1b   : > { %s516_s20 = scalar_select %p515_p10, %s4505_s25, 1  ;;  %749 = vst.msk [vmem:[#allocation2 + $0x8] sm:$0xff] %vm574_vm1, %v4396_v29 }
  0x1c   : > { %752 = vst.msk [vmem:[#allocation2 + $0x18] sm:$0xff] %vm574_vm1, %v4396_v29  ;;  %s6202_s3 = sld [smem:[#allocation34_spill]]  ;;  %s3930_s18 = scalar_lea.hbm %s6180_s16, %s4247_s28 }
  0x1d   : > { %s4244_s26 = sshll.u32 %s516_s20, 8  ;;  %753 = vst.msk [vmem:[#allocation2 + $0x20] sm:$0xff] %vm574_vm1, %v4396_v29  ;;  %s6203_s2 = sld [smem:[#allocation33_spill]] }
  0x1e   : > { %755 = vst.msk [vmem:[#allocation2 + $0x30] sm:$0xff] %vm574_vm1, %v4396_v29  ;;  %s512_s20 = sand.u32 1, %s4386_s22  }
  0x1f   : > { %v569_v0 = vld [vmem:[%s6200_s1] sm:$0xf]  ;;  %756 = vst.msk [vmem:[#allocation2 + $0x38] sm:$0xff] %vm574_vm1, %v4396_v29  ;;  %s3919_s25 = scalar_lea.sflag [#allocation5], %s512_s20 }
  0x20   : > { %v625_v1 = vsel %vm623_vm0, %v569_v0, 0  ;;  %s4541_s23 = scalar_lea.vmem %s6201_s30, %s4244_s26  ;;  %758 = vst.msk [vmem:[#allocation2 + $0x48] sm:$0xff] %vm574_vm1, %v4396_v29  ;;  %s4352_s30 = scalar_lea.hbm %s6180_s16, 128 }
  0x21   : > { %634 = vmatpush.bf16.msra.mxu0 %v625_v1  ;;  %4249 = vmatpush.bf16.msra.mxu2 %v625_v1  ;;  %v521_v2 = vld [vmem:[%s4541_s23] sm:$0xff]  ;;  %v522_v3 = vld [vmem:[%s4541_s23 + $0x8] sm:$0xff]  ;;  %v523_v5 = vld [vmem:[%s4541_s23 + $0x10] sm:$0xff]  ;;  %759 = vst.msk [vmem:[#allocation2 + $0x50] sm:$0xff] %vm574_vm1, %v4396_v29 }
  0x22   : > { %4250 = vmatpush.bf16.msra.mxu3 %v625_v1  ;;  %4248 = vmatpush.bf16.msra.mxu1 %v625_v1  ;;  %v553_v4 = vpack.c.bf16 %v522_v3, %v521_v2  ;;  %v524_v6 = vld [vmem:[%s4541_s23 + $0x18] sm:$0xff]  ;;  %v525_v8 = vld [vmem:[%s4541_s23 + $0x20] sm:$0xff]  ;;  %v526_v9 = vld [vmem:[%s4541_s23 + $0x28] sm:$0xff]  ;;  %761 = vst.msk [vmem:[#allocation2 + $0x60] sm:$0xff] %vm574_vm1, %v4396_v29 }
  0x23   : > { %v554_v7 = vpack.c.bf16 %v524_v6, %v523_v5  ;;  %v555_v10 = vpack.c.bf16 %v526_v9, %v525_v8  ;;  %v527_v11 = vld [vmem:[%s4541_s23 + $0x30] sm:$0xff]  ;;  %v528_v12 = vld [vmem:[%s4541_s23 + $0x38] sm:$0xff]  ;;  %v529_v14 = vld [vmem:[%s4541_s23 + $0x40] sm:$0xff]  ;;  %762 = vst.msk [vmem:[#allocation2 + $0x68] sm:$0xff] %vm574_vm1, %v4396_v29 }
  0x24   : > { %4003 = vmatmul.msk.bf16.vlgmr.msra.gmra.mxu0 %vm574_vm1, %v553_v4  ;;  %v556_v13 = vpack.c.bf16 %v528_v12, %v527_v11  ;;  %v530_v15 = vld [vmem:[%s4541_s23 + $0x48] sm:$0xff]  ;;  %v549_v17 = vld [vmem:[%s4541_s23 + $0xe0] sm:$0xff]  ;;  %v551_v19 = vld [vmem:[%s4541_s23 + $0xf0] sm:$0xff]  ;;  %764 = vst.msk [vmem:[#allocation2 + $0x78] sm:$0xff] %vm574_vm1, %v4396_v29 }
  0x25   : > { %v557_v16 = vpack.c.bf16 %v530_v15, %v529_v14  ;;  %v550_v18 = vld [vmem:[%s4541_s23 + $0xe8] sm:$0xff]  ;;  %v552_v21 = vld [vmem:[%s4541_s23 + $0xf8] sm:$0xff]  ;;  %v547_v22 = vld [vmem:[%s4541_s23 + $0xd0] sm:$0xff]  ;;  %765 = vst.msk [vmem:[#allocation2 + $0x80] sm:$0xff] %vm574_vm1, %v4396_v29 }
  0x26   : > { %v567_v20 = vpack.c.bf16 %v550_v18, %v549_v17  ;;  %v548_v23 = vld [vmem:[%s4541_s23 + $0xd8] sm:$0xff]  ;;  %v568_v24 = vpack.c.bf16 %v552_v21, %v551_v19  ;;  %v531_v26 = vld [vmem:[%s4541_s23 + $0x50] sm:$0xff]  ;;  %v884_v30 = vld [vmem:[%s6202_s3] sm:$0xf]  ;;  %767 = vst.msk [vmem:[#allocation2 + $0x90] sm:$0xff] %vm574_vm1, %v4396_v29 }
  0x27   : > { %v566_v25 = vpack.c.bf16 %v548_v23, %v547_v22  ;;  %v532_v27 = vld [vmem:[%s4541_s23 + $0x58] sm:$0xff]  ;;  %v4052_v31 = vld [vmem:[%s6202_s3 + $0x8] sm:$0xf]  ;;  %v1124_v32 = vsel %vm623_vm0, %v884_v30, 0  ;;  %v836_v34 = vld [vmem:[#allocation2] sm:$0xff]  ;;  %768 = vst.msk [vmem:[#allocation2 + $0x98] sm:$0xff] %vm574_vm1, %v4396_v29 }
  0x28   : > { %4017 = vmatmul.msk.bf16.vlgmr.msra.gmra.mxu2 %vm574_vm1, %v567_v20  ;;  %4018 = vmatmul.msk.bf16.vlgmr.msra.gmra.mxu3 %vm574_vm1, %v568_v24  ;;  %v558_v28 = vpack.c.bf16 %v532_v27, %v531_v26  ;;  %v1314_v33 = vsel %vm623_vm0, %v4052_v31, 0  ;;  %v837_v35 = vld [vmem:[#allocation2 + $0x8] sm:$0xff]  ;;  %v533_v37 = vld [vmem:[%s4541_s23 + $0x60] sm:$0xff]  ;;  %770 = vst.msk [vmem:[#allocation2 + $0xa8] sm:$0xff] %vm574_vm1, %v4396_v29  ;;  %v535_v42 = vld [vmem:[%s4541_s23 + $0x70] sm:$0xff] }
  0x29   : > { %4016 = vmatmul.msk.bf16.vlgmr.msra.gmra.mxu1 %vm574_vm1, %v566_v25  ;;  %1133 = vmatpush.bf16.msrb.mxu2 %v1124_v32  ;;  %v868_v36 = vpack.c.bf16 %v837_v35, %v836_v34  ;;  %v534_v38 = vld [vmem:[%s4541_s23 + $0x68] sm:$0xff]  ;;  %771 = vst.msk [vmem:[#allocation2 + $0xb0] sm:$0xff] %vm574_vm1, %v4396_v29  ;;  %v4019_v40 = vld [vmem:[%s6202_s3 + $0x4] sm:$0xf]  ;;  %v536_v43 = vld [vmem:[%s4541_s23 + $0x78] sm:$0xff] }
  0x2a   : > { %1323 = vmatpush.bf16.msrb.mxu3 %v1314_v33  ;;  %v559_v39 = vpack.c.bf16 %v534_v38, %v533_v37  ;;  %773 = vst.msk [vmem:[#allocation2 + $0xc0] sm:$0xff] %vm574_vm1, %v4396_v29  ;;  %v984_v41 = vsel %vm623_vm0, %v4019_v40, 0  ;;  %v560_v44 = vpack.c.bf16 %v536_v43, %v535_v42  ;;  %v537_v45 = vld [vmem:[%s4541_s23 + $0x80] sm:$0xff]  ;;  %v538_v46 = vld [vmem:[%s4541_s23 + $0x88] sm:$0xff]  ;;  %v539_v56 = vld [vmem:[%s4541_s23 + $0x90] sm:$0xff] }
  0x2b   : > { %774 = vst.msk [vmem:[#allocation2 + $0xc8] sm:$0xff] %vm574_vm1, %v4396_v29  ;;  %993 = vmatpush.bf16.msrb.mxu1 %v984_v41  ;;  %v561_v47 = vpack.c.bf16 %v538_v46, %v537_v45  ;;  %v1215_v49 = vld [vmem:[#allocation2 + $0x2] sm:$0xff]  ;;  %v540_v57 = vld [vmem:[%s4541_s23 + $0x98] sm:$0xff]  ;;  %v4725_v58 = vld [vmem:[%s6203_s2] ss:$0 sm:$0xff] }
  0x2c   : > { %776 = vst.msk [vmem:[#allocation2 + $0xd8] sm:$0xff] %vm574_vm1, %v4396_v29  ;;  %v885_v50 = vld [vmem:[#allocation2 + $0x1] sm:$0xff]  ;;  %v562_v59 = vpack.c.bf16 %v540_v57, %v539_v56  ;;  %v543_v24 = vld [vmem:[%s4541_s23 + $0xb0] sm:$0xff]  ;;  %v544_v25 = vld [vmem:[%s4541_s23 + $0xb8] sm:$0xff] }
  0x2d   : > { %777 = vst.msk [vmem:[#allocation2 + $0xe0] sm:$0xff] %vm574_vm1, %v4396_v29  ;;  %v541_v6 = vld [vmem:[%s4541_s23 + $0xa0] sm:$0xff]  ;;  %v564_v32 = vpack.c.bf16 %v544_v25, %v543_v24  ;;  %v546_v45 = vld [vmem:[%s4541_s23 + $0xc8] sm:$0xff] }
  0x2e   : > { %779 = vst.msk [vmem:[#allocation2 + $0xf0] sm:$0xff] %vm574_vm1, %v4396_v29 }
  0x2f   : > { %780 = vst.msk [vmem:[#allocation2 + $0xf8] sm:$0xff] %vm574_vm1, %v4396_v29 }
  0x30   : > { %782 = vst.msk [vmem:[#allocation2 + $0x108] sm:$0xff] %vm574_vm1, %v4396_v29 }
  0x31   : > { %783 = vst.msk [vmem:[#allocation2 + $0x110] sm:$0xff] %vm574_vm1, %v4396_v29 }
  0x32   : > { %785 = vst.msk [vmem:[#allocation2 + $0x120] sm:$0xff] %vm574_vm1, %v4396_v29 }
  0x33   : > { %786 = vst.msk [vmem:[#allocation2 + $0x128] sm:$0xff] %vm574_vm1, %v4396_v29 }
  0x34   : > { %4004 = vmatmul.msk.bf16.gmra.mxu0 %vm574_vm1, %v554_v7  ;;  %788 = vst.msk [vmem:[#allocation2 + $0x138] sm:$0xff] %vm574_vm1, %v4396_v29  ;;  %v542_v7 = vld [vmem:[%s4541_s23 + $0xa8] sm:$0xff] }
  0x35   : > { %789 = vst.msk [vmem:[#allocation2 + $0x140] sm:$0xff] %vm574_vm1, %v4396_v29  ;;  %v563_v8 = vpack.c.bf16 %v542_v7, %v541_v6 }
  0x36   : > { %791 = vst.msk [vmem:[#allocation2 + $0x150] sm:$0xff] %vm574_vm1, %v4396_v29 }
  0x37   : > { %792 = vst.msk [vmem:[#allocation2 + $0x158] sm:$0xff] %vm574_vm1, %v4396_v29 }
  0x38   : > { %4036 = vmatmul.msk.bf16.vlgmr.msrb.gmra.mxu2 %vm574_vm1, %v868_v36  ;;  %794 = vst.msk [vmem:[#allocation2 + $0x168] sm:$0xff] %vm574_vm1, %v4396_v29 }
  0x39   : > { %795 = vst.msk [vmem:[#allocation2 + $0x170] sm:$0xff] %vm574_vm1, %v4396_v29 }
  0x3a   : > { %797 = vst.msk [vmem:[#allocation2 + $0x180] sm:$0xff] %vm574_vm1, %v4396_v29 }
  0x3b   : > { %798 = vst.msk [vmem:[#allocation2 + $0x188] sm:$0xff] %vm574_vm1, %v4396_v29 }
  0x3c   : > { %800 = vst.msk [vmem:[#allocation2 + $0x198] sm:$0xff] %vm574_vm1, %v4396_v29 }
  0x3d   : > { %801 = vst.msk [vmem:[#allocation2 + $0x1a0] sm:$0xff] %vm574_vm1, %v4396_v29 }
  0x3e   : > { %3214 = vst.msk [vmem:[#allocation3] sm:$0xff] %vm574_vm1, %v4396_v29 }
  0x3f   : > { %3216 = vst.msk [vmem:[#allocation3 + $0x10] sm:$0xff] %vm574_vm1, %v4396_v29 }
  0x40   : > { %3218 = vst.msk [vmem:[#allocation3 + $0x20] sm:$0xff] %vm574_vm1, %v4396_v29 }
  0x41   : > { %3220 = vst.msk [vmem:[#allocation3 + $0x30] sm:$0xff] %vm574_vm1, %v4396_v29 }
  0x42   : > { %3222 = vst.msk [vmem:[#allocation3 + $0x40] sm:$0xff] %vm574_vm1, %v4396_v29 }
  0x43   : > { %3224 = vst.msk [vmem:[#allocation3 + $0x50] sm:$0xff] %vm574_vm1, %v4396_v29 }
  0x44   : > { %4005 = vmatmul.msk.bf16.gmra.mxu0 %vm574_vm1, %v555_v10  ;;  %3226 = vst.msk [vmem:[#allocation3 + $0x60] sm:$0xff] %vm574_vm1, %v4396_v29 }
  0x45   : > { %3228 = vst.msk [vmem:[#allocation3 + $0x70] sm:$0xff] %vm574_vm1, %v4396_v29 }
  0x46   : > { %3230 = vst.msk [vmem:[#allocation3 + $0x80] sm:$0xff] %vm574_vm1, %v4396_v29 }
  0x47   : > { %3232 = vst.msk [vmem:[#allocation3 + $0x90] sm:$0xff] %vm574_vm1, %v4396_v29 }
  0x48   : > { %751 = vst.msk [vmem:[#allocation2 + $0x10] sm:$0x3] %vm750_vm2, %v4396_v29 }
  0x49   : > { %754 = vst.msk [vmem:[#allocation2 + $0x28] sm:$0x3] %vm750_vm2, %v4396_v29 }
  0x4a   : > { %757 = vst.msk [vmem:[#allocation2 + $0x40] sm:$0x3] %vm750_vm2, %v4396_v29 }
  0x4b   : > { %760 = vst.msk [vmem:[#allocation2 + $0x58] sm:$0x3] %vm750_vm2, %v4396_v29 }
  0x4c   : > { %763 = vst.msk [vmem:[#allocation2 + $0x70] sm:$0x3] %vm750_vm2, %v4396_v29 }
  0x4d   : > { %766 = vst.msk [vmem:[#allocation2 + $0x88] sm:$0x3] %vm750_vm2, %v4396_v29 }
  0x4e   : > { %769 = vst.msk [vmem:[#allocation2 + $0xa0] sm:$0x3] %vm750_vm2, %v4396_v29 }
  0x4f   : > { %v1216_v51 = vld [vmem:[#allocation2 + $0xa] sm:$0xff]  ;;  %772 = vst.msk [vmem:[#allocation2 + $0xb8] sm:$0x3] %vm750_vm2, %v4396_v29 }
  0x50   : > { %v886_v52 = vld [vmem:[#allocation2 + $0x9] sm:$0xff]  ;;  %v1247_v53 = vpack.c.bf16 %v1216_v51, %v1215_v49  ;;  %775 = vst.msk [vmem:[#allocation2 + $0xd0] sm:$0x3] %vm750_vm2, %v4396_v29 }
  0x51   : > { %v917_v54 = vpack.c.bf16 %v886_v52, %v885_v50  ;;  %778 = vst.msk [vmem:[#allocation2 + $0xe8] sm:$0x3] %vm750_vm2, %v4396_v29 }
  0x52   : > { %4053 = vmatmul.msk.bf16.vlgmr.msrb.gmra.mxu3 %vm574_vm1, %v1247_v53  ;;  %781 = vst.msk [vmem:[#allocation2 + $0x100] sm:$0x3] %vm750_vm2, %v4396_v29 }
  0x53   : > { %4020 = vmatmul.msk.bf16.vlgmr.msrb.gmra.mxu1 %vm574_vm1, %v917_v54  ;;  %784 = vst.msk [vmem:[#allocation2 + $0x118] sm:$0x3] %vm750_vm2, %v4396_v29 }
  0x54   : > { %4006 = vmatmul.msk.bf16.gmra.mxu0 %vm574_vm1, %v556_v13  ;;  %787 = vst.msk [vmem:[#allocation2 + $0x130] sm:$0x3] %vm750_vm2, %v4396_v29 }
  0x55   : > { %790 = vst.msk [vmem:[#allocation2 + $0x148] sm:$0x3] %vm750_vm2, %v4396_v29 }
  0x56   : > { %793 = vst.msk [vmem:[#allocation2 + $0x160] sm:$0x3] %vm750_vm2, %v4396_v29 }
  0x57   : > { %796 = vst.msk [vmem:[#allocation2 + $0x178] sm:$0x3] %vm750_vm2, %v4396_v29 }
  0x58   : > { %799 = vst.msk [vmem:[#allocation2 + $0x190] sm:$0x3] %vm750_vm2, %v4396_v29 }
  0x59   : > { %802 = vst.msk [vmem:[#allocation2 + $0x1a8] sm:$0x3] %vm750_vm2, %v4396_v29 }
  0x5a   : > { %3215 = vst.msk [vmem:[#allocation3 + $0x8] sm:$0x3] %vm750_vm2, %v4396_v29 }
  0x5b   : > { %3217 = vst.msk [vmem:[#allocation3 + $0x18] sm:$0x3] %vm750_vm2, %v4396_v29 }
  0x5c   : > { %3219 = vst.msk [vmem:[#allocation3 + $0x28] sm:$0x3] %vm750_vm2, %v4396_v29 }
  0x5d   : > { %3221 = vst.msk [vmem:[#allocation3 + $0x38] sm:$0x3] %vm750_vm2, %v4396_v29 }
  0x5e   : > { %3223 = vst.msk [vmem:[#allocation3 + $0x48] sm:$0x3] %vm750_vm2, %v4396_v29 }
  0x5f   : > { %3225 = vst.msk [vmem:[#allocation3 + $0x58] sm:$0x3] %vm750_vm2, %v4396_v29 }
  0x60   : > { %3227 = vst.msk [vmem:[#allocation3 + $0x68] sm:$0x3] %vm750_vm2, %v4396_v29 }
  0x61   : > { %3229 = vst.msk [vmem:[#allocation3 + $0x78] sm:$0x3] %vm750_vm2, %v4396_v29 }
  0x62   : > { %3231 = vst.msk [vmem:[#allocation3 + $0x88] sm:$0x3] %vm750_vm2, %v4396_v29 }
  0x63   : > { %3233 = vst.msk [vmem:[#allocation3 + $0x98] sm:$0x3] %vm750_vm2, %v4396_v29 }
  0x64   : > { %4007 = vmatmul.msk.bf16.gmra.mxu0 %vm574_vm1, %v557_v16 }
  0x74   : > { %4008 = vmatmul.msk.bf16.gmra.mxu0 %vm574_vm1, %v558_v28 }
  0x84   : > { %4009 = vmatmul.msk.bf16.gmra.mxu0 %vm574_vm1, %v559_v39  ;;  %v4069_v39 = vld [vmem:[%s6202_s3 + $0xc] sm:$0xf] }
  0x85   : > { %v1536_v40 = vsel %vm623_vm0, %v4069_v39, 0 }
  0x86   : > { %1545 = vmatpush.bf16.msrb.mxu0 %v1536_v40 }
  0x94   : > { %4010 = vmatmul.msk.bf16.gmra.mxu0 %vm574_vm1, %v560_v44  ;;  %v545_v44 = vld [vmem:[%s4541_s23 + $0xc0] sm:$0xff] }
  0x95   : > { %v565_v52 = vpack.c.bf16 %v546_v45, %v545_v44 }
  0xa1   : > { %v636_v48 = vpop.f32.mrf.mxu0 }
  0xa2   : > { %v637_v61 = vadd.f32 %v4725_v58, %v636_v48 }
  0xa4   : > { %4011 = vmatmul.msk.bf16.gmra.mxu0 %vm574_vm1, %v561_v47  ;;  %v716_v0 = vmax.f32 %v637_v61, 0.0 }
  0xa6   : > { %804 = vst.msk [vmem:[#allocation2 + $0x19] sm:$0xff] %vm574_vm1, %v716_v0 }
  0xa9   : > { %v638_v55 = vpop.f32.mrf.mxu0 }
  0xaa   : > { %v639_v62 = vadd.f32 %v4725_v58, %v638_v55 }
  0xac   : > { %v717_v1 = vmax.f32 %v639_v62, 0.0 }
  0xad   : > { %v887_v9 = vld [vmem:[#allocation2 + $0x19] sm:$0xff] }
  0xae   : > { %805 = vst.msk [vmem:[#allocation2 + $0x21] sm:$0xff] %vm574_vm1, %v717_v1  ;;  %v838_v10 = vld [vmem:[#allocation2 + $0x18] sm:$0xff] }
  0xb1   : > { %v641_v60 = vpop.f32.mrf.mxu0 }
  0xb2   : > { %v642_v63 = vadd.f32 %v4725_v58, %v641_v60 }
  0xb4   : > { %4012 = vmatmul.msk.bf16.gmra.mxu0 %vm574_vm1, %v562_v59  ;;  %v718_v2 = vmax.f32 %v642_v63, 0.0 }
  0xb5   : > { %v888_v12 = vld [vmem:[#allocation2 + $0x21] sm:$0xff] }
  0xb6   : > { %806 = vst.msk [vmem:[#allocation2 + $0x31] sm:$0xff] %vm574_vm1, %v718_v2  ;;  %v839_v13 = vld [vmem:[#allocation2 + $0x20] sm:$0xff]  ;;  %v4761_v16 = vpack.c.bf16 %v888_v12, %v887_v9  ;;  %v706_v12 = vpop.f32.mrf.mxu2 }
  0xb7   : > { %v1217_v14 = vld [vmem:[#allocation2 + $0x1a] sm:$0xff]  ;;  %v4763_v17 = vpack.c.bf16 %v839_v13, %v838_v10  ;;  %v1218_v18 = vld [vmem:[#allocation2 + $0x22] sm:$0xff] }
  0xb8   : > { %v4765_v19 = vpack.c.bf16 %v1218_v18, %v1217_v14  ;;  %4021 = vmatmul.msk.bf16.gmra.mxu1 %vm574_vm1, %v4761_v16  ;;  %v707_v14 = vadd.f32 %v4725_v58, %v706_v12 }
  0xb9   : > { %v643_v3 = vpop.f32.mrf.mxu0  ;;  %4037 = vmatmul.msk.bf16.gmra.mxu2 %vm574_vm1, %v4763_v17 }
  0xba   : > { %v644_v4 = vadd.f32 %v4725_v58, %v643_v3  ;;  %4054 = vmatmul.msk.bf16.gmra.mxu3 %vm574_vm1, %v4765_v19 }
  0xbc   : > { %v719_v5 = vmax.f32 %v644_v4, 0.0 }
  0xbd   : > { %v889_v30 = vld [vmem:[#allocation2 + $0x31] sm:$0xff] }
  0xbe   : > { %807 = vst.msk [vmem:[#allocation2 + $0x39] sm:$0xff] %vm574_vm1, %v719_v5  ;;  %v840_v31 = vld [vmem:[#allocation2 + $0x30] sm:$0xff] }
  0xc1   : > { %v646_v11 = vpop.f32.mrf.mxu0 }
  0xc2   : > { %v647_v15 = vadd.f32 %v4725_v58, %v646_v11  ;;  %v701_v11 = vpop.f32.mrf.mxu1 }
  0xc3   : > { %v702_v13 = vadd.f32 %v4725_v58, %v701_v11 }
  0xc4   : > { %v720_v20 = vmax.f32 %v647_v15, 0.0  ;;  %4013 = vmatmul.msk.bf16.gmra.mxu0 %vm574_vm1, %v563_v8  ;;  %v711_v15 = vpop.f32.mrf.mxu3 }
  0xc5   : > { %v890_v26 = vld [vmem:[#allocation2 + $0x39] sm:$0xff] }
  0xc6   : > { %808 = vst.msk [vmem:[#allocation2 + $0x49] sm:$0xff] %vm574_vm1, %v720_v20  ;;  %v841_v27 = vld [vmem:[#allocation2 + $0x38] sm:$0xff]  ;;  %v4779_v33 = vpack.c.bf16 %v890_v26, %v889_v30  ;;  %v742_v20 = vmax.f32 %v702_v13, 0.0 }
  0xc7   : > { %v1219_v28 = vld [vmem:[#allocation2 + $0x32] sm:$0xff]  ;;  %v1220_v29 = vld [vmem:[#allocation2 + $0x3a] sm:$0xff]  ;;  %v4781_v34 = vpack.c.bf16 %v841_v27, %v840_v31 }
  0xc8   : > { %v4783_v36 = vpack.c.bf16 %v1220_v29, %v1219_v28  ;;  %4022 = vmatmul.msk.bf16.gmra.mxu1 %vm574_vm1, %v4779_v33  ;;  %830 = vst.msk [vmem:[#allocation2 + $0x151] sm:$0xff] %vm574_vm1, %v742_v20  ;;  %v708_v28 = vpop.f32.mrf.mxu2 }
  0xc9   : > { %v648_v21 = vpop.f32.mrf.mxu0  ;;  %4038 = vmatmul.msk.bf16.gmra.mxu2 %vm574_vm1, %v4781_v34 }
  0xca   : > { %v649_v22 = vadd.f32 %v4725_v58, %v648_v21  ;;  %4055 = vmatmul.msk.bf16.gmra.mxu3 %vm574_vm1, %v4783_v36  ;;  %v744_v21 = vmax.f32 %v707_v14, 0.0  ;;  %v703_v27 = vpop.f32.mrf.mxu1 }
  0xcb   : > { %v704_v31 = vadd.f32 %v4725_v58, %v703_v27 }
  0xcc   : > { %v721_v23 = vmax.f32 %v649_v22, 0.0  ;;  %832 = vst.msk [vmem:[#allocation2 + $0x169] sm:$0xff] %vm574_vm1, %v744_v21 }
  0xcd   : > { %v891_v50 = vld [vmem:[#allocation2 + $0x49] sm:$0xff] }
  0xce   : > { %809 = vst.msk [vmem:[#allocation2 + $0x51] sm:$0xff] %vm574_vm1, %v721_v23  ;;  %v842_v51 = vld [vmem:[#allocation2 + $0x48] sm:$0xff] }
  0xd1   : > { %v651_v35 = vpop.f32.mrf.mxu0 }
  0xd2   : > { %v652_v37 = vadd.f32 %v4725_v58, %v651_v35  ;;  %v713_v35 = vpop.f32.mrf.mxu3 }
  0xd3   : > { %v714_v39 = vadd.f32 %v4725_v58, %v713_v35 }
  0xd4   : > { %v722_v38 = vmax.f32 %v652_v37, 0.0  ;;  %4014 = vmatmul.msk.bf16.gmra.mxu0 %vm574_vm1, %v564_v32  ;;  %v709_v32 = vadd.f32 %v4725_v58, %v708_v28 }
  0xd5   : > { %v892_v46 = vld [vmem:[#allocation2 + $0x51] sm:$0xff] }
  0xd6   : > { %810 = vst.msk [vmem:[#allocation2 + $0x61] sm:$0xff] %vm574_vm1, %v722_v38  ;;  %v843_v47 = vld [vmem:[#allocation2 + $0x50] sm:$0xff]  ;;  %v4802_v53 = vpack.c.bf16 %v892_v46, %v891_v50  ;;  %v745_v44 = vmax.f32 %v709_v32, 0.0 }
  0xd7   : > { %v1221_v48 = vld [vmem:[#allocation2 + $0x4a] sm:$0xff]  ;;  %v1222_v49 = vld [vmem:[#allocation2 + $0x52] sm:$0xff]  ;;  %v4804_v54 = vpack.c.bf16 %v843_v47, %v842_v51  ;;  %v747_v47 = vmax.f32 %v714_v39, 0.0 }
  0xd8   : > { %v4806_v56 = vpack.c.bf16 %v1222_v49, %v1221_v48  ;;  %4023 = vmatmul.msk.bf16.gmra.mxu1 %vm574_vm1, %v4802_v53  ;;  %833 = vst.msk [vmem:[#allocation2 + $0x171] sm:$0xff] %vm574_vm1, %v745_v44 }
  0xd9   : > { %v653_v41 = vpop.f32.mrf.mxu0  ;;  %4039 = vmatmul.msk.bf16.gmra.mxu2 %vm574_vm1, %v4804_v54  ;;  %835 = vst.msk [vmem:[#allocation2 + $0x189] sm:$0xff] %vm574_vm1, %v747_v47 }
  0xda   : > { %v654_v42 = vadd.f32 %v4725_v58, %v653_v41  ;;  %4056 = vmatmul.msk.bf16.gmra.mxu3 %vm574_vm1, %v4806_v56 }
  0xdc   : > { %v723_v43 = vmax.f32 %v654_v42, 0.0 }
  0xdd   : > { %v893_v3 = vld [vmem:[#allocation2 + $0x61] sm:$0xff] }
  0xde   : > { %811 = vst.msk [vmem:[#allocation2 + $0x69] sm:$0xff] %vm574_vm1, %v723_v43  ;;  %v844_v4 = vld [vmem:[#allocation2 + $0x60] sm:$0xff]  ;;  %v743_v43 = vmax.f32 %v704_v31, 0.0 }
  0xe0   : > { %831 = vst.msk [vmem:[#allocation2 + $0x159] sm:$0xff] %vm574_vm1, %v743_v43 }
  0xe1   : > { %v656_v55 = vpop.f32.mrf.mxu0 }
  0xe2   : > { %v657_v57 = vadd.f32 %v4725_v58, %v656_v55 }
  0xe4   : > { %v724_v59 = vmax.f32 %v657_v57, 0.0  ;;  %4015 = vmatmul.msk.bf16.gmra.mxu0 %vm574_vm1, %v565_v52 }
  0xe5   : > { %v894_v63 = vld [vmem:[#allocation2 + $0x69] sm:$0xff] }
  0xe6   : > { %812 = vst.msk [vmem:[#allocation2 + $0x79] sm:$0xff] %vm574_vm1, %v724_v59  ;;  %v845_v0 = vld [vmem:[#allocation2 + $0x68] sm:$0xff]  ;;  %v4819_v5 = vpack.c.bf16 %v894_v63, %v893_v3 }
  0xe7   : > { %v1223_v1 = vld [vmem:[#allocation2 + $0x62] sm:$0xff]  ;;  %v1224_v2 = vld [vmem:[#allocation2 + $0x6a] sm:$0xff]  ;;  %v4821_v6 = vpack.c.bf16 %v845_v0, %v844_v4 }
  0xe8   : > { %v4823_v8 = vpack.c.bf16 %v1224_v2, %v1223_v1  ;;  %4024 = vmatmul.msk.bf16.gmra.mxu1 %vm574_vm1, %v4819_v5 }
  0xe9   : > { %v658_v60 = vpop.f32.mrf.mxu0  ;;  %4040 = vmatmul.msk.bf16.gmra.mxu2 %vm574_vm1, %v4821_v6 }
  0xea   : > { %v659_v61 = vadd.f32 %v4725_v58, %v658_v60  ;;  %4057 = vmatmul.msk.bf16.gmra.mxu3 %vm574_vm1, %v4823_v8 }
  0xec   : > { %v725_v62 = vmax.f32 %v659_v61, 0.0 }
  0xed   : > { %v895_v37 = vld [vmem:[#allocation2 + $0x79] sm:$0xff] }
  0xee   : > { %813 = vst.msk [vmem:[#allocation2 + $0x81] sm:$0xff] %vm574_vm1, %v725_v62  ;;  %v846_v38 = vld [vmem:[#allocation2 + $0x78] sm:$0xff] }
  0xf1   : > { %v661_v7 = vpop.f32.mrf.mxu0 }
  0xf2   : > { %v662_v9 = vadd.f32 %v4725_v58, %v661_v7 }
  0xf4   : > { %v726_v10 = vmax.f32 %v662_v9, 0.0  ;;  %4070 = vmatmul.msk.bf16.vlgmr.msrb.gmra.mxu0 %vm574_vm1, %v4763_v17  ;;  %v712_v17 = vadd.f32 %v4725_v58, %v711_v15 }
  0xf5   : > { %v896_v25 = vld [vmem:[#allocation2 + $0x81] sm:$0xff] }
  0xf6   : > { %814 = vst.msk [vmem:[#allocation2 + $0x91] sm:$0xff] %vm574_vm1, %v726_v10  ;;  %v746_v23 = vmax.f32 %v712_v17, 0.0  ;;  %v847_v26 = vld [vmem:[#allocation2 + $0x80] sm:$0xff]  ;;  %v4846_v40 = vpack.c.bf16 %v896_v25, %v895_v37  ;;  %v1135_v25 = vpop.f32.mrf.mxu2 }
  0xf7   : > { %v1225_v29 = vld [vmem:[#allocation2 + $0x7a] sm:$0xff]  ;;  %v1226_v30 = vld [vmem:[#allocation2 + $0x82] sm:$0xff]  ;;  %v4848_v41 = vpack.c.bf16 %v847_v26, %v846_v38 }
  0xf8   : > { %834 = vst.msk [vmem:[#allocation2 + $0x181] sm:$0xff] %vm574_vm1, %v746_v23  ;;  %v4850_v45 = vpack.c.bf16 %v1226_v30, %v1225_v29  ;;  %4025 = vmatmul.msk.bf16.gmra.mxu1 %vm574_vm1, %v4846_v40  ;;  %v1325_v29 = vpop.f32.mrf.mxu3 }
  0xf9   : > { %v663_v18 = vpop.f32.mrf.mxu0  ;;  %4041 = vmatmul.msk.bf16.gmra.mxu2 %vm574_vm1, %v4848_v41 }
  0xfa   : > { %v664_v22 = vadd.f32 %v4725_v58, %v663_v18  ;;  %4058 = vmatmul.msk.bf16.gmra.mxu3 %vm574_vm1, %v4850_v45 }
  0xfc   : > { %v727_v24 = vmax.f32 %v664_v22, 0.0 }
  0xfd   : > { %v897_v60 = vld [vmem:[#allocation2 + $0x91] sm:$0xff] }
  0xfe   : > { %815 = vst.msk [vmem:[#allocation2 + $0x99] sm:$0xff] %vm574_vm1, %v727_v24  ;;  %v848_v61 = vld [vmem:[#allocation2 + $0x90] sm:$0xff]  ;;  %v995_v24 = vpop.f32.mrf.mxu1 }
  0xff   : > { %v1136_v26 = vadd.f32 %v1135_v25, %v995_v24 }
 0x101   : > { %v666_v42 = vpop.f32.mrf.mxu0  ;;  %v4902_v30 = vadd.f32 %v1325_v29, %v1136_v26 }
 0x102   : > { %v667_v46 = vadd.f32 %v4725_v58, %v666_v42 }
 0x104   : > { %v728_v48 = vmax.f32 %v667_v46, 0.0  ;;  %4071 = vmatmul.msk.bf16.gmra.mxu0 %vm574_vm1, %v4781_v34 }
 0x105   : > { %v898_v52 = vld [vmem:[#allocation2 + $0x99] sm:$0xff] }
 0x106   : > { %816 = vst.msk [vmem:[#allocation2 + $0xa9] sm:$0xff] %vm574_vm1, %v728_v48  ;;  %v849_v55 = vld [vmem:[#allocation2 + $0x98] sm:$0xff]  ;;  %v4867_v62 = vpack.c.bf16 %v898_v52, %v897_v60 }
 0x107   : > { %v1227_v57 = vld [vmem:[#allocation2 + $0x92] sm:$0xff]  ;;  %v1228_v59 = vld [vmem:[#allocation2 + $0x9a] sm:$0xff]  ;;  %v4869_v63 = vpack.c.bf16 %v849_v55, %v848_v61 }
 0x108   : > { %v4871_v1 = vpack.c.bf16 %v1228_v59, %v1227_v57  ;;  %4026 = vmatmul.msk.bf16.gmra.mxu1 %vm574_vm1, %v4867_v62 }
 0x109   : > { %v668_v49 = vpop.f32.mrf.mxu0  ;;  %4042 = vmatmul.msk.bf16.gmra.mxu2 %vm574_vm1, %v4869_v63 }
 0x10a   : > { %v669_v50 = vadd.f32 %v4725_v58, %v668_v49  ;;  %4059 = vmatmul.msk.bf16.gmra.mxu3 %vm574_vm1, %v4871_v1 }
 0x10c   : > { %v729_v51 = vmax.f32 %v669_v50, 0.0 }
 0x10d   : > { %v899_v14 = vld [vmem:[#allocation2 + $0xa9] sm:$0xff] }
 0x10e   : > { %817 = vst.msk [vmem:[#allocation2 + $0xb1] sm:$0xff] %vm574_vm1, %v729_v51  ;;  %v850_v15 = vld [vmem:[#allocation2 + $0xa8] sm:$0xff]  ;;  %v4921_v51 = vpop.f32.mrf.mxu1 }
 0x111   : > { %v671_v0 = vpop.f32.mrf.mxu0 }
 0x112   : > { %v672_v2 = vadd.f32 %v4725_v58, %v671_v0  ;;  %v4925_v0 = vpop.f32.mrf.mxu2 }
 0x114   : > { %v730_v3 = vmax.f32 %v672_v2, 0.0  ;;  %4072 = vmatmul.msk.bf16.gmra.mxu0 %vm574_vm1, %v4804_v54 }
 0x115   : > { %v900_v10 = vld [vmem:[#allocation2 + $0xb1] sm:$0xff] }
 0x116   : > { %818 = vst.msk [vmem:[#allocation2 + $0xc1] sm:$0xff] %vm574_vm1, %v730_v3  ;;  %v851_v11 = vld [vmem:[#allocation2 + $0xb0] sm:$0xff]  ;;  %v4885_v17 = vpack.c.bf16 %v900_v10, %v899_v14 }
 0x117   : > { %v1229_v12 = vld [vmem:[#allocation2 + $0xaa] sm:$0xff]  ;;  %v1230_v13 = vld [vmem:[#allocation2 + $0xb2] sm:$0xff]  ;;  %v4887_v18 = vpack.c.bf16 %v851_v11, %v850_v15 }
 0x118   : > { %v4889_v21 = vpack.c.bf16 %v1230_v13, %v1229_v12  ;;  %4027 = vmatmul.msk.bf16.gmra.mxu1 %vm574_vm1, %v4885_v17 }
 0x119   : > { %v673_v4 = vpop.f32.mrf.mxu0  ;;  %4043 = vmatmul.msk.bf16.gmra.mxu2 %vm574_vm1, %v4887_v18 }
 0x11a   : > { %v674_v7 = vadd.f32 %v4725_v58, %v673_v4  ;;  %4060 = vmatmul.msk.bf16.gmra.mxu3 %vm574_vm1, %v4889_v21  ;;  %v4927_v4 = vpop.f32.mrf.mxu3 }
 0x11c   : > { %v731_v9 = vmax.f32 %v674_v7, 0.0 }
 0x11d   : > { %v901_v39 = vld [vmem:[#allocation2 + $0xc1] sm:$0xff] }
 0x11e   : > { %819 = vst.msk [vmem:[#allocation2 + $0xc9] sm:$0xff] %vm574_vm1, %v731_v9  ;;  %v852_v42 = vld [vmem:[#allocation2 + $0xc0] sm:$0xff] }
 0x121   : > { %v676_v20 = vpop.f32.mrf.mxu0 }
 0x122   : > { %v677_v22 = vadd.f32 %v4725_v58, %v676_v20 }
 0x124   : > { %v732_v23 = vmax.f32 %v677_v22, 0.0  ;;  %4073 = vmatmul.msk.bf16.gmra.mxu0 %vm574_vm1, %v4821_v6 }
 0x125   : > { %v902_v32 = vld [vmem:[#allocation2 + $0xc9] sm:$0xff] }
 0x126   : > { %820 = vst.msk [vmem:[#allocation2 + $0xd9] sm:$0xff] %vm574_vm1, %v732_v23  ;;  %v853_v35 = vld [vmem:[#allocation2 + $0xc8] sm:$0xff]  ;;  %v4905_v43 = vpack.c.bf16 %v902_v32, %v901_v39 }
 0x127   : > { %v1231_v37 = vld [vmem:[#allocation2 + $0xc2] sm:$0xff]  ;;  %v1232_v38 = vld [vmem:[#allocation2 + $0xca] sm:$0xff]  ;;  %v4907_v44 = vpack.c.bf16 %v853_v35, %v852_v42 }
 0x128   : > { %v4909_v47 = vpack.c.bf16 %v1232_v38, %v1231_v37  ;;  %4028 = vmatmul.msk.bf16.gmra.mxu1 %vm574_vm1, %v4905_v43 }
 0x129   : > { %v678_v27 = vpop.f32.mrf.mxu0  ;;  %4044 = vmatmul.msk.bf16.gmra.mxu2 %vm574_vm1, %v4907_v44 }
 0x12a   : > { %v679_v28 = vadd.f32 %v4725_v58, %v678_v27  ;;  %4061 = vmatmul.msk.bf16.gmra.mxu3 %vm574_vm1, %v4909_v47 }
 0x12c   : > { %v733_v31 = vmax.f32 %v679_v28, 0.0 }
 0x12d   : > { %v903_v2 = vld [vmem:[#allocation2 + $0xd9] sm:$0xff] }
 0x12e   : > { %821 = vst.msk [vmem:[#allocation2 + $0xe1] sm:$0xff] %vm574_vm1, %v733_v31  ;;  %v854_v3 = vld [vmem:[#allocation2 + $0xd8] sm:$0xff] }
 0x131   : > { %v681_v46 = vpop.f32.mrf.mxu0 }
 0x132   : > { %v682_v48 = vadd.f32 %v4725_v58, %v681_v46 }
 0x134   : > { %v734_v49 = vmax.f32 %v682_v48, 0.0  ;;  %4074 = vmatmul.msk.bf16.gmra.mxu0 %vm574_vm1, %v4848_v41 }
 0x135   : > { %v904_v57 = vld [vmem:[#allocation2 + $0xe1] sm:$0xff]  ;;  %v1000_v11 = vpop.f32.mrf.mxu1 }
 0x136   : > { %822 = vst.msk [vmem:[#allocation2 + $0xf1] sm:$0xff] %vm574_vm1, %v734_v49  ;;  %v855_v59 = vld [vmem:[#allocation2 + $0xe0] sm:$0xff]  ;;  %v4929_v7 = vpack.c.bf16 %v904_v57, %v903_v2 }
 0x137   : > { %v1233_v60 = vld [vmem:[#allocation2 + $0xda] sm:$0xff]  ;;  %v1234_v61 = vld [vmem:[#allocation2 + $0xe2] sm:$0xff]  ;;  %v4931_v9 = vpack.c.bf16 %v855_v59, %v854_v3 }
 0x138   : > { %v4933_v12 = vpack.c.bf16 %v1234_v61, %v1233_v60  ;;  %4029 = vmatmul.msk.bf16.gmra.mxu1 %vm574_vm1, %v4929_v7 }
 0x139   : > { %v683_v50 = vpop.f32.mrf.mxu0  ;;  %4045 = vmatmul.msk.bf16.gmra.mxu2 %vm574_vm1, %v4931_v9 }
 0x13a   : > { %v684_v52 = vadd.f32 %v4725_v58, %v683_v50  ;;  %4062 = vmatmul.msk.bf16.gmra.mxu3 %vm574_vm1, %v4933_v12 }
 0x13c   : > { %v735_v55 = vmax.f32 %v684_v52, 0.0  ;;  %v1140_v15 = vpop.f32.mrf.mxu2 }
 0x13d   : > { %v1141_v20 = vadd.f32 %v1140_v15, %v1000_v11  ;;  %v1330_v22 = vpop.f32.mrf.mxu3  ;;  %v1002_v24 = vpop.f32.mrf.mxu1  ;;  %v905_v37 = vld [vmem:[#allocation2 + $0xf1] sm:$0xff] }
 0x13e   : > { %823 = vst.msk [vmem:[#allocation2 + $0xf9] sm:$0xff] %vm574_vm1, %v735_v55  ;;  %v856_v38 = vld [vmem:[#allocation2 + $0xf0] sm:$0xff] }
 0x13f   : > { %v4946_v26 = vadd.f32 %v1330_v22, %v1141_v20 }
 0x141   : > { %v686_v10 = vpop.f32.mrf.mxu0 }
 0x142   : > { %v687_v13 = vadd.f32 %v4725_v58, %v686_v10 }
 0x144   : > { %v736_v14 = vmax.f32 %v687_v13, 0.0  ;;  %4075 = vmatmul.msk.bf16.gmra.mxu0 %vm574_vm1, %v4869_v63  ;;  %v1142_v35 = vpop.f32.mrf.mxu2 }
 0x145   : > { %v906_v28 = vld [vmem:[#allocation2 + $0xf9] sm:$0xff]  ;;  %v1143_v39 = vadd.f32 %v1142_v35, %v1002_v24  ;;  %v1332_v42 = vpop.f32.mrf.mxu3  ;;  %v1005_v50 = vpop.f32.mrf.mxu1 }
 0x146   : > { %824 = vst.msk [vmem:[#allocation2 + $0x109] sm:$0xff] %vm574_vm1, %v736_v14  ;;  %v857_v29 = vld [vmem:[#allocation2 + $0xf8] sm:$0xff]  ;;  %v4949_v46 = vpack.c.bf16 %v906_v28, %v905_v37 }
 0x147   : > { %v1235_v31 = vld [vmem:[#allocation2 + $0xf2] sm:$0xff]  ;;  %v1236_v32 = vld [vmem:[#allocation2 + $0xfa] sm:$0xff]  ;;  %v4951_v48 = vpack.c.bf16 %v857_v29, %v856_v38  ;;  %v4956_v57 = vadd.f32 %v1332_v42, %v1143_v39 }
 0x148   : > { %v4953_v52 = vpack.c.bf16 %v1236_v32, %v1235_v31  ;;  %4030 = vmatmul.msk.bf16.gmra.mxu1 %vm574_vm1, %v4949_v46 }
 0x149   : > { %v688_v23 = vpop.f32.mrf.mxu0  ;;  %4046 = vmatmul.msk.bf16.gmra.mxu2 %vm574_vm1, %v4951_v48 }
 0x14a   : > { %v689_v25 = vadd.f32 %v4725_v58, %v688_v23  ;;  %4063 = vmatmul.msk.bf16.gmra.mxu3 %vm574_vm1, %v4953_v52 }
 0x14c   : > { %v737_v27 = vmax.f32 %v689_v25, 0.0  ;;  %v1145_v60 = vpop.f32.mrf.mxu2 }
 0x14d   : > { %v1146_v61 = vadd.f32 %v1145_v60, %v1005_v50  ;;  %v1335_v2 = vpop.f32.mrf.mxu3  ;;  %v1007_v10 = vpop.f32.mrf.mxu1  ;;  %v907_v25 = vld [vmem:[#allocation2 + $0x109] sm:$0xff] }
 0x14e   : > { %825 = vst.msk [vmem:[#allocation2 + $0x111] sm:$0xff] %vm574_vm1, %v737_v27  ;;  %v858_v27 = vld [vmem:[#allocation2 + $0x108] sm:$0xff] }
 0x14f   : > { %v4968_v13 = vadd.f32 %v1335_v2, %v1146_v61 }
 0x151   : > { %v691_v49 = vpop.f32.mrf.mxu0 }
 0x152   : > { %v692_v55 = vadd.f32 %v4725_v58, %v691_v49 }
 0x154   : > { %v738_v59 = vmax.f32 %v692_v55, 0.0  ;;  %4076 = vmatmul.msk.bf16.gmra.mxu0 %vm574_vm1, %v4887_v18  ;;  %v1147_v24 = vpop.f32.mrf.mxu2 }
 0x155   : > { %v908_v15 = vld [vmem:[#allocation2 + $0x111] sm:$0xff]  ;;  %v1148_v28 = vadd.f32 %v1147_v24, %v1007_v10  ;;  %v1337_v29 = vpop.f32.mrf.mxu3  ;;  %v1010_v37 = vpop.f32.mrf.mxu1 }
 0x156   : > { %826 = vst.msk [vmem:[#allocation2 + $0x121] sm:$0xff] %vm574_vm1, %v738_v59  ;;  %v859_v20 = vld [vmem:[#allocation2 + $0x110] sm:$0xff]  ;;  %v4971_v31 = vpack.c.bf16 %v908_v15, %v907_v25 }
 0x157   : > { %v1237_v22 = vld [vmem:[#allocation2 + $0x10a] sm:$0xff]  ;;  %v1238_v23 = vld [vmem:[#allocation2 + $0x112] sm:$0xff]  ;;  %v4973_v32 = vpack.c.bf16 %v859_v20, %v858_v27  ;;  %v4978_v42 = vadd.f32 %v1337_v29, %v1148_v28 }
 0x158   : > { %6204 = vst [vmem:[#allocation9_spill] sm:$0xff] %v4971_v31  ;;  %v4975_v38 = vpack.c.bf16 %v1238_v23, %v1237_v22  ;;  %4031 = vmatmul.msk.bf16.gmra.mxu1 %vm574_vm1, %v4971_v31 }
 0x159   : > { %v693_v3 = vpop.f32.mrf.mxu0  ;;  %6205 = vst [vmem:[#allocation10_spill] sm:$0xff] %v4973_v32  ;;  %4047 = vmatmul.msk.bf16.gmra.mxu2 %vm574_vm1, %v4973_v32 }
 0x15a   : > { %v694_v11 = vadd.f32 %v4725_v58, %v693_v3  ;;  %6206 = vst [vmem:[#allocation11_spill] sm:$0xff] %v4975_v38  ;;  %4064 = vmatmul.msk.bf16.gmra.mxu3 %vm574_vm1, %v4975_v38  ;;  %v1244_v38 = vld [vmem:[#allocation2 + $0x15a] sm:$0xff] }
 0x15c   : > { %v739_v14 = vmax.f32 %v694_v11, 0.0  ;;  %v1150_v50 = vpop.f32.mrf.mxu2 }
 0x15d   : > { %v1151_v55 = vadd.f32 %v1150_v50, %v1010_v37  ;;  %v1340_v59 = vpop.f32.mrf.mxu3  ;;  %v1012_v61 = vpop.f32.mrf.mxu1  ;;  %v909_v23 = vld [vmem:[#allocation2 + $0x121] sm:$0xff]  ;;  %v4086_v50 = vld [vmem:[%s6202_s3 + $0x10] sm:$0xf] }
 0x15e   : > { %827 = vst.msk [vmem:[#allocation2 + $0x129] sm:$0xff] %vm574_vm1, %v739_v14  ;;  %v860_v24 = vld [vmem:[#allocation2 + $0x120] sm:$0xff] }
 0x15f   : > { %v4990_v3 = vadd.f32 %v1340_v59, %v1151_v55 }
 0x161   : > { %v696_v35 = vpop.f32.mrf.mxu0 }
 0x162   : > { %v697_v39 = vadd.f32 %v4725_v58, %v696_v35 }
 0x164   : > { %v740_v49 = vmax.f32 %v697_v39, 0.0  ;;  %4077 = vmatmul.msk.bf16.gmra.mxu0 %vm574_vm1, %v4907_v44  ;;  %v1152_v22 = vpop.f32.mrf.mxu2 }
 0x165   : > { %v910_v11 = vld [vmem:[#allocation2 + $0x129] sm:$0xff]  ;;  %v1153_v25 = vadd.f32 %v1152_v22, %v1012_v61  ;;  %v1342_v27 = vpop.f32.mrf.mxu3 }
 0x166   : > { %828 = vst.msk [vmem:[#allocation2 + $0x139] sm:$0xff] %vm574_vm1, %v740_v49  ;;  %v861_v14 = vld [vmem:[#allocation2 + $0x128] sm:$0xff]  ;;  %v4993_v28 = vpack.c.bf16 %v910_v11, %v909_v23 }
 0x167   : > { %v1239_v15 = vld [vmem:[#allocation2 + $0x122] sm:$0xff]  ;;  %v1240_v20 = vld [vmem:[#allocation2 + $0x12a] sm:$0xff]  ;;  %v4995_v29 = vpack.c.bf16 %v861_v14, %v860_v24  ;;  %v5002_v49 = vadd.f32 %v1342_v27, %v1153_v25 }
 0x168   : > { %6207 = vst [vmem:[#allocation12_spill] sm:$0xff] %v4993_v28  ;;  %v4997_v37 = vpack.c.bf16 %v1240_v20, %v1239_v15  ;;  %4032 = vmatmul.msk.bf16.gmra.mxu1 %vm574_vm1, %v4993_v28  ;;  %v1243_v28 = vld [vmem:[#allocation2 + $0x152] sm:$0xff] }
 0x169   : > { %v698_v60 = vpop.f32.mrf.mxu0  ;;  %4048 = vmatmul.msk.bf16.gmra.mxu2 %vm574_vm1, %v4995_v29 }
 0x16a   : > { %v699_v2 = vadd.f32 %v4725_v58, %v698_v60  ;;  %v1015_v58 = vpop.f32.mrf.mxu1  ;;  %6208 = vst [vmem:[#allocation13_spill] sm:$0xff] %v4997_v37  ;;  %4065 = vmatmul.msk.bf16.gmra.mxu3 %vm574_vm1, %v4997_v37 }
 0x16c   : > { %v741_v10 = vmax.f32 %v699_v2, 0.0  ;;  %v1155_v55 = vpop.f32.mrf.mxu2 }
 0x16d   : > { %v1156_v59 = vadd.f32 %v1155_v55, %v1015_v58  ;;  %v1345_v60 = vpop.f32.mrf.mxu3  ;;  %v911_v23 = vld [vmem:[#allocation2 + $0x139] sm:$0xff] }
 0x16e   : > { %829 = vst.msk [vmem:[#allocation2 + $0x141] sm:$0xff] %vm574_vm1, %v741_v10  ;;  %v862_v24 = vld [vmem:[#allocation2 + $0x138] sm:$0xff] }
 0x16f   : > { %v5018_v10 = vadd.f32 %v1345_v60, %v1156_v59 }
 0x171   : > { %v1547_v35 = vpop.f32.mrf.mxu0 }
 0x172   : > { %v5000_v39 = vadd.f32 %v1547_v35, %v4902_v30  ;;  %v1758_v30 = vsel %vm623_vm0, %v4086_v50, 0  ;;  %v1017_v2 = vpop.f32.mrf.mxu1 }
 0x173   : > { %1767 = vmatpush.bf16.msra.mxu1 %v1758_v30 }
 0x174   : > { %4078 = vmatmul.msk.bf16.gmra.mxu0 %vm574_vm1, %v4931_v9  ;;  %v1157_v22 = vpop.f32.mrf.mxu2 }
 0x175   : > { %v912_v11 = vld [vmem:[#allocation2 + $0x141] sm:$0xff]  ;;  %v1158_v25 = vadd.f32 %v1157_v22, %v1017_v2  ;;  %v1347_v27 = vpop.f32.mrf.mxu3 }
 0x176   : > { %v863_v14 = vld [vmem:[#allocation2 + $0x140] sm:$0xff]  ;;  %v5020_v35 = vpack.c.bf16 %v912_v11, %v911_v23  ;;  %v913_v23 = vld [vmem:[#allocation2 + $0x151] sm:$0xff] }
 0x177   : > { %v1241_v15 = vld [vmem:[#allocation2 + $0x13a] sm:$0xff]  ;;  %v1242_v20 = vld [vmem:[#allocation2 + $0x142] sm:$0xff]  ;;  %v5022_v50 = vpack.c.bf16 %v863_v14, %v862_v24  ;;  %v5029_v60 = vadd.f32 %v1347_v27, %v1158_v25  ;;  %v864_v27 = vld [vmem:[#allocation2 + $0x150] sm:$0xff] }
 0x178   : > { %6209 = vst [vmem:[#allocation14_spill] sm:$0xff] %v5020_v35  ;;  %v5024_v55 = vpack.c.bf16 %v1242_v20, %v1241_v15  ;;  %4033 = vmatmul.msk.bf16.gmra.mxu1 %vm574_vm1, %v5020_v35  ;;  %v914_v25 = vld [vmem:[#allocation2 + $0x159] sm:$0xff] }
 0x179   : > { %v5016_v61 = vpop.f32.mrf.mxu0  ;;  %4049 = vmatmul.msk.bf16.gmra.mxu2 %vm574_vm1, %v5022_v50 }
 0x17a   : > { %v1020_v30 = vpop.f32.mrf.mxu1  ;;  %6210 = vst [vmem:[#allocation15_spill] sm:$0xff] %v5024_v55  ;;  %4066 = vmatmul.msk.bf16.gmra.mxu3 %vm574_vm1, %v5024_v55 }
 0x17c   : > { %v1160_v2 = vpop.f32.mrf.mxu2 }
 0x17d   : > { %v1161_v11 = vadd.f32 %v1160_v2, %v1020_v30  ;;  %v1350_v14 = vpop.f32.mrf.mxu3 }
 0x17f   : > { %v5042_v22 = vadd.f32 %v1350_v14, %v1161_v11  ;;  %v4103_v14 = vld [vmem:[%s6202_s3 + $0x14] sm:$0xf] }
 0x181   : > { %v1552_v58 = vpop.f32.mrf.mxu0 }
 0x182   : > { %v5027_v59 = vadd.f32 %v1552_v58, %v4946_v26  ;;  %v1022_v26 = vpop.f32.mrf.mxu1  ;;  %v865_v58 = vld [vmem:[#allocation2 + $0x158] sm:$0xff] }
 0x183   : > { %v5051_v11 = vpack.c.bf16 %v865_v58, %v864_v27  ;;  %v915_v27 = vld [vmem:[#allocation2 + $0x169] sm:$0xff] }
 0x184   : > { %4079 = vmatmul.msk.bf16.gmra.mxu0 %vm574_vm1, %v4951_v48  ;;  %v1162_v24 = vpop.f32.mrf.mxu2 }
 0x185   : > { %v1163_v35 = vadd.f32 %v1162_v24, %v1022_v26  ;;  %v1352_v37 = vpop.f32.mrf.mxu3  ;;  %v5059_v26 = vpack.c.bf16 %v1244_v38, %v1243_v28 }
 0x187   : > { %v5047_v2 = vadd.f32 %v1352_v37, %v1163_v35  ;;  %6214 = vst [vmem:[#allocation19_spill] sm:$0xff] %v5059_v26 }
 0x189   : > { %v1554_v15 = vpop.f32.mrf.mxu0  ;;  %4050 = vmatmul.msk.bf16.gmra.mxu2 %vm574_vm1, %v5051_v11 }
 0x18a   : > { %v5040_v20 = vadd.f32 %v1554_v15, %v4956_v57  ;;  %v1025_v31 = vpop.f32.mrf.mxu1  ;;  %v5049_v57 = vpack.c.bf16 %v914_v25, %v913_v23  ;;  %v4120_v15 = vld [vmem:[%s6202_s3 + $0x18] sm:$0xf]  ;;  %4067 = vmatmul.msk.bf16.gmra.mxu3 %vm574_vm1, %v5059_v26  ;;  %v1245_v26 = vld [vmem:[#allocation2 + $0x16a] sm:$0xff] }
 0x18b   : > { %v2203_v37 = vsel %vm623_vm0, %v4120_v15, 0  ;;  %v866_v15 = vld [vmem:[#allocation2 + $0x168] sm:$0xff] }
 0x18c   : > { %6211 = vst [vmem:[#allocation16_spill] sm:$0xff] %v5040_v20  ;;  %4034 = vmatmul.msk.bf16.gmra.mxu1 %vm574_vm1, %v5049_v57  ;;  %2212 = vmatpush.bf16.msra.mxu3 %v2203_v37  ;;  %v1165_v38 = vpop.f32.mrf.mxu2 }
 0x18d   : > { %6213 = vst [vmem:[#allocation18_spill] sm:$0xff] %v5049_v57  ;;  %v1166_v28 = vadd.f32 %v1165_v38, %v1025_v31  ;;  %v1355_v35 = vpop.f32.mrf.mxu3  ;;  %v867_v57 = vld [vmem:[#allocation2 + $0x170] sm:$0xff] }
 0x18f   : > { %v5074_v25 = vadd.f32 %v1355_v35, %v1166_v28  ;;  %v5083_v28 = vpack.c.bf16 %v867_v57, %v866_v15 }
 0x191   : > { %v1557_v55 = vpop.f32.mrf.mxu0 }
 0x192   : > { %v5045_v30 = vadd.f32 %v1557_v55, %v4968_v13  ;;  %v1980_v13 = vsel %vm623_vm0, %v4103_v14, 0  ;;  %v1027_v23 = vpop.f32.mrf.mxu1  ;;  %v916_v14 = vld [vmem:[#allocation2 + $0x171] sm:$0xff] }
 0x193   : > { %1989 = vmatpush.bf16.msra.mxu2 %v1980_v13  ;;  %v1246_v13 = vld [vmem:[#allocation2 + $0x172] sm:$0xff] }
 0x194   : > { %6212 = vst [vmem:[#allocation17_spill] sm:$0xff] %v5045_v30  ;;  %4080 = vmatmul.msk.bf16.gmra.mxu0 %vm574_vm1, %v4973_v32  ;;  %v1167_v58 = vpop.f32.mrf.mxu2  ;;  %v5085_v35 = vpack.c.bf16 %v1246_v13, %v1245_v26 }
 0x195   : > { %v1168_v30 = vadd.f32 %v1167_v58, %v1027_v23  ;;  %v1357_v20 = vpop.f32.mrf.mxu3 }
 0x197   : > { %v5079_v38 = vadd.f32 %v1357_v20, %v1168_v30 }
 0x199   : > { %v1559_v55 = vpop.f32.mrf.mxu0  ;;  %4051 = vmatmul.msk.bf16.gmra.mxu2 %vm574_vm1, %v5083_v28 }
 0x19a   : > { %v5072_v24 = vadd.f32 %v1559_v55, %v4978_v42  ;;  %v1030_v32 = vpop.f32.mrf.mxu1  ;;  %v5081_v42 = vpack.c.bf16 %v916_v14, %v915_v27  ;;  %4068 = vmatmul.msk.bf16.gmra.mxu3 %vm574_vm1, %v5085_v35 }
 0x19c   : > { %6215 = vst [vmem:[#allocation20_spill] sm:$0xff] %v5081_v42  ;;  %4035 = vmatmul.msk.bf16.gmra.mxu1 %vm574_vm1, %v5081_v42 }
 0x19d   : > { %v1360_v30 = vpop.f32.mrf.mxu3 }
 0x1a1   : > { %v1562_v37 = vpop.f32.mrf.mxu0 }
 0x1a2   : > { %v5077_v31 = vadd.f32 %v1562_v37, %v4990_v3  ;;  %v1170_v3 = vpop.f32.mrf.mxu2  ;;  %v1032_v57 = vpop.f32.mrf.mxu1 }
 0x1a3   : > { %v1171_v20 = vadd.f32 %v1170_v3, %v1030_v32 }
 0x1a4   : > { %4081 = vmatmul.msk.bf16.gmra.mxu0 %vm574_vm1, %v4995_v29 }
 0x1a5   : > { %v5098_v23 = vadd.f32 %v1360_v30, %v1171_v20  ;;  %v1362_v14 = vpop.f32.mrf.mxu3 }
 0x1a9   : > { %v1564_v55 = vpop.f32.mrf.mxu0  ;;  %4104 = vmatmul.msk.bf16.vlgmr.msra.gmra.mxu2 %vm574_vm1, %v4765_v19 }
 0x1aa   : > { %v5096_v26 = vadd.f32 %v1564_v55, %v5002_v49  ;;  %v1172_v27 = vpop.f32.mrf.mxu2  ;;  %v1035_v13 = vpop.f32.mrf.mxu1  ;;  %4121 = vmatmul.msk.bf16.vlgmr.msra.gmra.mxu3 %vm574_vm1, %v4781_v34 }
 0x1ab   : > { %v1173_v58 = vadd.f32 %v1172_v27, %v1032_v57 }
 0x1ac   : > { %4087 = vmatmul.msk.bf16.vlgmr.msra.gmra.mxu1 %vm574_vm1, %v4761_v16 }
 0x1ad   : > { %v5103_v42 = vadd.f32 %v1362_v14, %v1173_v58  ;;  %v1365_v3 = vpop.f32.mrf.mxu3 }
 0x1b1   : > { %v1567_v15 = vpop.f32.mrf.mxu0 }
 0x1b2   : > { %v5101_v37 = vadd.f32 %v1567_v15, %v5018_v10  ;;  %v1175_v32 = vpop.f32.mrf.mxu2  ;;  %v1037_v10 = vpop.f32.mrf.mxu1 }
 0x1b3   : > { %v1176_v49 = vadd.f32 %v1175_v32, %v1035_v13 }
 0x1b4   : > { %4082 = vmatmul.msk.bf16.gmra.mxu0 %vm574_vm1, %v5022_v50 }
 0x1b5   : > { %v5116_v55 = vadd.f32 %v1365_v3, %v1176_v49  ;;  %v1367_v58 = vpop.f32.mrf.mxu3 }
 0x1b9   : > { %v1569_v20 = vpop.f32.mrf.mxu0  ;;  %4105 = vmatmul.msk.bf16.gmra.mxu2 %vm574_vm1, %v4783_v36 }
 0x1ba   : > { %v5114_v30 = vadd.f32 %v1569_v20, %v5029_v60  ;;  %v1177_v57 = vpop.f32.mrf.mxu2  ;;  %v1040_v14 = vpop.f32.mrf.mxu1  ;;  %4122 = vmatmul.msk.bf16.gmra.mxu3 %vm574_vm1, %v4804_v54 }
 0x1bb   : > { %v1178_v27 = vadd.f32 %v1177_v57, %v1037_v10 }
 0x1bc   : > { %4088 = vmatmul.msk.bf16.gmra.mxu1 %vm574_vm1, %v4779_v33 }
 0x1bd   : > { %v5121_v15 = vadd.f32 %v1367_v58, %v1178_v27  ;;  %v1370_v13 = vpop.f32.mrf.mxu3 }
 0x1c1   : > { %v1572_v16 = vpop.f32.mrf.mxu0 }
 0x1c2   : > { %v5119_v19 = vadd.f32 %v1572_v16, %v5042_v22  ;;  %v1180_v34 = vpop.f32.mrf.mxu2  ;;  %v1042_v22 = vpop.f32.mrf.mxu1 }
 0x1c3   : > { %v1181_v60 = vadd.f32 %v1180_v34, %v1040_v14 }
 0x1c4   : > { %4083 = vmatmul.msk.bf16.gmra.mxu0 %vm574_vm1, %v5051_v11 }
 0x1c5   : > { %v5134_v3 = vadd.f32 %v1370_v13, %v1181_v60  ;;  %v1372_v57 = vpop.f32.mrf.mxu3 }
 0x1c9   : > { %v1574_v32 = vpop.f32.mrf.mxu0  ;;  %4106 = vmatmul.msk.bf16.gmra.mxu2 %vm574_vm1, %v4806_v56  ;;  %v1467_v56 = vld [vmem:[#allocation2 + $0x180] sm:$0xff] }
 0x1ca   : > { %v5132_v49 = vadd.f32 %v1574_v32, %v5047_v2  ;;  %v1182_v20 = vpop.f32.mrf.mxu2  ;;  %v1045_v27 = vpop.f32.mrf.mxu1  ;;  %4123 = vmatmul.msk.bf16.gmra.mxu3 %vm574_vm1, %v4821_v6  ;;  %v1468_v32 = vld [vmem:[#allocation2 + $0x188] sm:$0xff] }
 0x1cb   : > { %v1183_v10 = vadd.f32 %v1182_v20, %v1042_v22  ;;  %v5158_v22 = vpack.c.bf16 %v1468_v32, %v1467_v56 }
 0x1cc   : > { %4089 = vmatmul.msk.bf16.gmra.mxu1 %vm574_vm1, %v4802_v53  ;;  %v4137_v53 = vld [vmem:[%s6202_s3 + $0x1c] sm:$0xf] }
 0x1cd   : > { %v5139_v58 = vadd.f32 %v1372_v57, %v1183_v10  ;;  %v1375_v16 = vpop.f32.mrf.mxu3  ;;  %v2425_v13 = vsel %vm623_vm0, %v4137_v53, 0 }
 0x1ce   : > { %2434 = vmatpush.bf16.msra.mxu0 %v2425_v13  ;;  %v2327_v13 = vld [vmem:[#allocation2 + $0x39] sm:$0xff] }
 0x1d1   : > { %v1577_v33 = vpop.f32.mrf.mxu0 }
 0x1d2   : > { %v5137_v36 = vadd.f32 %v1577_v33, %v5074_v25  ;;  %v1185_v54 = vpop.f32.mrf.mxu2  ;;  %v1047_v25 = vpop.f32.mrf.mxu1 }
 0x1d3   : > { %v1186_v2 = vadd.f32 %v1185_v54, %v1045_v27 }
 0x1d4   : > { %4084 = vmatmul.msk.bf16.gmra.mxu0 %vm574_vm1, %v5083_v28 }
 0x1d5   : > { %v5152_v60 = vadd.f32 %v1375_v16, %v1186_v2  ;;  %v1377_v10 = vpop.f32.mrf.mxu3 }
 0x1d9   : > { %v1579_v14 = vpop.f32.mrf.mxu0  ;;  %4107 = vmatmul.msk.bf16.gmra.mxu2 %vm574_vm1, %v4823_v8 }
 0x1da   : > { %v5150_v34 = vadd.f32 %v1579_v14, %v5079_v38  ;;  %v1187_v6 = vpop.f32.mrf.mxu2  ;;  %v1050_v33 = vpop.f32.mrf.mxu1  ;;  %4124 = vmatmul.msk.bf16.gmra.mxu3 %vm574_vm1, %v4848_v41 }
 0x1db   : > { %v1188_v20 = vadd.f32 %v1187_v6, %v1047_v25 }
 0x1dc   : > { %4090 = vmatmul.msk.bf16.gmra.mxu1 %vm574_vm1, %v4819_v5 }
 0x1dd   : > { %v5163_v27 = vadd.f32 %v1377_v10, %v1188_v20  ;;  %v1380_v16 = vpop.f32.mrf.mxu3  ;;  %v2326_v20 = vld [vmem:[#allocation2 + $0x31] sm:$0xff] }
 0x1de   : > { %v2358_v41 = vpack.c.bf16 %v2327_v13, %v2326_v20 }
 0x1e1   : > { %v1582_v57 = vpop.f32.mrf.mxu0 }
 0x1e2   : > { %v5161_v38 = vadd.f32 %v1582_v57, %v5098_v23  ;;  %v1190_v54 = vpop.f32.mrf.mxu2  ;;  %v1052_v23 = vpop.f32.mrf.mxu1 }
 0x1e3   : > { %v1191_v2 = vadd.f32 %v1190_v54, %v1050_v33 }
 0x1e4   : > { %4085 = vmatmul.msk.bf16.gmra.mxu0 %vm574_vm1, %v5158_v22 }
 0x1e5   : > { %v5176_v53 = vadd.f32 %v1380_v16, %v1191_v2  ;;  %v1382_v5 = vpop.f32.mrf.mxu3 }
 0x1e9   : > { %v1584_v14 = vpop.f32.mrf.mxu0  ;;  %4108 = vmatmul.msk.bf16.gmra.mxu2 %vm574_vm1, %v4850_v45 }
 0x1ea   : > { %v5174_v25 = vadd.f32 %v1584_v14, %v5103_v42  ;;  %v1192_v56 = vpop.f32.mrf.mxu2  ;;  %v1055_v8 = vpop.f32.mrf.mxu1  ;;  %4125 = vmatmul.msk.bf16.gmra.mxu3 %vm574_vm1, %v4869_v63 }
 0x1eb   : > { %v1193_v32 = vadd.f32 %v1192_v56, %v1052_v23  ;;  %v2329_v23 = vld [vmem:[#allocation2 + $0x51] sm:$0xff] }
 0x1ec   : > { %4091 = vmatmul.msk.bf16.gmra.mxu1 %vm574_vm1, %v4846_v40 }
 0x1ed   : > { %v5181_v57 = vadd.f32 %v1382_v5, %v1193_v32  ;;  %v1385_v54 = vpop.f32.mrf.mxu3  ;;  %v2328_v5 = vld [vmem:[#allocation2 + $0x49] sm:$0xff] }
 0x1ee   : > { %v2359_v63 = vpack.c.bf16 %v2329_v23, %v2328_v5 }
 0x1f1   : > { %v1587_v6 = vpop.f32.mrf.mxu0 }
 0x1f2   : > { %v5179_v10 = vadd.f32 %v1587_v6, %v5116_v55  ;;  %v1195_v42 = vpop.f32.mrf.mxu2  ;;  %v1057_v55 = vpop.f32.mrf.mxu1 }
 0x1f3   : > { %v1196_v33 = vadd.f32 %v1195_v42, %v1055_v8 }
 0x1f4   : > { %4138 = vmatmul.msk.bf16.vlgmr.msra.gmra.mxu0 %vm574_vm1, %v2358_v41 }
 0x1f5   : > { %v5193_v14 = vadd.f32 %v1385_v54, %v1196_v33  ;;  %v1387_v40 = vpop.f32.mrf.mxu3 }
 0x1f9   : > { %v1589_v2 = vpop.f32.mrf.mxu0  ;;  %4109 = vmatmul.msk.bf16.gmra.mxu2 %vm574_vm1, %v4871_v1 }
 0x1fa   : > { %v5191_v16 = vadd.f32 %v1589_v2, %v5121_v15  ;;  %v1197_v13 = vpop.f32.mrf.mxu2  ;;  %v1060_v45 = vpop.f32.mrf.mxu1  ;;  %4126 = vmatmul.msk.bf16.gmra.mxu3 %vm574_vm1, %v4887_v18  ;;  %v2331_v2 = vld [vmem:[#allocation2 + $0x69] sm:$0xff] }
 0x1fb   : > { %v1198_v56 = vadd.f32 %v1197_v13, %v1057_v55 }
 0x1fc   : > { %4092 = vmatmul.msk.bf16.gmra.mxu1 %vm574_vm1, %v4867_v62 }
 0x1fd   : > { %v5198_v20 = vadd.f32 %v1387_v40, %v1198_v56  ;;  %v1390_v41 = vpop.f32.mrf.mxu3  ;;  %v2330_v56 = vld [vmem:[#allocation2 + $0x61] sm:$0xff] }
 0x1fe   : > { %v2360_v18 = vpack.c.bf16 %v2331_v2, %v2330_v56 }
 0x201   : > { %v1592_v32 = vpop.f32.mrf.mxu0 }
 0x202   : > { %v5196_v6 = vadd.f32 %v1592_v32, %v5134_v3  ;;  %v1200_v15 = vpop.f32.mrf.mxu2  ;;  %v1062_v3 = vpop.f32.mrf.mxu1 }
 0x203   : > { %v1201_v8 = vadd.f32 %v1200_v15, %v1060_v45 }
 0x204   : > { %4139 = vmatmul.msk.bf16.gmra.mxu0 %vm574_vm1, %v2359_v63 }
 0x205   : > { %v5210_v54 = vadd.f32 %v1390_v41, %v1201_v8  ;;  %v1392_v62 = vpop.f32.mrf.mxu3  ;;  %v2333_v41 = vld [vmem:[#allocation2 + $0x81] sm:$0xff] }
 0x209   : > { %v1594_v42 = vpop.f32.mrf.mxu0  ;;  %4110 = vmatmul.msk.bf16.gmra.mxu2 %vm574_vm1, %v4889_v21 }
 0x20a   : > { %v5208_v33 = vadd.f32 %v1594_v42, %v5139_v58  ;;  %v1202_v55 = vpop.f32.mrf.mxu2  ;;  %v1065_v1 = vpop.f32.mrf.mxu1  ;;  %4127 = vmatmul.msk.bf16.gmra.mxu3 %vm574_vm1, %v4907_v44 }
 0x20b   : > { %v1203_v23 = vadd.f32 %v1202_v55, %v1062_v3  ;;  %v2332_v55 = vld [vmem:[#allocation2 + $0x79] sm:$0xff] }
 0x20c   : > { %4093 = vmatmul.msk.bf16.gmra.mxu1 %vm574_vm1, %v4885_v17  ;;  %v2361_v44 = vpack.c.bf16 %v2333_v41, %v2332_v55  ;;  %v2334_v41 = vld [vmem:[#allocation2 + $0x91] sm:$0xff] }
 0x20d   : > { %v5215_v32 = vadd.f32 %v1392_v62, %v1203_v23  ;;  %v1395_v45 = vpop.f32.mrf.mxu3 }
 0x211   : > { %v1597_v13 = vpop.f32.mrf.mxu0 }
 0x212   : > { %v5213_v40 = vadd.f32 %v1597_v13, %v5152_v60  ;;  %v1205_v58 = vpop.f32.mrf.mxu2  ;;  %v1067_v60 = vpop.f32.mrf.mxu1 }
 0x213   : > { %v1206_v5 = vadd.f32 %v1205_v58, %v1065_v1 }
 0x214   : > { %4140 = vmatmul.msk.bf16.gmra.mxu0 %vm574_vm1, %v2360_v18 }
 0x215   : > { %v5227_v8 = vadd.f32 %v1395_v45, %v1206_v5  ;;  %v1397_v17 = vpop.f32.mrf.mxu3  ;;  %v2335_v5 = vld [vmem:[#allocation2 + $0x99] sm:$0xff] }
 0x219   : > { %v1599_v63 = vpop.f32.mrf.mxu0  ;;  %4111 = vmatmul.msk.bf16.gmra.mxu2 %vm574_vm1, %v4909_v47 }
 0x21a   : > { %v5225_v15 = vadd.f32 %v1599_v63, %v5163_v27  ;;  %v1207_v42 = vpop.f32.mrf.mxu2  ;;  %v1070_v21 = vpop.f32.mrf.mxu1  ;;  %4128 = vmatmul.msk.bf16.gmra.mxu3 %vm574_vm1, %v4931_v9  ;;  %v2362_v9 = vpack.c.bf16 %v2335_v5, %v2334_v41 }
 0x21b   : > { %v1208_v3 = vadd.f32 %v1207_v42, %v1067_v60 }
 0x21c   : > { %4094 = vmatmul.msk.bf16.gmra.mxu1 %vm574_vm1, %v4905_v43 }
 0x21d   : > { %v5232_v62 = vadd.f32 %v1397_v17, %v1208_v3  ;;  %v1400_v56 = vpop.f32.mrf.mxu3  ;;  %v1138_v3 = vadd.f32 %v4925_v0, %v4921_v51 }
 0x221   : > { %v1602_v2 = vpop.f32.mrf.mxu0 }
 0x222   : > { %v5230_v23 = vadd.f32 %v1602_v2, %v5176_v53  ;;  %v1210_v27 = vpop.f32.mrf.mxu2  ;;  %v1072_v53 = vpop.f32.mrf.mxu1 }
 0x223   : > { %v1211_v13 = vadd.f32 %v1210_v27, %v1070_v21 }
 0x224   : > { %4141 = vmatmul.msk.bf16.gmra.mxu0 %vm574_vm1, %v2361_v44 }
 0x225   : > { %v5244_v58 = vadd.f32 %v1400_v56, %v1211_v13  ;;  %v1402_v43 = vpop.f32.mrf.mxu3  ;;  %v2337_v13 = vld [vmem:[#allocation2 + $0xb1] sm:$0xff] }
 0x229   : > { %v1604_v1 = vpop.f32.mrf.mxu0  ;;  %4112 = vmatmul.msk.bf16.gmra.mxu2 %vm574_vm1, %v4933_v12 }
 0x22a   : > { %v5242_v18 = vadd.f32 %v1604_v1, %v5181_v57  ;;  %v1212_v45 = vpop.f32.mrf.mxu2  ;;  %v1769_v47 = vpop.f32.mrf.mxu1  ;;  %4129 = vmatmul.msk.bf16.gmra.mxu3 %vm574_vm1, %v4951_v48 }
 0x22b   : > { %v1213_v63 = vadd.f32 %v1212_v45, %v1072_v53  ;;  %v1849_v57 = vadd.f32 %v1769_v47, %v5000_v39  ;;  %v2336_v53 = vld [vmem:[#allocation2 + $0xa9] sm:$0xff] }
 0x22c   : > { %4095 = vmatmul.msk.bf16.gmra.mxu1 %vm574_vm1, %v4929_v7 }
 0x22d   : > { %v5251_v17 = vadd.f32 %v1402_v43, %v1213_v63  ;;  %v2214_v55 = vpop.f32.mrf.mxu3 }
 0x231   : > { %v1607_v60 = vpop.f32.mrf.mxu0 }
 0x232   : > { %v5247_v42 = vadd.f32 %v1607_v60, %v5193_v14  ;;  %v1406_v14 = vadd.f32 %v4927_v4, %v1138_v3  ;;  %v1991_v2 = vpop.f32.mrf.mxu2  ;;  %v1771_v39 = vpop.f32.mrf.mxu1  ;;  %v6217_v3 = vld [vmem:[#allocation16_spill] sm:$0xff] }
 0x233   : > { %v2071_v0 = vadd.f32 %v1991_v2, %v1849_v57 }
 0x234   : > { %4142 = vmatmul.msk.bf16.gmra.mxu0 %vm574_vm1, %v2362_v9  ;;  %v1628_v51 = vadd.f32 %v5016_v61, %v1406_v14  ;;  %v2363_v61 = vpack.c.bf16 %v2337_v13, %v2336_v53  ;;  %v2339_v14 = vld [vmem:[#allocation2 + $0xc9] sm:$0xff] }
 0x235   : > { %v5266_v27 = vadd.f32 %v2214_v55, %v2071_v0  ;;  %v2216_v1 = vpop.f32.mrf.mxu3  ;;  %v2338_v0 = vld [vmem:[#allocation2 + $0xc1] sm:$0xff]  ;;  %v6218_v13 = vld [vmem:[#allocation17_spill] sm:$0xff] }
 0x236   : > { %v1850_v7 = vadd.f32 %v1771_v39, %v1628_v51  ;;  %v2364_v39 = vpack.c.bf16 %v2339_v14, %v2338_v0 }
 0x239   : > { %v1609_v21 = vpop.f32.mrf.mxu0  ;;  %4113 = vmatmul.msk.bf16.gmra.mxu2 %vm574_vm1, %v4953_v52 }
 0x23a   : > { %v5264_v44 = vadd.f32 %v1609_v21, %v5198_v20  ;;  %v1993_v12 = vpop.f32.mrf.mxu2  ;;  %v1774_v4 = vpop.f32.mrf.mxu1  ;;  %v6216_v20 = vld [vmem:[#allocation10_spill] sm:$0xff] }
 0x23b   : > { %v2072_v56 = vadd.f32 %v1993_v12, %v1850_v7  ;;  %v1851_v63 = vadd.f32 %v1774_v4, %v5027_v59  ;;  %4130 = vmatmul.msk.bf16.gmra.mxu3 %vm574_vm1, %v6216_v20  ;;  %v6219_v12 = vld [vmem:[#allocation9_spill] sm:$0xff] }
 0x23c   : > { %4096 = vmatmul.msk.bf16.gmra.mxu1 %vm574_vm1, %v4949_v46 }
 0x23d   : > { %v5271_v45 = vadd.f32 %v2216_v1, %v2072_v56  ;;  %v6220_v56 = vld [vmem:[#allocation11_spill] sm:$0xff] }
 0x241   : > { %v1612_v48 = vpop.f32.mrf.mxu0 }
 0x242   : > { %v5269_v5 = vadd.f32 %v1612_v48, %v5210_v54  ;;  %v1996_v43 = vpop.f32.mrf.mxu2  ;;  %v2219_v54 = vpop.f32.mrf.mxu3 }
 0x243   : > { %v2073_v60 = vadd.f32 %v1996_v43, %v1851_v63  ;;  %v1776_v47 = vpop.f32.mrf.mxu1  ;;  %v2341_v43 = vld [vmem:[#allocation2 + $0xe1] sm:$0xff] }
 0x244   : > { %4143 = vmatmul.msk.bf16.gmra.mxu0 %vm574_vm1, %v2363_v61  ;;  %v1852_v57 = vadd.f32 %v1776_v47, %v6217_v3  ;;  %v2340_v3 = vld [vmem:[#allocation2 + $0xd9] sm:$0xff] }
 0x245   : > { %v5284_v59 = vadd.f32 %v2219_v54, %v2073_v60  ;;  %v2365_v14 = vpack.c.bf16 %v2341_v43, %v2340_v3  ;;  %v6223_v43 = vld [vmem:[#allocation14_spill] sm:$0xff] }
 0x249   : > { %v1614_v41 = vpop.f32.mrf.mxu0  ;;  %4114 = vmatmul.msk.bf16.gmra.mxu2 %vm574_vm1, %v6220_v56 }
 0x24a   : > { %v5282_v9 = vadd.f32 %v1614_v41, %v5215_v32  ;;  %v1998_v46 = vpop.f32.mrf.mxu2  ;;  %v2221_v51 = vpop.f32.mrf.mxu3 }
 0x24b   : > { %v2074_v2 = vadd.f32 %v1998_v46, %v1852_v57  ;;  %v1779_v55 = vpop.f32.mrf.mxu1  ;;  %4131 = vmatmul.msk.bf16.gmra.mxu3 %vm574_vm1, %v4995_v29 }
 0x24c   : > { %v1853_v32 = vadd.f32 %v1779_v55, %v6218_v13  ;;  %4097 = vmatmul.msk.bf16.gmra.mxu1 %vm574_vm1, %v6219_v12 }
 0x24d   : > { %v5290_v7 = vadd.f32 %v2221_v51, %v2074_v2  ;;  %v6221_v2 = vld [vmem:[#allocation12_spill] sm:$0xff] }
 0x251   : > { %v1617_v52 = vpop.f32.mrf.mxu0 }
 0x252   : > { %v5288_v21 = vadd.f32 %v1617_v52, %v5227_v8  ;;  %v2001_v1 = vpop.f32.mrf.mxu2  ;;  %v2224_v8 = vpop.f32.mrf.mxu3 }
 0x253   : > { %v2075_v48 = vadd.f32 %v2001_v1, %v1853_v32  ;;  %v1781_v4 = vpop.f32.mrf.mxu1  ;;  %v2343_v32 = vld [vmem:[#allocation2 + $0xf9] sm:$0xff] }
 0x254   : > { %4144 = vmatmul.msk.bf16.gmra.mxu0 %vm574_vm1, %v2364_v39  ;;  %v1854_v20 = vadd.f32 %v1781_v4, %v5072_v24  ;;  %v6222_v24 = vld [vmem:[#allocation13_spill] sm:$0xff] }
 0x255   : > { %v5303_v63 = vadd.f32 %v2224_v8, %v2075_v48  ;;  %v2342_v8 = vld [vmem:[#allocation2 + $0xf1] sm:$0xff] }
 0x256   : > { %v2366_v4 = vpack.c.bf16 %v2343_v32, %v2342_v8 }
 0x259   : > { %v1619_v53 = vpop.f32.mrf.mxu0  ;;  %4115 = vmatmul.msk.bf16.gmra.mxu2 %vm574_vm1, %v6222_v24  ;;  %v2344_v24 = vld [vmem:[#allocation2 + $0x109] sm:$0xff] }
 0x25a   : > { %v5301_v61 = vadd.f32 %v1619_v53, %v5232_v62  ;;  %v2003_v60 = vpop.f32.mrf.mxu2  ;;  %v2226_v41 = vpop.f32.mrf.mxu3 }
 0x25b   : > { %v2076_v54 = vadd.f32 %v2003_v60, %v1854_v20  ;;  %v1784_v57 = vpop.f32.mrf.mxu1  ;;  %4132 = vmatmul.msk.bf16.gmra.mxu3 %vm574_vm1, %v5022_v50 }
 0x25c   : > { %v1855_v62 = vadd.f32 %v1784_v57, %v5077_v31  ;;  %4098 = vmatmul.msk.bf16.gmra.mxu1 %vm574_vm1, %v6221_v2 }
 0x25d   : > { %v5309_v46 = vadd.f32 %v2226_v41, %v2076_v54 }
 0x261   : > { %v1622_v47 = vpop.f32.mrf.mxu0 }
 0x262   : > { %v5307_v29 = vadd.f32 %v1622_v47, %v5244_v58  ;;  %v2006_v51 = vpop.f32.mrf.mxu2  ;;  %v2229_v58 = vpop.f32.mrf.mxu3 }
 0x263   : > { %v2077_v52 = vadd.f32 %v2006_v51, %v1855_v62  ;;  %v1786_v55 = vpop.f32.mrf.mxu1 }
 0x264   : > { %4145 = vmatmul.msk.bf16.gmra.mxu0 %vm574_vm1, %v2365_v14  ;;  %v1856_v13 = vadd.f32 %v1786_v55, %v5096_v26  ;;  %v6224_v26 = vld [vmem:[#allocation15_spill] sm:$0xff] }
 0x265   : > { %v5322_v31 = vadd.f32 %v2229_v58, %v2077_v52 }
 0x269   : > { %v1624_v0 = vpop.f32.mrf.mxu0  ;;  %4116 = vmatmul.msk.bf16.gmra.mxu2 %vm574_vm1, %v6224_v26 }
 0x26a   : > { %v5320_v39 = vadd.f32 %v1624_v0, %v5251_v17  ;;  %v2008_v12 = vpop.f32.mrf.mxu2  ;;  %v2231_v1 = vpop.f32.mrf.mxu3 }
 0x26b   : > { %v2078_v56 = vadd.f32 %v2008_v12, %v1856_v13  ;;  %v1789_v53 = vpop.f32.mrf.mxu1  ;;  %4133 = vmatmul.msk.bf16.gmra.mxu3 %vm574_vm1, %v5051_v11  ;;  %v2345_v11 = vld [vmem:[#allocation2 + $0x111] sm:$0xff] }
 0x26c   : > { %v5331_v17 = vadd.f32 %v1789_v53, %v5101_v37  ;;  %4099 = vmatmul.msk.bf16.gmra.mxu1 %vm574_vm1, %v6223_v43  ;;  %v2367_v58 = vpack.c.bf16 %v2345_v11, %v2344_v24  ;;  %v2346_v53 = vld [vmem:[#allocation2 + $0x121] sm:$0xff] }
 0x26d   : > { %v5328_v20 = vadd.f32 %v2231_v1, %v2078_v56  ;;  %v2347_v56 = vld [vmem:[#allocation2 + $0x129] sm:$0xff]  ;;  %v1689_v11 = vld [vmem:[#allocation2 + $0x181] sm:$0xff] }
 0x26e   : > { %v2368_v43 = vpack.c.bf16 %v2347_v56, %v2346_v53  ;;  %v2135_v24 = vld [vmem:[#allocation2 + $0x1a0] sm:$0xff] }
 0x271   : > { %v2436_v48 = vpop.f32.mrf.mxu0 }
 0x272   : > { %v5326_v50 = vadd.f32 %v2436_v48, %v5266_v27  ;;  %v4154_v27 = vld [vmem:[%s6202_s3 + $0x20] sm:$0xf]  ;;  %v5344_v54 = vpop.f32.mrf.mxu2  ;;  %v5346_v37 = vpop.f32.mrf.mxu3 }
 0x273   : > { %v2647_v60 = vsel %vm623_vm0, %v4154_v27, 0  ;;  %v1791_v47 = vpop.f32.mrf.mxu1 }
 0x274   : > { %4146 = vmatmul.msk.bf16.gmra.mxu0 %vm574_vm1, %v2366_v4  ;;  %2656 = vmatpush.bf16.msrb.mxu1 %v2647_v60  ;;  %v5352_v57 = vadd.f32 %v1791_v47, %v5114_v30  ;;  %v6229_v30 = vld [vmem:[#allocation19_spill] sm:$0xff] }
 0x275   : > { %v2349_v47 = vld [vmem:[#allocation2 + $0x141] sm:$0xff] }
 0x276   : > { %6225 = vst [vmem:[#allocation10_spill] sm:$0xff] %v5352_v57 }
 0x279   : > { %v2438_v41 = vpop.f32.mrf.mxu0  ;;  %4117 = vmatmul.msk.bf16.gmra.mxu2 %vm574_vm1, %v6229_v30 }
 0x27a   : > { %v5349_v3 = vadd.f32 %v2438_v41, %v5271_v45  ;;  %v5354_v14 = vpop.f32.mrf.mxu2  ;;  %v5356_v62 = vpop.f32.mrf.mxu3  ;;  %v6228_v45 = vld [vmem:[#allocation18_spill] sm:$0xff] }
 0x27b   : > { %6226 = vst [vmem:[#allocation16_spill] sm:$0xff] %v5354_v14  ;;  %v1794_v51 = vpop.f32.mrf.mxu1  ;;  %4134 = vmatmul.msk.bf16.gmra.mxu3 %vm574_vm1, %v5083_v28  ;;  %v2557_v14 = vld [vmem:[#allocation2 + $0x9a] sm:$0xff] }
 0x27c   : > { %6227 = vst [vmem:[#allocation17_spill] sm:$0xff] %v5356_v62  ;;  %v5362_v0 = vadd.f32 %v1794_v51, %v5119_v19  ;;  %4100 = vmatmul.msk.bf16.gmra.mxu1 %vm574_vm1, %v6228_v45  ;;  %v1690_v51 = vld [vmem:[#allocation2 + $0x189] sm:$0xff]  ;;  %v2353_v62 = vld [vmem:[#allocation2 + $0x171] sm:$0xff] }
 0x27d   : > { %v1706_v53 = vpack.c.bf16 %v1690_v51, %v1689_v11  ;;  %v2350_v11 = vld [vmem:[#allocation2 + $0x151] sm:$0xff] }
 0x281   : > { %v2441_v2 = vpop.f32.mrf.mxu0 }
 0x282   : > { %v5359_v52 = vadd.f32 %v2441_v2, %v5284_v59  ;;  %v5371_v55 = vpop.f32.mrf.mxu2  ;;  %v5373_v13 = vpop.f32.mrf.mxu3  ;;  %v2134_v2 = vld [vmem:[#allocation2 + $0x198] sm:$0xff] }
 0x283   : > { %6230 = vst [vmem:[#allocation9_spill] sm:$0xff] %v5373_v13  ;;  %v1796_v32 = vpop.f32.mrf.mxu1  ;;  %v2151_v56 = vpack.c.bf16 %v2135_v24, %v2134_v2  ;;  %v2351_v2 = vld [vmem:[#allocation2 + $0x159] sm:$0xff]  ;;  %v2555_v13 = vld [vmem:[#allocation2 + $0x82] sm:$0xff] }
 0x284   : > { %4147 = vmatmul.msk.bf16.gmra.mxu0 %vm574_vm1, %v2367_v58  ;;  %v5379_v12 = vadd.f32 %v1796_v32, %v5132_v49  ;;  %v1912_v58 = vld [vmem:[#allocation2 + $0x18a] sm:$0xff] }
 0x289   : > { %v2443_v59 = vpop.f32.mrf.mxu0  ;;  %4118 = vmatmul.msk.bf16.gmra.mxu2 %vm574_vm1, %v5085_v35 }
 0x28a   : > { %v5376_v19 = vadd.f32 %v2443_v59, %v5290_v7  ;;  %v5381_v1 = vpop.f32.mrf.mxu2  ;;  %v5383_v48 = vpop.f32.mrf.mxu3  ;;  %v6232_v7 = vld [vmem:[#allocation20_spill] sm:$0xff]  ;;  %v2348_v59 = vld [vmem:[#allocation2 + $0x139] sm:$0xff] }
 0x28b   : > { %6231 = vst [vmem:[#allocation11_spill] sm:$0xff] %v5383_v48  ;;  %v1799_v28 = vpop.f32.mrf.mxu1  ;;  %4135 = vmatmul.msk.bf16.gmra.mxu3 %vm574_vm1, %v5158_v22  ;;  %v1911_v22 = vld [vmem:[#allocation2 + $0x182] sm:$0xff]  ;;  %v2556_v48 = vld [vmem:[#allocation2 + $0x92] sm:$0xff] }
 0x28c   : > { %v5389_v26 = vadd.f32 %v1799_v28, %v5137_v36  ;;  %4101 = vmatmul.msk.bf16.gmra.mxu1 %vm574_vm1, %v6232_v7  ;;  %v5418_v28 = vpack.c.bf16 %v1912_v58, %v1911_v22  ;;  %v2548_v22 = vld [vmem:[#allocation2 + $0x32] sm:$0xff]  ;;  %v2549_v58 = vld [vmem:[#allocation2 + $0x3a] sm:$0xff] }
 0x291   : > { %v2446_v8 = vpop.f32.mrf.mxu0 }
 0x292   : > { %v5386_v4 = vadd.f32 %v2446_v8, %v5303_v63  ;;  %v5398_v49 = vpop.f32.mrf.mxu2  ;;  %v5400_v27 = vpop.f32.mrf.mxu3 }
 0x293   : > { %v1801_v60 = vpop.f32.mrf.mxu1 }
 0x294   : > { %4148 = vmatmul.msk.bf16.gmra.mxu0 %vm574_vm1, %v2368_v43  ;;  %v5406_v41 = vadd.f32 %v1801_v60, %v5150_v34  ;;  %v2369_v34 = vpack.c.bf16 %v2349_v47, %v2348_v59  ;;  %v2079_v47 = vadd.f32 %v5344_v54, %v5331_v17 }
 0x296   : > { %v2302_v24 = vadd.f32 %v5346_v37, %v2079_v47  ;;  %v2352_v47 = vld [vmem:[#allocation2 + $0x169] sm:$0xff] }
 0x299   : > { %v2448_v63 = vpop.f32.mrf.mxu0  ;;  %4119 = vmatmul.msk.bf16.gmra.mxu2 %vm574_vm1, %v5418_v28 }
 0x29a   : > { %v5403_v36 = vadd.f32 %v2448_v63, %v5309_v46  ;;  %v5408_v35 = vpop.f32.mrf.mxu2  ;;  %v5410_v45 = vpop.f32.mrf.mxu3 }
 0x29b   : > { %v1804_v32 = vpop.f32.mrf.mxu1  ;;  %4136 = vmatmul.msk.bf16.gmra.mxu3 %vm574_vm1, %v2151_v56  ;;  %v2370_v56 = vpack.c.bf16 %v2351_v2, %v2350_v11  ;;  %v2550_v11 = vld [vmem:[#allocation2 + $0x4a] sm:$0xff]  ;;  %v2551_v2 = vld [vmem:[#allocation2 + $0x52] sm:$0xff] }
 0x29c   : > { %v5416_v8 = vadd.f32 %v1804_v32, %v5161_v38  ;;  %4102 = vmatmul.msk.bf16.gmra.mxu1 %vm574_vm1, %v1706_v53 }
 0x2a1   : > { %v2451_v30 = vpop.f32.mrf.mxu0 }
 0x2a2   : > { %v5413_v46 = vadd.f32 %v2451_v30, %v5322_v31  ;;  %v5425_v43 = vpop.f32.mrf.mxu2  ;;  %v5427_v31 = vpop.f32.mrf.mxu3 }
 0x2a3   : > { %v1806_v63 = vpop.f32.mrf.mxu1 }
 0x2a4   : > { %4149 = vmatmul.msk.bf16.gmra.mxu0 %vm574_vm1, %v2369_v34  ;;  %v5433_v60 = vadd.f32 %v1806_v63, %v5174_v25  ;;  %v2580_v34 = vpack.c.bf16 %v2549_v58, %v2548_v22 }
 0x2a9   : > { %v2453_v7 = vpop.f32.mrf.mxu0 }
 0x2aa   : > { %v5430_v38 = vadd.f32 %v2453_v7, %v5328_v20  ;;  %v5438_v51 = vpop.f32.mrf.mxu2  ;;  %v5440_v30 = vpop.f32.mrf.mxu3 }
 0x2ab   : > { %v1809_v32 = vpop.f32.mrf.mxu1 }
 0x2ac   : > { %v1865_v25 = vadd.f32 %v1809_v32, %v5179_v10  ;;  %4155 = vmatmul.msk.bf16.vlgmr.msrb.gmra.mxu1 %vm574_vm1, %v2580_v34 }
 0x2b1   : > { %v2456_v59 = vpop.f32.mrf.mxu0 }
 0x2b2   : > { %v5442_v20 = vadd.f32 %v2456_v59, %v2302_v24  ;;  %v2031_v17 = vpop.f32.mrf.mxu2  ;;  %v2254_v54 = vpop.f32.mrf.mxu3  ;;  %v2371_v59 = vpack.c.bf16 %v2353_v62, %v2352_v47 }
 0x2b3   : > { %v1811_v7 = vpop.f32.mrf.mxu1 }
 0x2b4   : > { %4150 = vmatmul.msk.bf16.gmra.mxu0 %vm574_vm1, %v2370_v56  ;;  %v5450_v63 = vadd.f32 %v1811_v7, %v5191_v16  ;;  %v2581_v56 = vpack.c.bf16 %v2551_v2, %v2550_v11 }
 0x2b6   : > { %6234 = vst [vmem:[#allocation13_spill] sm:$0xff] %v5450_v63 }
 0x2b9   : > { %v5447_v37 = vpop.f32.mrf.mxu0 }
 0x2ba   : > { %6233 = vst [vmem:[#allocation12_spill] sm:$0xff] %v5447_v37  ;;  %v5452_v24 = vpop.f32.mrf.mxu2  ;;  %v5454_v10 = vpop.f32.mrf.mxu3  ;;  %v2552_v37 = vld [vmem:[#allocation2 + $0x62] sm:$0xff] }
 0x2bb   : > { %6235 = vst [vmem:[#allocation14_spill] sm:$0xff] %v5452_v24  ;;  %v1814_v58 = vpop.f32.mrf.mxu1 }
 0x2bc   : > { %6236 = vst [vmem:[#allocation15_spill] sm:$0xff] %v5454_v10  ;;  %v1867_v32 = vadd.f32 %v1814_v58, %v5196_v6  ;;  %4156 = vmatmul.msk.bf16.gmra.mxu1 %vm574_vm1, %v2581_v56 }
 0x2c1   : > { %v5456_v22 = vpop.f32.mrf.mxu0 }
 0x2c2   : > { %6237 = vst [vmem:[#allocation18_spill] sm:$0xff] %v5456_v22  ;;  %v2036_v16 = vpop.f32.mrf.mxu2  ;;  %v2259_v34 = vpop.f32.mrf.mxu3  ;;  %v2553_v22 = vld [vmem:[#allocation2 + $0x6a] sm:$0xff] }
 0x2c3   : > { %v1816_v24 = vpop.f32.mrf.mxu1  ;;  %v2582_v2 = vpack.c.bf16 %v2553_v22, %v2552_v37 }
 0x2c4   : > { %4151 = vmatmul.msk.bf16.gmra.mxu0 %vm574_vm1, %v2371_v59  ;;  %v5464_v63 = vadd.f32 %v1816_v24, %v5208_v33 }
 0x2c6   : > { %6239 = vst [vmem:[#allocation20_spill] sm:$0xff] %v5464_v63 }
 0x2c9   : > { %v5461_v7 = vpop.f32.mrf.mxu0 }
 0x2ca   : > { %6238 = vst [vmem:[#allocation19_spill] sm:$0xff] %v5461_v7  ;;  %v5466_v10 = vpop.f32.mrf.mxu2  ;;  %v5468_v62 = vpop.f32.mrf.mxu3  ;;  %v2554_v7 = vld [vmem:[#allocation2 + $0x7a] sm:$0xff] }
 0x2cb   : > { %6240 = vst [vmem:[#allocation21_spill] sm:$0xff] %v5466_v10  ;;  %v1819_v47 = vpop.f32.mrf.mxu1  ;;  %v2356_v10 = vld [vmem:[#allocation2 + $0x199] sm:$0xff] }
 0x2cc   : > { %6241 = vst [vmem:[#allocation22_spill] sm:$0xff] %v5468_v62  ;;  %v1869_v11 = vadd.f32 %v1819_v47, %v5213_v40  ;;  %4157 = vmatmul.msk.bf16.gmra.mxu1 %vm574_vm1, %v2582_v2  ;;  %v2357_v62 = vld [vmem:[#allocation2 + $0x1a1] sm:$0xff]  ;;  %v2583_v2 = vpack.c.bf16 %v2555_v13, %v2554_v7 }
 0x2cd   : > { %v2373_v40 = vpack.c.bf16 %v2357_v62, %v2356_v10  ;;  %v2087_v10 = vadd.f32 %v2031_v17, %v1865_v25 }
 0x2cf   : > { %v2310_v62 = vadd.f32 %v2254_v54, %v2087_v10 }
 0x2d1   : > { %v5470_v6 = vpop.f32.mrf.mxu0 }
 0x2d2   : > { %6242 = vst [vmem:[#allocation23_spill] sm:$0xff] %v5470_v6  ;;  %v2041_v58 = vpop.f32.mrf.mxu2  ;;  %v2264_v59 = vpop.f32.mrf.mxu3 }
 0x2d3   : > { %v1821_v24 = vpop.f32.mrf.mxu1 }
 0x2d4   : > { %4152 = vmatmul.msk.bf16.gmra.mxu0 %vm574_vm1, %v1706_v53  ;;  %v5478_v56 = vadd.f32 %v1821_v24, %v5225_v15 }
 0x2d6   : > { %6243 = vst [vmem:[#allocation24_spill] sm:$0xff] %v5478_v56 }
 0x2d9   : > { %v5475_v33 = vpop.f32.mrf.mxu0 }
 0x2da   : > { %v5480_v63 = vpop.f32.mrf.mxu2  ;;  %v5482_v37 = vpop.f32.mrf.mxu3 }
 0x2db   : > { %6244 = vst [vmem:[#allocation25_spill] sm:$0xff] %v5480_v63  ;;  %v1824_v22 = vpop.f32.mrf.mxu1 }
 0x2dc   : > { %6245 = vst [vmem:[#allocation26_spill] sm:$0xff] %v5482_v37  ;;  %v1871_v47 = vadd.f32 %v1824_v22, %v5230_v23  ;;  %4158 = vmatmul.msk.bf16.gmra.mxu1 %vm574_vm1, %v2583_v2  ;;  %v2584_v2 = vpack.c.bf16 %v2557_v14, %v2556_v48 }
 0x2e1   : > { %v5484_v53 = vpop.f32.mrf.mxu0 }
 0x2e2   : > { %v2046_v15 = vpop.f32.mrf.mxu2  ;;  %v2269_v24 = vpop.f32.mrf.mxu3 }
 0x2e3   : > { %v1826_v63 = vpop.f32.mrf.mxu1 }
 0x2e4   : > { %4153 = vmatmul.msk.bf16.gmra.mxu0 %vm574_vm1, %v2373_v40  ;;  %v5492_v6 = vadd.f32 %v1826_v63, %v5242_v18 }
 0x2e6   : > { %6246 = vst [vmem:[#allocation27_spill] sm:$0xff] %v5492_v6  ;;  %v2558_v6 = vld [vmem:[#allocation2 + $0xaa] sm:$0xff] }
 0x2e9   : > { %v5489_v56 = vpop.f32.mrf.mxu0 }
 0x2ea   : > { %v5494_v37 = vpop.f32.mrf.mxu2  ;;  %v5496_v23 = vpop.f32.mrf.mxu3 }
 0x2eb   : > { %6247 = vst [vmem:[#allocation28_spill] sm:$0xff] %v5494_v37  ;;  %v1829_v7 = vpop.f32.mrf.mxu1 }
 0x2ec   : > { %6248 = vst [vmem:[#allocation29_spill] sm:$0xff] %v5496_v23  ;;  %v1873_v22 = vadd.f32 %v1829_v7, %v5247_v42  ;;  %4159 = vmatmul.msk.bf16.gmra.mxu1 %vm574_vm1, %v2584_v2  ;;  %v2089_v23 = vadd.f32 %v2036_v16, %v1867_v32  ;;  %v2091_v32 = vadd.f32 %v2041_v58, %v1869_v11 }
 0x2ed   : > { %v2093_v11 = vadd.f32 %v2046_v15, %v1871_v47  ;;  %v2564_v47 = vld [vmem:[#allocation2 + $0xf2] sm:$0xff]  ;;  %v2565_v15 = vld [vmem:[#allocation2 + $0xfa] sm:$0xff] }
 0x2ee   : > { %v2312_v37 = vadd.f32 %v2259_v34, %v2089_v23  ;;  %v2314_v16 = vadd.f32 %v2264_v59, %v2091_v32  ;;  %v2560_v34 = vld [vmem:[#allocation2 + $0xc2] sm:$0xff]  ;;  %v2561_v23 = vld [vmem:[#allocation2 + $0xca] sm:$0xff]  ;;  %v2562_v59 = vld [vmem:[#allocation2 + $0xda] sm:$0xff] }
 0x2ef   : > { %v2316_v58 = vadd.f32 %v2269_v24, %v2093_v11 }
 0x2f1   : > { %v2476_v13 = vpop.f32.mrf.mxu0 }
 0x2f2   : > { %v5498_v40 = vadd.f32 %v2476_v13, %v2310_v62  ;;  %v2051_v57 = vpop.f32.mrf.mxu2  ;;  %v2274_v25 = vpop.f32.mrf.mxu3  ;;  %v2559_v62 = vld [vmem:[#allocation2 + $0xb2] sm:$0xff] }
 0x2f3   : > { %v2095_v18 = vadd.f32 %v2051_v57, %v1873_v22  ;;  %v1831_v17 = vpop.f32.mrf.mxu1  ;;  %v2585_v57 = vpack.c.bf16 %v2559_v62, %v2558_v6  ;;  %v2586_v6 = vpack.c.bf16 %v2561_v23, %v2560_v34 }
 0x2f4   : > { %6249 = vst [vmem:[#allocation30_spill] sm:$0xff] %v5498_v40  ;;  %v5505_v10 = vadd.f32 %v1831_v17, %v5264_v44 }
 0x2f5   : > { %v2318_v54 = vadd.f32 %v2274_v25, %v2095_v18  ;;  %v2563_v25 = vld [vmem:[#allocation2 + $0xe2] sm:$0xff] }
 0x2f9   : > { %v5502_v63 = vpop.f32.mrf.mxu0 }
 0x2fb   : > { %v1834_v40 = vpop.f32.mrf.mxu1 }
 0x2fc   : > { %v5510_v14 = vadd.f32 %v1834_v40, %v5269_v5  ;;  %4160 = vmatmul.msk.bf16.gmra.mxu1 %vm574_vm1, %v2585_v57  ;;  %v2587_v57 = vpack.c.bf16 %v2563_v25, %v2562_v59  ;;  %v2568_v59 = vld [vmem:[#allocation2 + $0x122] sm:$0xff]  ;;  %v2569_v25 = vld [vmem:[#allocation2 + $0x12a] sm:$0xff] }
 0x301   : > { %v2481_v13 = vpop.f32.mrf.mxu0 }
 0x302   : > { %v5507_v42 = vadd.f32 %v2481_v13, %v2312_v37 }
 0x303   : > { %v1836_v7 = vpop.f32.mrf.mxu1 }
 0x304   : > { %v5516_v44 = vadd.f32 %v1836_v7, %v5282_v9 }
 0x309   : > { %v5513_v48 = vpop.f32.mrf.mxu0 }
 0x30b   : > { %v1839_v2 = vpop.f32.mrf.mxu1 }
 0x30c   : > { %v5521_v5 = vadd.f32 %v1839_v2, %v5288_v21  ;;  %4161 = vmatmul.msk.bf16.gmra.mxu1 %vm574_vm1, %v2586_v6  ;;  %v2566_v6 = vld [vmem:[#allocation2 + $0x10a] sm:$0xff] }
 0x311   : > { %v2486_v22 = vpop.f32.mrf.mxu0 }
 0x312   : > { %v5518_v37 = vadd.f32 %v2486_v22, %v2314_v16 }
 0x313   : > { %v1841_v18 = vpop.f32.mrf.mxu1 }
 0x314   : > { %v5527_v9 = vadd.f32 %v1841_v18, %v5301_v61  ;;  %v2567_v18 = vld [vmem:[#allocation2 + $0x112] sm:$0xff] }
 0x319   : > { %v5524_v40 = vpop.f32.mrf.mxu0 }
 0x31b   : > { %v1844_v62 = vpop.f32.mrf.mxu1 }
 0x31c   : > { %v5532_v21 = vadd.f32 %v1844_v62, %v5307_v29  ;;  %4162 = vmatmul.msk.bf16.gmra.mxu1 %vm574_vm1, %v2587_v57  ;;  %v2588_v29 = vpack.c.bf16 %v2565_v15, %v2564_v47  ;;  %v2571_v47 = vld [vmem:[#allocation2 + $0x142] sm:$0xff] }
 0x321   : > { %v2491_v17 = vpop.f32.mrf.mxu0 }
 0x322   : > { %v5529_v13 = vadd.f32 %v2491_v17, %v2316_v58  ;;  %v2589_v58 = vpack.c.bf16 %v2567_v18, %v2566_v6 }
 0x323   : > { %v1846_v32 = vpop.f32.mrf.mxu1 }
 0x324   : > { %v5538_v61 = vadd.f32 %v1846_v32, %v5320_v39  ;;  %v2570_v32 = vld [vmem:[#allocation2 + $0x13a] sm:$0xff] }
 0x329   : > { %v5535_v7 = vpop.f32.mrf.mxu0 }
 0x32b   : > { %v2658_v16 = vpop.f32.mrf.mxu1 }
 0x32c   : > { %v5543_v23 = vadd.f32 %v2658_v16, %v5326_v50  ;;  %4163 = vmatmul.msk.bf16.gmra.mxu1 %vm574_vm1, %v2588_v29  ;;  %v2572_v29 = vld [vmem:[#allocation2 + $0x152] sm:$0xff] }
 0x331   : > { %v2496_v24 = vpop.f32.mrf.mxu0 }
 0x332   : > { %v5540_v34 = vadd.f32 %v2496_v24, %v2318_v54 }
 0x333   : > { %v2660_v22 = vpop.f32.mrf.mxu1 }
 0x334   : > { %v5547_v2 = vadd.f32 %v2660_v22, %v5349_v3  ;;  %v2590_v3 = vpack.c.bf16 %v2569_v25, %v2568_v59  ;;  %v2573_v22 = vld [vmem:[#allocation2 + $0x15a] sm:$0xff] }
 0x33b   : > { %v2663_v39 = vpop.f32.mrf.mxu1 }
 0x33c   : > { %v5550_v11 = vadd.f32 %v2663_v39, %v5359_v52  ;;  %4164 = vmatmul.msk.bf16.gmra.mxu1 %vm574_vm1, %v2589_v58  ;;  %v2574_v58 = vld [vmem:[#allocation2 + $0x16a] sm:$0xff] }
 0x343   : > { %v2665_v54 = vpop.f32.mrf.mxu1 }
 0x344   : > { %v5554_v50 = vadd.f32 %v2665_v54, %v5376_v19  ;;  %v2591_v19 = vpack.c.bf16 %v2571_v47, %v2570_v32 }
 0x34b   : > { %v2668_v17 = vpop.f32.mrf.mxu1 }
 0x34c   : > { %v5557_v62 = vadd.f32 %v2668_v17, %v5386_v4  ;;  %4165 = vmatmul.msk.bf16.gmra.mxu1 %vm574_vm1, %v2590_v3  ;;  %v2578_v3 = vld [vmem:[#allocation2 + $0x19a] sm:$0xff] }
 0x353   : > { %v2670_v57 = vpop.f32.mrf.mxu1 }
 0x354   : > { %v5561_v52 = vadd.f32 %v2670_v57, %v5403_v36  ;;  %v2592_v36 = vpack.c.bf16 %v2573_v22, %v2572_v29  ;;  %v2579_v57 = vld [vmem:[#allocation2 + $0x1a2] sm:$0xff] }
 0x355   : > { %v2595_v32 = vpack.c.bf16 %v2579_v57, %v2578_v3  ;;  %v6256_v57 = vld [vmem:[#allocation17_spill] sm:$0xff] }
 0x35b   : > { %v2673_v15 = vpop.f32.mrf.mxu1 }
 0x35c   : > { %v5564_v24 = vadd.f32 %v2673_v15, %v5413_v46  ;;  %4166 = vmatmul.msk.bf16.gmra.mxu1 %vm574_vm1, %v2591_v19  ;;  %v2575_v46 = vld [vmem:[#allocation2 + $0x172] sm:$0xff]  ;;  %v2084_v15 = vadd.f32 %v5408_v35, %v5406_v41  ;;  %v2086_v19 = vadd.f32 %v5438_v51, %v5433_v60  ;;  %v2081_v41 = vadd.f32 %v5371_v55, %v5362_v0  ;;  %v6251_v51 = vld [vmem:[#allocation16_spill] sm:$0xff] }
 0x35d   : > { %v2593_v59 = vpack.c.bf16 %v2575_v46, %v2574_v58  ;;  %v6250_v60 = vld [vmem:[#allocation10_spill] sm:$0xff]  ;;  %v6255_v58 = vld [vmem:[#allocation19_spill] sm:$0xff] }
 0x363   : > { %v2675_v16 = vpop.f32.mrf.mxu1 }
 0x364   : > { %v5568_v4 = vadd.f32 %v2675_v16, %v5430_v38  ;;  %v2083_v16 = vadd.f32 %v5398_v49, %v5389_v26 }
 0x366   : > { %v2306_v35 = vadd.f32 %v5400_v27, %v2083_v16  ;;  %v6254_v27 = vld [vmem:[#allocation9_spill] sm:$0xff] }
 0x36b   : > { %v2678_v6 = vpop.f32.mrf.mxu1 }
 0x36c   : > { %v5571_v18 = vadd.f32 %v2678_v6, %v5442_v20  ;;  %4167 = vmatmul.msk.bf16.gmra.mxu1 %vm574_vm1, %v2592_v36  ;;  %v2085_v20 = vadd.f32 %v5425_v43, %v5416_v8  ;;  %v2307_v8 = vadd.f32 %v5410_v45, %v2084_v15  ;;  %v2309_v43 = vadd.f32 %v5440_v30, %v2086_v19  ;;  %v6253_v36 = vld [vmem:[#allocation23_spill] sm:$0xff] }
 0x36d   : > { %v2080_v6 = vadd.f32 %v6251_v51, %v6250_v60  ;;  %v2528_v30 = vadd.f32 %v6253_v36, %v2306_v35  ;;  %v6259_v35 = vld [vmem:[#allocation30_spill] sm:$0xff] }
 0x36e   : > { %v2308_v29 = vadd.f32 %v5427_v31, %v2085_v20  ;;  %v2529_v26 = vadd.f32 %v5475_v33, %v2307_v8  ;;  %v2531_v49 = vadd.f32 %v5489_v56, %v2309_v43  ;;  %v2304_v33 = vadd.f32 %v6254_v27, %v2081_v41 }
 0x36f   : > { %v2303_v20 = vadd.f32 %v6256_v57, %v2080_v6  ;;  %v4301_v57 = vld [vmem:[%s4541_s23 + $0x70] sm:$0xff] }
 0x370   : > { %v2530_v22 = vadd.f32 %v5484_v53, %v2308_v29  ;;  %v5604_v53 = vld [vmem:[%s6168_s4] ss:$0 sm:$0xff]  ;;  %v6258_v29 = vld [vmem:[#allocation12_spill] sm:$0xff] }
 0x371   : > { %v2782_v51 = vadd.f32 %v5604_v53, %v5571_v18  ;;  %v2778_v18 = vadd.f32 %v5604_v53, %v5557_v62  ;;  %v2775_v62 = vadd.f32 %v5604_v53, %v5547_v2  ;;  %v4300_v2 = vld [vmem:[%s4541_s23 + $0x78] sm:$0xff] }
 0x373   : > { %v2680_v39 = vpop.f32.mrf.mxu1  ;;  %v2814_v36 = vmax.f32 %v2782_v51, 0.0 }
 0x37b   : > { %v2683_v54 = vpop.f32.mrf.mxu1 }
 0x37c   : > { %4168 = vmatmul.msk.bf16.gmra.mxu1 %vm574_vm1, %v2593_v59 }
 0x383   : > { %v2685_v25 = vpop.f32.mrf.mxu1 }
 0x38b   : > { %v2688_v17 = vpop.f32.mrf.mxu1 }
 0x38c   : > { %4169 = vmatmul.msk.bf16.gmra.mxu1 %vm574_vm1, %v5418_v28  ;;  %v2082_v28 = vadd.f32 %v5381_v1, %v5379_v12  ;;  %v6252_v1 = vld [vmem:[#allocation11_spill] sm:$0xff]  ;;  %v2750_v46 = vadd.f32 %v2688_v17, %v2528_v30  ;;  %v2779_v30 = vadd.f32 %v5604_v53, %v5561_v52  ;;  %v2776_v52 = vadd.f32 %v5604_v53, %v5550_v11 }
 0x38d   : > { %v2807_v11 = vmax.f32 %v2775_v62, 0.0 }
 0x38e   : > { %v2305_v45 = vadd.f32 %v6252_v1, %v2082_v28  ;;  %v2786_v8 = vadd.f32 %v5604_v53, %v2750_v46 }
 0x390   : > { %v2527_v56 = vadd.f32 %v6255_v58, %v2305_v45  ;;  %v2780_v45 = vadd.f32 %v5604_v53, %v5564_v24  ;;  %v2811_v24 = vmax.f32 %v2779_v30, 0.0  ;;  %v2810_v58 = vmax.f32 %v2778_v18, 0.0 }
 0x392   : > { %v2749_v15 = vadd.f32 %v2685_v25, %v2527_v56 }
 0x393   : > { %v2690_v38 = vpop.f32.mrf.mxu1 }
 0x394   : > { %v2751_v0 = vadd.f32 %v2690_v38, %v2529_v26  ;;  %v2525_v38 = vadd.f32 %v6258_v29, %v2303_v20  ;;  %v2785_v41 = vadd.f32 %v5604_v53, %v2749_v15  ;;  %v4302_v20 = vld [vmem:[%s4541_s23 + $0x68] sm:$0xff]  ;;  %v4307_v29 = vld [vmem:[%s4541_s23 + $0x40] sm:$0xff] }
 0x396   : > { %v2787_v19 = vadd.f32 %v5604_v53, %v2751_v0 }
 0x39b   : > { %v2693_v47 = vpop.f32.mrf.mxu1 }
 0x39c   : > { %4170 = vmatmul.msk.bf16.gmra.mxu1 %vm574_vm1, %v2595_v32  ;;  %v2752_v31 = vadd.f32 %v2693_v47, %v2530_v22  ;;  %v6257_v32 = vld [vmem:[#allocation18_spill] sm:$0xff]  ;;  %v2747_v22 = vadd.f32 %v2680_v39, %v2525_v38 }
 0x39d   : > { %v2526_v47 = vadd.f32 %v6257_v32, %v2304_v33  ;;  %v4303_v32 = vld [vmem:[%s4541_s23 + $0x60] sm:$0xff] }
 0x39e   : > { %v2788_v59 = vadd.f32 %v5604_v53, %v2752_v31  ;;  %v2818_v31 = vmax.f32 %v2786_v8, 0.0  ;;  %v2783_v60 = vadd.f32 %v5604_v53, %v2747_v22  ;;  %v4311_v22 = vld [vmem:[%s4541_s23 + $0x20] sm:$0xff] }
 0x39f   : > { %v2748_v28 = vadd.f32 %v2683_v54, %v2526_v47  ;;  %v2817_v54 = vmax.f32 %v2785_v41, 0.0  ;;  %v4304_v47 = vld [vmem:[%s4541_s23 + $0x58] sm:$0xff] }
 0x3a0   : > { %v2820_v43 = vmax.f32 %v2788_v59, 0.0  ;;  %v2815_v1 = vmax.f32 %v2783_v60, 0.0  ;;  %v4312_v41 = vld [vmem:[%s4541_s23 + $0x18] sm:$0xff]  ;;  %v4314_v60 = vld [vmem:[%s4541_s23 + $0x8] sm:$0xff] }
 0x3a1   : > { %v2784_v25 = vadd.f32 %v5604_v53, %v2748_v28  ;;  %v4309_v28 = vld [vmem:[%s4541_s23 + $0x30] sm:$0xff] }
 0x3a3   : > { %v2695_v12 = vpop.f32.mrf.mxu1  ;;  %v2816_v6 = vmax.f32 %v2784_v25, 0.0 }
 0x3a4   : > { %v2753_v55 = vadd.f32 %v2695_v12, %v2531_v49  ;;  %v2819_v49 = vmax.f32 %v2787_v19, 0.0  ;;  %v2781_v12 = vadd.f32 %v5604_v53, %v5568_v4  ;;  %v2777_v4 = vadd.f32 %v5604_v53, %v5554_v50  ;;  %v4305_v19 = vld [vmem:[%s4541_s23 + $0x50] sm:$0xff] }
 0x3a5   : > { %v2774_v50 = vadd.f32 %v5604_v53, %v5543_v23 }
 0x3a6   : > { %v2789_v3 = vadd.f32 %v5604_v53, %v2753_v55  ;;  %v2813_v0 = vmax.f32 %v2781_v12, 0.0  ;;  %v2812_v55 = vmax.f32 %v2780_v45, 0.0  ;;  %v2809_v56 = vmax.f32 %v2777_v4, 0.0 }
 0x3a7   : > { %v2806_v59 = vmax.f32 %v2774_v50, 0.0 }
 0x3a8   : > { %v2821_v16 = vmax.f32 %v2789_v3, 0.0 }
 0x3aa   : > { %2854 = vmatpush.msrb.mxu2 %v2821_v16  ;;  %v4306_v16 = vld [vmem:[%s4541_s23 + $0x48] sm:$0xff] }
 0x3ab   : > { %v2698_v17 = vpop.f32.mrf.mxu1 }
 0x3ac   : > { %v5617_v26 = vadd.f32 %v2698_v17, %v6259_v35  ;;  %2855 = vmatpush.msrb.mxu2 %v2820_v43  ;;  %v2053_v43 = vpop.f32.mrf.mxu2  ;;  %v4310_v17 = vld [vmem:[%s4541_s23 + $0x28] sm:$0xff]  ;;  %v2276_v35 = vpop.f32.mrf.mxu3 }
 0x3ae   : > { %2856 = vmatpush.msrb.mxu2 %v2819_v49  ;;  %v5667_v49 = vpop.f32.mrf.mxu0 }
 0x3b0   : > { %2857 = vmatpush.msrb.mxu2 %v2818_v31  ;;  %v4313_v31 = vld [vmem:[%s4541_s23 + $0x10] sm:$0xff] }
 0x3b2   : > { %2858 = vmatpush.msrb.mxu2 %v2817_v54 }
 0x3b3   : > { %v5623_v39 = vpop.f32.mrf.mxu1 }
 0x3b4   : > { %2859 = vmatpush.msrb.mxu2 %v2816_v6  ;;  %v2056_v54 = vpop.f32.mrf.mxu2  ;;  %v2279_v6 = vpop.f32.mrf.mxu3 }
 0x3b6   : > { %2860 = vmatpush.msrb.mxu2 %v2815_v1  ;;  %v2501_v1 = vpop.f32.mrf.mxu0 }
 0x3b8   : > { %2861 = vmatpush.msrb.mxu2 %v2814_v36 }
 0x3ba   : > { %2862 = vmatpush.msrb.mxu2 %v2813_v0 }
 0x3bb   : > { %v2703_v27 = vpop.f32.mrf.mxu1 }
 0x3bc   : > { %v5636_v33 = vadd.f32 %v2703_v27, %v5507_v42  ;;  %2863 = vmatpush.msrb.mxu2 %v2812_v55  ;;  %v2808_v42 = vmax.f32 %v2776_v52, 0.0  ;;  %v2058_v45 = vpop.f32.mrf.mxu2  ;;  %v2281_v30 = vpop.f32.mrf.mxu3 }
 0x3be   : > { %2864 = vmatpush.msrb.mxu2 %v2811_v24  ;;  %v2503_v0 = vpop.f32.mrf.mxu0 }
 0x3c0   : > { %2865 = vmatpush.msrb.mxu2 %v2810_v58 }
 0x3c2   : > { %2866 = vmatpush.msrb.mxu2 %v2809_v56 }
 0x3c3   : > { %v5644_v46 = vpop.f32.mrf.mxu1 }
 0x3c4   : > { %2867 = vmatpush.msrb.mxu2 %v2808_v42  ;;  %v2061_v18 = vpop.f32.mrf.mxu2  ;;  %v2284_v27 = vpop.f32.mrf.mxu3 }
 0x3c6   : > { %2868 = vmatpush.msrb.mxu2 %v2807_v11  ;;  %v2506_v4 = vpop.f32.mrf.mxu0 }
 0x3c8   : > { %2869 = vmatpush.msrb.mxu2 %v2806_v59 }
 0x3ca   : > { %2936 = vmatpush.msra.mxu2 %v4300_v2 }
 0x3cb   : > { %v2708_v3 = vpop.f32.mrf.mxu1 }
 0x3cc   : > { %2937 = vmatpush.msra.mxu2 %v4301_v57  ;;  %v5649_v23 = vadd.f32 %v2708_v3, %v5518_v37  ;;  %v4308_v37 = vld [vmem:[%s4541_s23 + $0x38] sm:$0xff]  ;;  %v2063_v52 = vpop.f32.mrf.mxu2  ;;  %v2286_v58 = vpop.f32.mrf.mxu3 }
 0x3cd   : > { %v2100_v57 = vadd.f32 %v2063_v52, %v5527_v9  ;;  %v2096_v9 = vadd.f32 %v2053_v43, %v5505_v10 }
 0x3ce   : > { %2938 = vmatpush.msra.mxu2 %v4302_v20  ;;  %v2508_v62 = vpop.f32.mrf.mxu0 }
 0x3d0   : > { %2939 = vmatpush.msra.mxu2 %v4303_v32 }
 0x3d2   : > { %2940 = vmatpush.msra.mxu2 %v4304_v47  ;;  %v2099_v47 = vadd.f32 %v2061_v18, %v5521_v5 }
 0x3d3   : > { %v5654_v15 = vpop.f32.mrf.mxu1 }
 0x3d4   : > { %2941 = vmatpush.msra.mxu2 %v4305_v19  ;;  %v2066_v50 = vpop.f32.mrf.mxu2  ;;  %v2289_v42 = vpop.f32.mrf.mxu3 }
 0x3d5   : > { %v2101_v2 = vadd.f32 %v2066_v50, %v5532_v21 }
 0x3d6   : > { %2942 = vmatpush.msra.mxu2 %v4306_v16  ;;  %v2511_v59 = vpop.f32.mrf.mxu0 }
 0x3d7   : > { %v2324_v19 = vadd.f32 %v2289_v42, %v2101_v2 }
 0x3d8   : > { %2943 = vmatpush.msra.mxu2 %v4307_v29  ;;  %v2098_v29 = vadd.f32 %v2058_v45, %v5516_v44 }
 0x3da   : > { %2944 = vmatpush.msra.mxu2 %v4308_v37  ;;  %v2323_v37 = vadd.f32 %v2286_v58, %v2100_v57  ;;  %v6260_v58 = vld [vmem:[#allocation27_spill] sm:$0xff] }
 0x3db   : > { %v2713_v38 = vpop.f32.mrf.mxu1 }
 0x3dc   : > { %2945 = vmatpush.msra.mxu2 %v4309_v28  ;;  %v5662_v8 = vadd.f32 %v2713_v38, %v5529_v13  ;;  %v4315_v13 = vld [vmem:[%s4541_s23] sm:$0xff]  ;;  %v2291_v32 = vpop.f32.mrf.mxu3  ;;  %v2546_v28 = vadd.f32 %v2511_v59, %v2324_v19 }
 0x3de   : > { %2946 = vmatpush.msra.mxu2 %v4310_v17  ;;  %v2513_v16 = vpop.f32.mrf.mxu0  ;;  %v2097_v17 = vadd.f32 %v2056_v54, %v5510_v14  ;;  %v6261_v14 = vld [vmem:[#allocation28_spill] sm:$0xff] }
 0x3df   : > { %v2094_v54 = vadd.f32 %v6261_v14, %v6260_v58 }
 0x3e0   : > { %2947 = vmatpush.msra.mxu2 %v4311_v22  ;;  %v2322_v22 = vadd.f32 %v2284_v27, %v2099_v47  ;;  %v2320_v18 = vadd.f32 %v2279_v6, %v2097_v17  ;;  %v2319_v27 = vadd.f32 %v2276_v35, %v2096_v9  ;;  %v6262_v35 = vld [vmem:[#allocation24_spill] sm:$0xff]  ;;  %v6266_v47 = vld [vmem:[#allocation21_spill] sm:$0xff] }
 0x3e2   : > { %2948 = vmatpush.msra.mxu2 %v4312_v41  ;;  %v2545_v41 = vadd.f32 %v2508_v62, %v2323_v37  ;;  %v2542_v62 = vadd.f32 %v2501_v1, %v2320_v18  ;;  %v2541_v6 = vadd.f32 %v5667_v49, %v2319_v27  ;;  %v6263_v1 = vld [vmem:[#allocation25_spill] sm:$0xff] }
 0x3e3   : > { %v5669_v25 = vpop.f32.mrf.mxu1 }
 0x3e4   : > { %2949 = vmatpush.msra.mxu2 %v4313_v31 }
 0x3e6   : > { %2950 = vmatpush.msra.mxu2 %v4314_v60 }
 0x3e8   : > { %2951 = vmatpush.msra.mxu2 %v4315_v13  ;;  %v2544_v13 = vadd.f32 %v2506_v4, %v2322_v22  ;;  %v6268_v22 = vld [vmem:[#allocation13_spill] sm:$0xff] }
 0x3eb   : > { %v2718_v51 = vpop.f32.mrf.mxu1 }
 0x3ec   : > { %v5675_v12 = vadd.f32 %v2718_v51, %v5540_v34  ;;  %v2068_v34 = vpop.f32.mrf.mxu2 }
 0x3ed   : > { %v2102_v20 = vadd.f32 %v2068_v34, %v5538_v61  ;;  %v2321_v61 = vadd.f32 %v2281_v30, %v2098_v29  ;;  %v5692_v30 = vld [vmem:[%s6173_s9] sm:$0xff] }
 0x3ee   : > { %2870 = vmatmul.f32.vlgmr.msrb.gmra.mxu2 %v5692_v30 }
 0x3ef   : > { %v2325_v38 = vadd.f32 %v2291_v32, %v2102_v20  ;;  %v2543_v52 = vadd.f32 %v2503_v0, %v2321_v61  ;;  %v6265_v32 = vld [vmem:[#allocation20_spill] sm:$0xff] }
 0x3f0   : > { %v2090_v19 = vadd.f32 %v6266_v47, %v6265_v32  ;;  %v4327_v32 = vld [vmem:[%s4541_s23 + $0xa0] sm:$0xff]  ;;  %v4328_v47 = vld [vmem:[%s4541_s23 + $0x98] sm:$0xff] }
 0x3f1   : > { %v2547_v21 = vadd.f32 %v2513_v16, %v2325_v38  ;;  %v6267_v16 = vld [vmem:[#allocation26_spill] sm:$0xff] }
 0x3f3   : > { %v2720_v36 = vpop.f32.mrf.mxu1 }
 0x3f4   : > { %v2763_v34 = vadd.f32 %v2720_v36, %v2541_v6  ;;  %v2841_v6 = vld [vmem:[%s6173_s9 + $0x18] sm:$0xff] }
 0x3f6   : > { %v2799_v37 = vadd.f32 %v5604_v53, %v2763_v34  ;;  %v4323_v34 = vld [vmem:[%s4541_s23 + $0xc0] sm:$0xff] }
 0x3f8   : > { %v2831_v61 = vmax.f32 %v2799_v37, 0.0  ;;  %v2849_v37 = vld [vmem:[%s6173_s9 + $0x58] sm:$0xff] }
 0x3fb   : > { %v2723_v55 = vpop.f32.mrf.mxu1 }
 0x3fc   : > { %v2764_v0 = vadd.f32 %v2723_v55, %v2542_v62  ;;  %v5706_v55 = vld [vmem:[%s6173_s9 + $0x10] sm:$0xff] }
 0x3fd   : > { %2873 = vmatmul.f32.gmra.mxu2 %v5706_v55 }
 0x3fe   : > { %v2800_v20 = vadd.f32 %v5604_v53, %v2764_v0  ;;  %v4318_v0 = vld [vmem:[%s4541_s23 + $0xe8] sm:$0xff] }
 0x400   : > { %v2832_v17 = vmax.f32 %v2800_v20, 0.0  ;;  %v4326_v20 = vld [vmem:[%s4541_s23 + $0xa8] sm:$0xff] }
 0x403   : > { %v2725_v24 = vpop.f32.mrf.mxu1 }
 0x404   : > { %v2765_v42 = vadd.f32 %v2725_v24, %v2543_v52  ;;  %v2092_v24 = vadd.f32 %v6263_v1, %v6262_v35  ;;  %v4320_v35 = vld [vmem:[%s4541_s23 + $0xd8] sm:$0xff]  ;;  %v4321_v1 = vld [vmem:[%s4541_s23 + $0xd0] sm:$0xff] }
 0x406   : > { %v2801_v2 = vadd.f32 %v5604_v53, %v2765_v42  ;;  %v2315_v36 = vadd.f32 %v6267_v16, %v2092_v24  ;;  %v2843_v24 = vld [vmem:[%s6173_s9 + $0x28] sm:$0xff] }
 0x407   : > { %v2847_v16 = vld [vmem:[%s6173_s9 + $0x48] sm:$0xff] }
 0x408   : > { %v2833_v38 = vmax.f32 %v2801_v2, 0.0  ;;  %v4324_v2 = vld [vmem:[%s4541_s23 + $0xb8] sm:$0xff] }
 0x40b   : > { %v2728_v56 = vpop.f32.mrf.mxu1 }
 0x40c   : > { %v2766_v50 = vadd.f32 %v2728_v56, %v2544_v13 }
 0x40e   : > { %v2802_v4 = vadd.f32 %v5604_v53, %v2766_v50 }
 0x410   : > { %v2834_v49 = vmax.f32 %v2802_v4, 0.0  ;;  %v2848_v4 = vld [vmem:[%s6173_s9 + $0x50] sm:$0xff] }
 0x413   : > { %v2730_v11 = vpop.f32.mrf.mxu1 }
 0x414   : > { %v2767_v51 = vadd.f32 %v2730_v11, %v2545_v41  ;;  %v6264_v11 = vld [vmem:[#allocation29_spill] sm:$0xff]  ;;  %v6269_v41 = vld [vmem:[#allocation14_spill] sm:$0xff] }
 0x415   : > { %v2317_v59 = vadd.f32 %v6264_v11, %v2094_v54  ;;  %v4322_v11 = vld [vmem:[%s4541_s23 + $0xc8] sm:$0xff] }
 0x416   : > { %v2803_v10 = vadd.f32 %v5604_v53, %v2767_v51 }
 0x417   : > { %v2539_v57 = vadd.f32 %v5535_v7, %v2317_v59  ;;  %v2537_v7 = vadd.f32 %v5524_v40, %v2315_v36  ;;  %v2796_v40 = vadd.f32 %v5604_v53, %v5662_v8  ;;  %v2794_v8 = vadd.f32 %v5604_v53, %v5649_v23  ;;  %v2850_v59 = vld [vmem:[%s6173_s9 + $0x60] sm:$0xff]  ;;  %v4330_v36 = vld [vmem:[%s4541_s23 + $0x88] sm:$0xff] }
 0x419   : > { %v2761_v29 = vadd.f32 %v5669_v25, %v2539_v57  ;;  %v2759_v25 = vadd.f32 %v5654_v15, %v2537_v7  ;;  %v2826_v54 = vmax.f32 %v2794_v8, 0.0  ;;  %v2845_v57 = vld [vmem:[%s6173_s9 + $0x38] sm:$0xff] }
 0x41a   : > { %v2853_v7 = vld [vmem:[%s6173_s9 + $0x78] sm:$0xff] }
 0x41b   : > { %v2733_v3 = vpop.f32.mrf.mxu1  ;;  %v2795_v52 = vadd.f32 %v5604_v53, %v2759_v25 }
 0x41c   : > { %v2768_v31 = vadd.f32 %v2733_v3, %v2546_v28  ;;  %v2835_v3 = vmax.f32 %v2803_v10, 0.0  ;;  %v2798_v28 = vadd.f32 %v5604_v53, %v5675_v12  ;;  %v5728_v12 = vld [vmem:[%s6173_s9 + $0x20] sm:$0xff]  ;;  %v2839_v10 = vld [vmem:[%s6173_s9 + $0x8] sm:$0xff] }
 0x41d   : > { %2876 = vmatmul.f32.gmra.mxu2 %v5728_v12  ;;  %v2827_v14 = vmax.f32 %v2795_v52, 0.0 }
 0x41e   : > { %v2804_v44 = vadd.f32 %v5604_v53, %v2768_v31  ;;  %v6270_v31 = vld [vmem:[#allocation22_spill] sm:$0xff]  ;;  %v2830_v51 = vmax.f32 %v2798_v28, 0.0  ;;  %v3075_v28 = vld [vmem:[%s6169_s5] sm:$0xf] }
 0x41f   : > { %v2313_v9 = vadd.f32 %v6270_v31, %v2090_v19  ;;  %v4329_v19 = vld [vmem:[%s4541_s23 + $0x90] sm:$0xff] }
 0x420   : > { %v2836_v56 = vmax.f32 %v2804_v44, 0.0  ;;  %v2828_v44 = vmax.f32 %v2796_v40, 0.0 }
 0x421   : > { %v2535_v13 = vadd.f32 %v5513_v48, %v2313_v9 }
 0x423   : > { %v2735_v60 = vpop.f32.mrf.mxu1  ;;  %v2757_v15 = vadd.f32 %v5644_v46, %v2535_v13  ;;  %v2792_v46 = vadd.f32 %v5604_v53, %v5636_v33 }
 0x424   : > { %v2769_v5 = vadd.f32 %v2735_v60, %v2547_v21  ;;  %v2088_v21 = vadd.f32 %v6269_v41, %v6268_v22  ;;  %v2797_v60 = vadd.f32 %v5604_v53, %v2761_v29  ;;  %v4331_v29 = vld [vmem:[%s4541_s23 + $0x80] sm:$0xff] }
 0x425   : > { %v2793_v58 = vadd.f32 %v5604_v53, %v2757_v15  ;;  %v2824_v62 = vmax.f32 %v2792_v46, 0.0 }
 0x426   : > { %v2805_v45 = vadd.f32 %v5604_v53, %v2769_v5  ;;  %v6271_v5 = vld [vmem:[#allocation15_spill] sm:$0xff]  ;;  %v2829_v50 = vmax.f32 %v2797_v60, 0.0 }
 0x427   : > { %v2311_v18 = vadd.f32 %v6271_v5, %v2088_v21  ;;  %v2825_v27 = vmax.f32 %v2793_v58, 0.0  ;;  %v3022_v58 = vld [vmem:[%s6171_s7] sm:$0xf] }
 0x428   : > { %v2837_v43 = vmax.f32 %v2805_v45, 0.0 }
 0x429   : > { %v2533_v48 = vadd.f32 %v5502_v63, %v2311_v18  ;;  %v5744_v63 = vld [vmem:[%s6173_s9 + $0x30] sm:$0xff] }
 0x42a   : > { %2895 = vmatpush.msrb.mxu3 %v2837_v43  ;;  %2879 = vmatmul.f32.gmra.mxu2 %v5744_v63  ;;  %v2846_v43 = vld [vmem:[%s6173_s9 + $0x40] sm:$0xff] }
 0x42b   : > { %v2755_v45 = vadd.f32 %v5623_v39, %v2533_v48  ;;  %v2790_v39 = vadd.f32 %v5604_v53, %v5617_v26  ;;  %v4317_v26 = vld [vmem:[%s4541_s23 + $0xf0] sm:$0xff] }
 0x42c   : > { %2896 = vmatpush.msrb.mxu3 %v2836_v56  ;;  %v4319_v56 = vld [vmem:[%s4541_s23 + $0xe0] sm:$0xff] }
 0x42d   : > { %v2791_v23 = vadd.f32 %v5604_v53, %v2755_v45  ;;  %v2822_v42 = vmax.f32 %v2790_v39, 0.0  ;;  %v4316_v53 = vld [vmem:[%s4541_s23 + $0xf8] sm:$0xff] }
 0x42e   : > { %2897 = vmatpush.msrb.mxu3 %v2835_v3  ;;  %v4325_v3 = vld [vmem:[%s4541_s23 + $0xb0] sm:$0xff]  ;;  %s4000_s23 = sshll.u32 %s512_s20, 6 }
 0x42f   : > { %v2823_v33 = vmax.f32 %v2791_v23, 0.0  ;;  %s6098_s26 = scalar_lea.vmem [#allocation4], %s4000_s23  ;;  %s3933_s23 = sshll.u32 %s3930_s18, 4  ;;  %s3934_s23 = int_to_ptr.hbm [resolvable:$true] %s3933_s23 }
 0x430   : > { %2898 = vmatpush.msrb.mxu3 %v2834_v49  ;;  %v2852_v49 = vld [vmem:[%s6173_s9 + $0x70] sm:$0xff]  ;;  %s3931_s19 = sshll.u32 %s6098_s26, 4  ;;  %s4346_s1 = sshra.s32 %s3934_s23, 4  ;;  %s3932_s19 = int_to_ptr.vmem [resolvable:$true] %s3931_s19  ;;  %s4347_s1 = int_to_ptr.hbm [resolvable:$true] %s4346_s1 }
 0x431   : > { %s4348_s2 = scalar_lea.hbm %s4347_s1, 64  ;;  %p4353_p0 = scmp.lt.s32.totalorder %s4347_s1, %s6180_s16 }
 0x432   : > { %2899 = vmatpush.msrb.mxu3 %v2833_v38  ;;  %2882 = vmatmul.f32.gmra.mxu2 %v2846_v43  ;;  %v2851_v38 = vld [vmem:[%s6173_s9 + $0x68] sm:$0xff]  ;;  %p4349_p11 = scmp.ne.s32.totalorder %s4347_s1, %s4348_s2  ;;  %p4354_p1 = scmp.lt.s32.totalorder %s4352_s30, %s4348_s2 }
 0x434   : > { %2900 = vmatpush.msrb.mxu3 %v2832_v17  ;;  %v3093_v17 = vsel %vm623_vm0, %v3075_v28, 0  ;;  %v4296_v28 = vld [vmem:[%s6170_s6] ss:$0 sm:$0xff]  ;;  %p4350_p12 = pnand %p4349_p11, %p4522_p5  ;;  %p4355_p2 = por %p4354_p1, %p4353_p0 }
 0x436   : > { %2901 = vmatpush.msrb.mxu3 %v2831_v61  ;;  %p4351_p13 = pneg %p4350_p12 }
 0x438   : > { %2902 = vmatpush.msrb.mxu3 %v2830_v51  ;;  %p4356_p3 = pnand %p4355_p2, %p4351_p13 }
 0x43a   : > { %2903 = vmatpush.msrb.mxu3 %v2829_v50  ;;  %2885 = vmatmul.f32.gmra.mxu2 %v2848_v4 }
 0x43c   : > { %2904 = vmatpush.msrb.mxu3 %v2828_v44 }
 0x43e   : > { %2905 = vmatpush.msrb.mxu3 %v2827_v14  ;;  %v3040_v14 = vsel %vm623_vm0, %v3022_v58, 0 }
 0x43f   : > { %3049 = vmatpush.bf16.msrb.mxu2 %v3040_v14 }
 0x440   : > { %2906 = vmatpush.msrb.mxu3 %v2826_v54 }
 0x442   : > { %2907 = vmatpush.msrb.mxu3 %v2825_v27  ;;  %2888 = vmatmul.f32.gmra.mxu2 %v2850_v59 }
 0x444   : > { %2908 = vmatpush.msrb.mxu3 %v2824_v62 }
 0x446   : > { %2909 = vmatpush.msrb.mxu3 %v2823_v33 }
 0x448   : > { %2910 = vmatpush.msrb.mxu3 %v2822_v42 }
 0x449   : > { %2911 = vmatmul.f32.vlgmr.msrb.gmra.mxu3 %v2839_v10 }
 0x44a   : > { %2977 = vmatpush.msra.mxu3 %v4316_v53  ;;  %2891 = vmatmul.f32.gmra.mxu2 %v2852_v49 }
 0x44c   : > { %2978 = vmatpush.msra.mxu3 %v4317_v26 }
 0x44e   : > { %2979 = vmatpush.msra.mxu3 %v4318_v0 }
 0x450   : > { %2980 = vmatpush.msra.mxu3 %v4319_v56 }
 0x451   : > { %2914 = vmatmul.f32.gmra.mxu3 %v2841_v6 }
 0x452   : > { %2981 = vmatpush.msra.mxu3 %v4320_v35  ;;  %2952 = vmatmul.f32.vlgmr.msra.gmra.mxu2 %v5692_v30 }
 0x454   : > { %2982 = vmatpush.msra.mxu3 %v4321_v1 }
 0x456   : > { %2983 = vmatpush.msra.mxu3 %v4322_v11 }
 0x458   : > { %2984 = vmatpush.msra.mxu3 %v4323_v34 }
 0x459   : > { %2917 = vmatmul.f32.gmra.mxu3 %v2843_v24 }
 0x45a   : > { %2985 = vmatpush.msra.mxu3 %v4324_v2  ;;  %2955 = vmatmul.f32.gmra.mxu2 %v5706_v55 }
 0x45c   : > { %2986 = vmatpush.msra.mxu3 %v4325_v3 }
 0x45e   : > { %2987 = vmatpush.msra.mxu3 %v4326_v20 }
 0x460   : > { %2988 = vmatpush.msra.mxu3 %v4327_v32 }
 0x461   : > { %2920 = vmatmul.f32.gmra.mxu3 %v2845_v57 }
 0x462   : > { %2989 = vmatpush.msra.mxu3 %v4328_v47  ;;  %2958 = vmatmul.f32.gmra.mxu2 %v5728_v12 }
 0x464   : > { %2990 = vmatpush.msra.mxu3 %v4329_v19 }
 0x466   : > { %2991 = vmatpush.msra.mxu3 %v4330_v36 }
 0x468   : > { %2992 = vmatpush.msra.mxu3 %v4331_v29  ;;  %v4246_v29 = vld [vmem:[%s6174_s10 + $0x8] sm:$0xff] }
 0x469   : > { %2923 = vmatmul.f32.gmra.mxu3 %v2847_v16  ;;  %3183 = vmatpush.bf16.msra.mxu2 %v4246_v29  ;;  %v5897_v29 = vld [vmem:[%s6175_s11] ss:$0 sm:$0xff] }
 0x46a   : > { %2961 = vmatmul.f32.gmra.mxu2 %v5744_v63  ;;  %3102 = vmatpush.bf16.msrb.mxu3 %v3093_v17 }
 0x471   : > { %2926 = vmatmul.f32.gmra.mxu3 %v2849_v37  ;;  %v2871_v30 = vpop.f32.mrf.mxu2 }
 0x472   : > { %2964 = vmatmul.f32.gmra.mxu2 %v2846_v43 }
 0x479   : > { %2929 = vmatmul.f32.gmra.mxu3 %v2851_v38 }
 0x47a   : > { %2967 = vmatmul.f32.gmra.mxu2 %v2848_v4 }
 0x480   : > { %v2874_v55 = vpop.f32.mrf.mxu2 }
 0x481   : > { %2932 = vmatmul.f32.gmra.mxu3 %v2853_v7 }
 0x482   : > { %2970 = vmatmul.f32.gmra.mxu2 %v2850_v59 }
 0x489   : > { %2993 = vmatmul.f32.vlgmr.msra.gmra.mxu3 %v2839_v10 }
 0x48a   : > { %2973 = vmatmul.f32.gmra.mxu2 %v2852_v49 }
 0x491   : > { %2996 = vmatmul.f32.gmra.mxu3 %v2841_v6 }
 0x499   : > { %2999 = vmatmul.f32.gmra.mxu3 %v2843_v24 }
 0x4a0   : > { %v2877_v22 = vpop.f32.mrf.mxu2 }
 0x4a1   : > { %3002 = vmatmul.f32.gmra.mxu3 %v2845_v57 }
 0x4a9   : > { %3005 = vmatmul.f32.gmra.mxu3 %v2847_v16 }
 0x4ad   : > { %v2880_v41 = vpop.f32.mrf.mxu2 }
 0x4b1   : > { %3008 = vmatmul.f32.gmra.mxu3 %v2849_v37 }
 0x4b5   : > { %v2883_v9 = vpop.f32.mrf.mxu2 }
 0x4b9   : > { %3011 = vmatmul.f32.gmra.mxu3 %v2851_v38  ;;  %v4245_v38 = vld [vmem:[%s6174_s10] sm:$0xff] }
 0x4ba   : > { %3184 = vmatpush.bf16.msra.mxu2 %v4245_v38 }
 0x4bd   : > { %v2886_v40 = vpop.f32.mrf.mxu2 }
 0x4c1   : > { %3014 = vmatmul.f32.gmra.mxu3 %v2853_v7 }
 0x4c5   : > { %v2889_v15 = vpop.f32.mrf.mxu2 }
 0x4cc   : > { %v2912_v21 = vpop.f32.mrf.mxu3 }
 0x4cd   : > { %v2913_v25 = vadd.f32 %v2912_v21, %v2871_v30  ;;  %v2892_v50 = vpop.f32.mrf.mxu2 }
 0x4d4   : > { %v2915_v31 = vpop.f32.mrf.mxu3 }
 0x4d5   : > { %v2916_v60 = vadd.f32 %v2915_v31, %v2874_v55  ;;  %v2953_v54 = vpop.f32.mrf.mxu2  ;;  %v4295_v55 = vld [vmem:[%s6172_s8] ss:$0 sm:$0xff] }
 0x4d7   : > { %v3071_v61 = vpack.c.bf16 %v2916_v60, %v2913_v25 }
 0x4d9   : > { %4175 = vmatmul.msk.bf16.vlgmr.msrb.gmra.mxu3 %vm574_vm1, %v3071_v61 }
 0x4dc   : > { %v2918_v13 = vpop.f32.mrf.mxu3 }
 0x4dd   : > { %v2919_v12 = vadd.f32 %v2918_v13, %v2877_v22  ;;  %v2956_v39 = vpop.f32.mrf.mxu2 }
 0x4e4   : > { %v2921_v51 = vpop.f32.mrf.mxu3 }
 0x4e5   : > { %v2922_v5 = vadd.f32 %v2921_v51, %v2880_v41  ;;  %v2959_v42 = vpop.f32.mrf.mxu2 }
 0x4e7   : > { %v3072_v18 = vpack.c.bf16 %v2922_v5, %v2919_v12 }
 0x4e9   : > { %4176 = vmatmul.msk.bf16.gmra.mxu3 %vm574_vm1, %v3072_v18 }
 0x4ec   : > { %v2924_v52 = vpop.f32.mrf.mxu3 }
 0x4ed   : > { %v2925_v8 = vadd.f32 %v2924_v52, %v2883_v9  ;;  %v2962_v6 = vpop.f32.mrf.mxu2 }
 0x4f4   : > { %v2927_v48 = vpop.f32.mrf.mxu3 }
 0x4f5   : > { %v2928_v44 = vadd.f32 %v2927_v48, %v2886_v40  ;;  %v2965_v56 = vpop.f32.mrf.mxu2 }
 0x4f7   : > { %v3073_v45 = vpack.c.bf16 %v2928_v44, %v2925_v8 }
 0x4f9   : > { %4177 = vmatmul.msk.bf16.gmra.mxu3 %vm574_vm1, %v3073_v45 }
 0x4fc   : > { %v2930_v46 = vpop.f32.mrf.mxu3 }
 0x4fd   : > { %v2931_v23 = vadd.f32 %v2930_v46, %v2889_v15  ;;  %v2968_v59 = vpop.f32.mrf.mxu2 }
 0x504   : > { %v2933_v63 = vpop.f32.mrf.mxu3 }
 0x505   : > { %v2934_v27 = vadd.f32 %v2933_v63, %v2892_v50  ;;  %v2971_v20 = vpop.f32.mrf.mxu2 }
 0x507   : > { %v3074_v62 = vpack.c.bf16 %v2934_v27, %v2931_v23 }
 0x509   : > { %4178 = vmatmul.msk.bf16.gmra.mxu3 %vm574_vm1, %v3074_v62 }
 0x50c   : > { %v2994_v33 = vpop.f32.mrf.mxu3 }
 0x50d   : > { %v2995_v43 = vadd.f32 %v2994_v33, %v2953_v54  ;;  %v2974_v32 = vpop.f32.mrf.mxu2 }
 0x514   : > { %v2997_v10 = vpop.f32.mrf.mxu3 }
 0x515   : > { %v2998_v53 = vadd.f32 %v2997_v10, %v2956_v39 }
 0x517   : > { %v3018_v26 = vpack.c.bf16 %v2998_v53, %v2995_v43 }
 0x519   : > { %4171 = vmatmul.msk.bf16.vlgmr.msrb.gmra.mxu2 %vm574_vm1, %v3018_v26 }
 0x51c   : > { %v3000_v0 = vpop.f32.mrf.mxu3 }
 0x51d   : > { %v3001_v35 = vadd.f32 %v3000_v0, %v2959_v42 }
 0x524   : > { %v3003_v4 = vpop.f32.mrf.mxu3 }
 0x525   : > { %v3004_v1 = vadd.f32 %v3003_v4, %v2962_v6 }
 0x527   : > { %v3019_v24 = vpack.c.bf16 %v3004_v1, %v3001_v35 }
 0x529   : > { %4172 = vmatmul.msk.bf16.gmra.mxu2 %vm574_vm1, %v3019_v24 }
 0x52c   : > { %v3006_v11 = vpop.f32.mrf.mxu3 }
 0x52d   : > { %v3007_v2 = vadd.f32 %v3006_v11, %v2965_v56 }
 0x534   : > { %v3009_v34 = vpop.f32.mrf.mxu3 }
 0x535   : > { %v3010_v3 = vadd.f32 %v3009_v34, %v2968_v59 }
 0x537   : > { %v3020_v57 = vpack.c.bf16 %v3010_v3, %v3007_v2 }
 0x539   : > { %4173 = vmatmul.msk.bf16.gmra.mxu2 %vm574_vm1, %v3020_v57  ;;  %v4191_v57 = vld [vmem:[%s6176_s12 + $0x4] sm:$0xf] }
 0x53c   : > { %v3012_v49 = vpop.f32.mrf.mxu3 }
 0x53d   : > { %v3013_v19 = vadd.f32 %v3012_v49, %v2971_v20  ;;  %v3283_v20 = vsel %vm623_vm0, %v4191_v57, 0  ;;  %v3255_v49 = vld [vmem:[%s6176_s12] sm:$0xf] }
 0x53e   : > { %3292 = vmatpush.bf16.msra.mxu3 %v3283_v20 }
 0x544   : > { %v3015_v47 = vpop.f32.mrf.mxu3 }
 0x545   : > { %v3016_v16 = vadd.f32 %v3015_v47, %v2974_v32  ;;  %v4200_v32 = vld [vmem:[%s6176_s12 + $0x8] sm:$0xf]  ;;  %v3327_v47 = vsel %vm623_vm0, %v3255_v49, 0 }
 0x546   : > { %3336 = vmatpush.bf16.msrb.mxu0 %v3327_v47 }
 0x547   : > { %v3021_v36 = vpack.c.bf16 %v3016_v16, %v3013_v19  ;;  %v3385_v19 = vsel %vm623_vm0, %v4200_v32, 0  ;;  %v4205_v16 = vld [vmem:[%s6176_s12 + $0xc] sm:$0xf] }
 0x548   : > { %3394 = vmatpush.bf16.msra.mxu1 %v3385_v19 }
 0x549   : > { %4174 = vmatmul.msk.bf16.gmra.mxu2 %vm574_vm1, %v3021_v36  ;;  %v3451_v36 = vsel %vm623_vm0, %v4205_v16, 0 }
 0x54a   : > { %3460 = vmatpush.bf16.msrb.mxu2 %v3451_v36 }
 0x55c   : > { %v3104_v37 = vpop.f32.mrf.mxu3 }
 0x55d   : > { %v3105_v41 = vadd.f32 %v4296_v28, %v3104_v37 }
 0x564   : > { %v3106_v7 = vpop.f32.mrf.mxu3 }
 0x565   : > { %v3107_v25 = vadd.f32 %v4296_v28, %v3106_v7 }
 0x56c   : > { %v3109_v17 = vpop.f32.mrf.mxu3 }
 0x56d   : > { %v3110_v18 = vadd.f32 %v4296_v28, %v3109_v17  ;;  %v3243_v17 = vld [vmem:[#allocation3] sm:$0xff] }
 0x574   : > { %v3111_v40 = vpop.f32.mrf.mxu3 }
 0x575   : > { %v3112_v8 = vadd.f32 %v4296_v28, %v3111_v40 }
 0x57c   : > { %v3114_v52 = vpop.f32.mrf.mxu3 }
 0x57d   : > { %v3115_v23 = vadd.f32 %v4296_v28, %v3114_v52 }
 0x584   : > { %v3116_v54 = vpop.f32.mrf.mxu3 }
 0x585   : > { %v3117_v33 = vadd.f32 %v4296_v28, %v3116_v54 }
 0x58c   : > { %v3119_v10 = vpop.f32.mrf.mxu3 }
 0x58d   : > { %v3120_v56 = vadd.f32 %v4296_v28, %v3119_v10 }
 0x594   : > { %v3121_v4 = vpop.f32.mrf.mxu3 }
 0x595   : > { %v3122_v11 = vadd.f32 %v4296_v28, %v3121_v4  ;;  %v3256_v28 = vld [vmem:[#allocation3 + $0x1] sm:$0xff] }
 0x59c   : > { %v3051_v30 = vpop.f32.mrf.mxu2 }
 0x59d   : > { %v3052_v22 = vadd.f32 %v4295_v55, %v3051_v30 }
 0x59f   : > { %v5834_v31 = vadd.f32 %v3105_v41, %v3052_v22  ;;  %v3358_v22 = vld [vmem:[#allocation3 + $0x2] sm:$0xff] }
 0x5a1   : > { %v3132_v61 = vmax.f32 %v5834_v31, 0.0 }
 0x5a4   : > { %v3053_v21 = vpop.f32.mrf.mxu2 }
 0x5a5   : > { %v3054_v9 = vadd.f32 %v4295_v55, %v3053_v21 }
 0x5a7   : > { %v5836_v60 = vadd.f32 %v3107_v25, %v3054_v9 }
 0x5a9   : > { %v3133_v13 = vmax.f32 %v5836_v60, 0.0 }
 0x5ab   : > { %v3140_v51 = vpack.c.bf16 %v3133_v13, %v3132_v61 }
 0x5ac   : > { %v3056_v12 = vpop.f32.mrf.mxu2 }
 0x5ad   : > { %4187 = vmatmul.msk.bf16.vlgmr.msra.gmra.mxu2 %vm3164_vm3, %v3140_v51  ;;  %v3057_v5 = vadd.f32 %v4295_v55, %v3056_v12 }
 0x5af   : > { %v5845_v50 = vadd.f32 %v3110_v18, %v3057_v5 }
 0x5b1   : > { %v3134_v45 = vmax.f32 %v5845_v50, 0.0 }
 0x5b4   : > { %v3058_v15 = vpop.f32.mrf.mxu2 }
 0x5b5   : > { %v3059_v48 = vadd.f32 %v4295_v55, %v3058_v15 }
 0x5b7   : > { %v5847_v44 = vadd.f32 %v3112_v8, %v3059_v48 }
 0x5b9   : > { %v3135_v58 = vmax.f32 %v5847_v44, 0.0 }
 0x5bb   : > { %v3141_v14 = vpack.c.bf16 %v3135_v58, %v3134_v45 }
 0x5bc   : > { %v3061_v46 = vpop.f32.mrf.mxu2 }
 0x5bd   : > { %4188 = vmatmul.msk.bf16.gmra.mxu2 %vm3164_vm3, %v3141_v14  ;;  %v3062_v63 = vadd.f32 %v4295_v55, %v3061_v46 }
 0x5bf   : > { %v5856_v39 = vadd.f32 %v3115_v23, %v3062_v63 }
 0x5c1   : > { %v3136_v43 = vmax.f32 %v5856_v39, 0.0 }
 0x5c4   : > { %v3063_v27 = vpop.f32.mrf.mxu2 }
 0x5c5   : > { %v3064_v62 = vadd.f32 %v4295_v55, %v3063_v27 }
 0x5c7   : > { %v5858_v42 = vadd.f32 %v3117_v33, %v3064_v62 }
 0x5c9   : > { %v3137_v53 = vmax.f32 %v5858_v42, 0.0 }
 0x5cb   : > { %v3142_v26 = vpack.c.bf16 %v3137_v53, %v3136_v43 }
 0x5cc   : > { %v3066_v6 = vpop.f32.mrf.mxu2 }
 0x5cd   : > { %4189 = vmatmul.msk.bf16.gmra.mxu2 %vm3164_vm3, %v3142_v26  ;;  %v3067_v0 = vadd.f32 %v4295_v55, %v3066_v6  ;;  %v4210_v6 = vld [vmem:[%s6176_s12 + $0x10] sm:$0xf] }
 0x5ce   : > { %v3517_v4 = vsel %vm623_vm0, %v4210_v6, 0 }
 0x5cf   : > { %v5867_v1 = vadd.f32 %v3120_v56, %v3067_v0  ;;  %3526 = vmatpush.bf16.msrb.mxu3 %v3517_v4 }
 0x5d1   : > { %v3138_v34 = vmax.f32 %v5867_v1, 0.0 }
 0x5d4   : > { %v3068_v35 = vpop.f32.mrf.mxu2 }
 0x5d5   : > { %v3069_v24 = vadd.f32 %v4295_v55, %v3068_v35 }
 0x5d7   : > { %v5869_v59 = vadd.f32 %v3122_v11, %v3069_v24 }
 0x5d9   : > { %v3139_v2 = vmax.f32 %v5869_v59, 0.0 }
 0x5db   : > { %v3143_v3 = vpack.c.bf16 %v3139_v2, %v3138_v34 }
 0x5dd   : > { %4190 = vmatmul.msk.bf16.gmra.mxu2 %vm3164_vm3, %v3143_v3 }
 0x630   : > { %v3186_v37 = vpop.f32.mrf.mxu2 }
 0x631   : > { %v3187_v38 = vadd.f32 %v5897_v29, %v3186_v37 }
 0x633   : > { %v3206_v7 = vmax.f32 %v3187_v38, 0.0 }
 0x635   : > { %3235 = vst.msk [vmem:[#allocation3 + $0x11] sm:$0xff] %vm574_vm1, %v3206_v7 }
 0x638   : > { %v3188_v30 = vpop.f32.mrf.mxu2 }
 0x639   : > { %v3189_v55 = vadd.f32 %v5897_v29, %v3188_v30 }
 0x63b   : > { %v3207_v41 = vmax.f32 %v3189_v55, 0.0  ;;  %v4215_v55 = vld [vmem:[%s6176_s12 + $0x14] sm:$0xf] }
 0x63c   : > { %v5902_v21 = vld [vmem:[#allocation3 + $0x11] sm:$0xff] }
 0x63d   : > { %v3424_v9 = vld [vmem:[#allocation3 + $0x10] sm:$0xff]  ;;  %3236 = vst.msk [vmem:[#allocation3 + $0x21] sm:$0xff] %vm574_vm1, %v3207_v41  ;;  %v3264_v40 = vpack.c.bf16 %v5902_v21, %v3256_v28  ;;  %v4220_v28 = vld [vmem:[%s6176_s12 + $0x18] sm:$0xf] }
 0x63e   : > { %v5904_v25 = vld [vmem:[#allocation3 + $0x12] sm:$0xff]  ;;  %v3251_v51 = vpack.c.bf16 %v3424_v9, %v3243_v17  ;;  %v3583_v17 = vsel %vm623_vm0, %v4215_v55, 0 }
 0x63f   : > { %v3366_v12 = vpack.c.bf16 %v5904_v25, %v3358_v22  ;;  %4192 = vmatmul.msk.bf16.vlgmr.msra.gmra.mxu3 %vm574_vm1, %v3264_v40  ;;  %v3650_v22 = vsel %vm623_vm0, %v4220_v28, 0  ;;  %3592 = vmatpush.bf16.msra.mxu0 %v3583_v17 }
 0x640   : > { %4196 = vmatmul.msk.bf16.vlgmr.msrb.gmra.mxu0 %vm574_vm1, %v3251_v51  ;;  %v3191_v5 = vpop.f32.mrf.mxu2  ;;  %3659 = vmatpush.bf16.msrb.mxu1 %v3650_v22 }
 0x641   : > { %4201 = vmatmul.msk.bf16.vlgmr.msra.gmra.mxu1 %vm574_vm1, %v3366_v12  ;;  %v3192_v18 = vadd.f32 %v5897_v29, %v3191_v5  ;;  %v4225_v5 = vld [vmem:[%s6176_s12 + $0x1c] sm:$0xf] }
 0x643   : > { %v3208_v15 = vmax.f32 %v3192_v18, 0.0  ;;  %v3716_v18 = vsel %vm623_vm0, %v4225_v5, 0 }
 0x644   : > { %v3425_v52 = vld [vmem:[#allocation3 + $0x20] sm:$0xff]  ;;  %3725 = vmatpush.bf16.msra.mxu2 %v3716_v18 }
 0x645   : > { %3237 = vst.msk [vmem:[#allocation3 + $0x31] sm:$0xff] %vm574_vm1, %v3208_v15  ;;  %v3432_v48 = vpack.c.bf16 %v3425_v52, %v3424_v9  ;;  %v5916_v54 = vld [vmem:[#allocation3 + $0x21] sm:$0xff] }
 0x646   : > { %v5918_v63 = vld [vmem:[#allocation3 + $0x22] sm:$0xff] }
 0x647   : > { %4206 = vmatmul.msk.bf16.vlgmr.msrb.gmra.mxu2 %vm574_vm1, %v3432_v48 }
 0x648   : > { %v3193_v8 = vpop.f32.mrf.mxu2 }
 0x649   : > { %v3194_v14 = vadd.f32 %v5897_v29, %v3193_v8 }
 0x64b   : > { %v3209_v46 = vmax.f32 %v3194_v14, 0.0 }
 0x64c   : > { %v5920_v23 = vld [vmem:[#allocation3 + $0x31] sm:$0xff] }
 0x64d   : > { %v3426_v27 = vld [vmem:[#allocation3 + $0x30] sm:$0xff]  ;;  %3238 = vst.msk [vmem:[#allocation3 + $0x41] sm:$0xff] %vm574_vm1, %v3209_v46  ;;  %v5927_v33 = vpack.c.bf16 %v5920_v23, %v5916_v54 }
 0x64e   : > { %v5922_v62 = vld [vmem:[#allocation3 + $0x32] sm:$0xff]  ;;  %v5929_v10 = vpack.c.bf16 %v3426_v27, %v3425_v52 }
 0x64f   : > { %v5933_v26 = vpack.c.bf16 %v5922_v62, %v5918_v63  ;;  %4193 = vmatmul.msk.bf16.gmra.mxu3 %vm574_vm1, %v5927_v33 }
 0x650   : > { %4197 = vmatmul.msk.bf16.gmra.mxu0 %vm574_vm1, %v5929_v10  ;;  %v3196_v0 = vpop.f32.mrf.mxu2 }
 0x651   : > { %4202 = vmatmul.msk.bf16.gmra.mxu1 %vm574_vm1, %v5933_v26  ;;  %v3197_v56 = vadd.f32 %v5897_v29, %v3196_v0 }
 0x653   : > { %v3210_v35 = vmax.f32 %v3197_v56, 0.0  ;;  %v3498_v56 = vpack.c.bf16 %v5916_v54, %v5902_v21  ;;  %v4230_v21 = vld [vmem:[%s6176_s12 + $0x20] sm:$0xf] }
 0x654   : > { %v3427_v24 = vld [vmem:[#allocation3 + $0x40] sm:$0xff] }
 0x655   : > { %3239 = vst.msk [vmem:[#allocation3 + $0x51] sm:$0xff] %vm574_vm1, %v3210_v35  ;;  %v3433_v11 = vpack.c.bf16 %v3427_v24, %v3426_v27  ;;  %v3260_v49 = vld [vmem:[#allocation3 + $0x41] sm:$0xff]  ;;  %v3564_v35 = vpack.c.bf16 %v5918_v63, %v5904_v25  ;;  %v3782_v25 = vsel %vm623_vm0, %v4230_v21, 0 }
 0x656   : > { %v3362_v32 = vld [vmem:[#allocation3 + $0x42] sm:$0xff]  ;;  %3791 = vmatpush.bf16.msra.mxu3 %v3782_v25 }
 0x657   : > { %4207 = vmatmul.msk.bf16.gmra.mxu2 %vm574_vm1, %v3433_v11  ;;  %v3565_v11 = vpack.c.bf16 %v3362_v32, %v5922_v62 }
 0x658   : > { %v3198_v3 = vpop.f32.mrf.mxu2 }
 0x659   : > { %v3199_v57 = vadd.f32 %v5897_v29, %v3198_v3 }
 0x65b   : > { %v3211_v20 = vmax.f32 %v3199_v57, 0.0 }
 0x65c   : > { %v3261_v47 = vld [vmem:[#allocation3 + $0x51] sm:$0xff] }
 0x65d   : > { %v3428_v19 = vld [vmem:[#allocation3 + $0x50] sm:$0xff]  ;;  %3240 = vst.msk [vmem:[#allocation3 + $0x61] sm:$0xff] %vm574_vm1, %v3211_v20  ;;  %v3266_v36 = vpack.c.bf16 %v3261_v47, %v3260_v49 }
 0x65e   : > { %v3363_v16 = vld [vmem:[#allocation3 + $0x52] sm:$0xff]  ;;  %v3253_v37 = vpack.c.bf16 %v3428_v19, %v3427_v24  ;;  %v3499_v24 = vpack.c.bf16 %v3260_v49, %v5920_v23 }
 0x65f   : > { %v5950_v38 = vpack.c.bf16 %v3363_v16, %v3362_v32  ;;  %4194 = vmatmul.msk.bf16.gmra.mxu3 %vm574_vm1, %v3266_v36  ;;  %v3696_v20 = vld [vmem:[#allocation3 + $0x91] sm:$0xff] }
 0x660   : > { %4198 = vmatmul.msk.bf16.gmra.mxu0 %vm574_vm1, %v3253_v37  ;;  %v3201_v7 = vpop.f32.mrf.mxu2 }
 0x661   : > { %4203 = vmatmul.msk.bf16.gmra.mxu1 %vm574_vm1, %v5950_v38  ;;  %v3202_v30 = vadd.f32 %v5897_v29, %v3201_v7 }
 0x663   : > { %v3212_v41 = vmax.f32 %v3202_v30, 0.0 }
 0x664   : > { %v3429_v9 = vld [vmem:[#allocation3 + $0x60] sm:$0xff] }
 0x665   : > { %3241 = vst.msk [vmem:[#allocation3 + $0x71] sm:$0xff] %vm574_vm1, %v3212_v41  ;;  %v3434_v40 = vpack.c.bf16 %v3429_v9, %v3428_v19  ;;  %v3262_v15 = vld [vmem:[#allocation3 + $0x61] sm:$0xff] }
 0x666   : > { %v3364_v48 = vld [vmem:[#allocation3 + $0x62] sm:$0xff]  ;;  %v3500_v54 = vpack.c.bf16 %v3262_v15, %v3261_v47 }
 0x667   : > { %4208 = vmatmul.msk.bf16.gmra.mxu2 %vm574_vm1, %v3434_v40  ;;  %v3566_v63 = vpack.c.bf16 %v3364_v48, %v3363_v16 }
 0x668   : > { %v3203_v51 = vpop.f32.mrf.mxu2 }
 0x669   : > { %v3204_v12 = vadd.f32 %v5897_v29, %v3203_v51 }
 0x66b   : > { %v3213_v52 = vmax.f32 %v3204_v12, 0.0 }
 0x66c   : > { %v3263_v8 = vld [vmem:[#allocation3 + $0x71] sm:$0xff] }
 0x66d   : > { %v3430_v14 = vld [vmem:[#allocation3 + $0x70] sm:$0xff]  ;;  %v3267_v27 = vpack.c.bf16 %v3263_v8, %v3262_v15  ;;  %3242 = vst.msk [vmem:[#allocation3 + $0x81] sm:$0xff] %vm574_vm1, %v3213_v52 }
 0x66e   : > { %v3365_v46 = vld [vmem:[#allocation3 + $0x72] sm:$0xff]  ;;  %v3254_v6 = vpack.c.bf16 %v3430_v14, %v3429_v9 }
 0x66f   : > { %v5973_v0 = vpack.c.bf16 %v3365_v46, %v3364_v48  ;;  %4195 = vmatmul.msk.bf16.gmra.mxu3 %vm574_vm1, %v3267_v27 }
 0x670   : > { %4199 = vmatmul.msk.bf16.gmra.mxu0 %vm574_vm1, %v3254_v6 }
 0x671   : > { %4204 = vmatmul.msk.bf16.gmra.mxu1 %vm574_vm1, %v5973_v0 }
 0x674   : > { %v3431_v29 = vld [vmem:[#allocation3 + $0x80] sm:$0xff] }
 0x675   : > { %v3435_v4 = vpack.c.bf16 %v3431_v29, %v3430_v14  ;;  %v3497_v23 = vld [vmem:[#allocation3 + $0x81] sm:$0xff] }
 0x676   : > { %v3563_v62 = vld [vmem:[#allocation3 + $0x82] sm:$0xff]  ;;  %v3700_v49 = vpack.c.bf16 %v3696_v20, %v3497_v23 }
 0x677   : > { %4209 = vmatmul.msk.bf16.gmra.mxu2 %vm574_vm1, %v3435_v4  ;;  %v3567_v3 = vpack.c.bf16 %v3563_v62, %v3365_v46  ;;  %v3762_v4 = vld [vmem:[#allocation3 + $0x92] sm:$0xff] }
 0x67f   : > { %4211 = vmatmul.msk.bf16.vlgmr.msrb.gmra.mxu3 %vm574_vm1, %v3498_v56 }
 0x680   : > { %4216 = vmatmul.msk.bf16.vlgmr.msra.gmra.mxu0 %vm574_vm1, %v3564_v35 }
 0x681   : > { %4221 = vmatmul.msk.bf16.vlgmr.msrb.gmra.mxu1 %vm574_vm1, %v5929_v10  ;;  %v3501_v10 = vpack.c.bf16 %v3497_v23, %v3263_v8 }
 0x687   : > { %4226 = vmatmul.msk.bf16.vlgmr.msra.gmra.mxu2 %vm574_vm1, %v5927_v33  ;;  %v3630_v33 = vld [vmem:[#allocation3 + $0x90] sm:$0xff] }
 0x688   : > { %v3634_v57 = vpack.c.bf16 %v3630_v33, %v3431_v29 }
 0x68f   : > { %4212 = vmatmul.msk.bf16.gmra.mxu3 %vm574_vm1, %v3499_v24  ;;  %v3766_v24 = vpack.c.bf16 %v3762_v4, %v3563_v62 }
 0x690   : > { %4217 = vmatmul.msk.bf16.gmra.mxu0 %vm574_vm1, %v3565_v11 }
 0x691   : > { %4222 = vmatmul.msk.bf16.gmra.mxu1 %vm574_vm1, %v3253_v37 }
 0x697   : > { %4227 = vmatmul.msk.bf16.gmra.mxu2 %vm574_vm1, %v3266_v36 }
 0x69f   : > { %4213 = vmatmul.msk.bf16.gmra.mxu3 %vm574_vm1, %v3500_v54 }
 0x6a0   : > { %4218 = vmatmul.msk.bf16.gmra.mxu0 %vm574_vm1, %v3566_v63 }
 0x6a1   : > { %4223 = vmatmul.msk.bf16.gmra.mxu1 %vm574_vm1, %v3254_v6 }
 0x6a7   : > { %4228 = vmatmul.msk.bf16.gmra.mxu2 %vm574_vm1, %v3267_v27 }
 0x6af   : > { %4214 = vmatmul.msk.bf16.gmra.mxu3 %vm574_vm1, %v3501_v10 }
 0x6b0   : > { %4219 = vmatmul.msk.bf16.gmra.mxu0 %vm574_vm1, %v3567_v3 }
 0x6b1   : > { %4224 = vmatmul.msk.bf16.gmra.mxu1 %vm574_vm1, %v3634_v57 }
 0x6b7   : > { %4229 = vmatmul.msk.bf16.gmra.mxu2 %vm574_vm1, %v3700_v49 }
 0x6bd   : > { %v3338_v32 = vpop.f32.mrf.mxu0 }
 0x6be   : > { %v3396_v47 = vpop.f32.mrf.mxu1 }
 0x6bf   : > { %4231 = vmatmul.msk.bf16.vlgmr.msra.gmra.mxu3 %vm574_vm1, %v5933_v26 }
 0x6c2   : > { %v3294_v19 = vpop.f32.mrf.mxu3 }
 0x6c3   : > { %v3339_v16 = vadd.f32 %v3338_v32, %v3294_v19 }
 0x6c5   : > { %v6010_v36 = vpop.f32.mrf.mxu0  ;;  %v3416_v37 = vadd.f32 %v3396_v47, %v3339_v16 }
 0x6c6   : > { %v6012_v7 = vpop.f32.mrf.mxu1 }
 0x6ca   : > { %v3296_v30 = vpop.f32.mrf.mxu3  ;;  %v3462_v55 = vpop.f32.mrf.mxu2 }
 0x6cb   : > { %v3482_v28 = vadd.f32 %v3462_v55, %v3416_v37 }
 0x6cd   : > { %v3343_v17 = vpop.f32.mrf.mxu0 }
 0x6ce   : > { %v3401_v22 = vpop.f32.mrf.mxu1 }
 0x6cf   : > { %4232 = vmatmul.msk.bf16.gmra.mxu3 %vm574_vm1, %v5950_v38 }
 0x6d2   : > { %v3299_v41 = vpop.f32.mrf.mxu3  ;;  %v3464_v9 = vpop.f32.mrf.mxu2 }
 0x6d3   : > { %v3344_v40 = vadd.f32 %v3343_v17, %v3299_v41 }
 0x6d5   : > { %v6016_v51 = vpop.f32.mrf.mxu0  ;;  %v3418_v26 = vadd.f32 %v3401_v22, %v3344_v40 }
 0x6d6   : > { %v6018_v12 = vpop.f32.mrf.mxu1 }
 0x6da   : > { %v6020_v5 = vpop.f32.mrf.mxu3  ;;  %v3467_v18 = vpop.f32.mrf.mxu2 }
 0x6db   : > { %v3484_v15 = vadd.f32 %v3467_v18, %v3418_v26 }
 0x6dd   : > { %v3348_v52 = vpop.f32.mrf.mxu0 }
 0x6de   : > { %v3406_v48 = vpop.f32.mrf.mxu1 }
 0x6df   : > { %4233 = vmatmul.msk.bf16.gmra.mxu3 %vm574_vm1, %v5973_v0 }
 0x6e2   : > { %v3304_v8 = vpop.f32.mrf.mxu3  ;;  %v6024_v14 = vpop.f32.mrf.mxu2 }
 0x6e3   : > { %v3349_v38 = vadd.f32 %v3348_v52, %v3304_v8 }
 0x6e5   : > { %v3420_v46 = vadd.f32 %v3406_v48, %v3349_v38  ;;  %v6026_v27 = vpop.f32.mrf.mxu0  ;;  %v3341_v48 = vadd.f32 %v6010_v36, %v3296_v30  ;;  %v6062_v30 = vld [vmem:[%s6177_s13] ss:$0 sm:$0xff] }
 0x6e6   : > { %v6028_v6 = vpop.f32.mrf.mxu1 }
 0x6e7   : > { %v3417_v4 = vadd.f32 %v6012_v7, %v3341_v48 }
 0x6ea   : > { %v6030_v29 = vpop.f32.mrf.mxu3  ;;  %v3472_v56 = vpop.f32.mrf.mxu2 }
 0x6eb   : > { %v3486_v35 = vadd.f32 %v3472_v56, %v3420_v46  ;;  %v3483_v56 = vadd.f32 %v3464_v9, %v3417_v4 }
 0x6ed   : > { %v3353_v11 = vpop.f32.mrf.mxu0 }
 0x6ee   : > { %v3411_v54 = vpop.f32.mrf.mxu1 }
 0x6ef   : > { %4234 = vmatmul.msk.bf16.gmra.mxu3 %vm574_vm1, %v3766_v24 }
 0x6f2   : > { %v3309_v0 = vpop.f32.mrf.mxu3  ;;  %v6033_v21 = vpop.f32.mrf.mxu2 }
 0x6f3   : > { %v3354_v25 = vadd.f32 %v3353_v11, %v3309_v0 }
 0x6f5   : > { %v3422_v63 = vadd.f32 %v3411_v54, %v3354_v25  ;;  %v6037_v19 = vpop.f32.mrf.mxu0 }
 0x6f6   : > { %v6041_v37 = vpop.f32.mrf.mxu1 }
 0x6fa   : > { %v6035_v23 = vpop.f32.mrf.mxu3  ;;  %v3477_v33 = vpop.f32.mrf.mxu2 }
 0x6fb   : > { %v3488_v10 = vadd.f32 %v3477_v33, %v3422_v63 }
 0x6fd   : > { %v3594_v22 = vpop.f32.mrf.mxu0 }
 0x6fe   : > { %v3661_v41 = vpop.f32.mrf.mxu1 }
 0x702   : > { %v3528_v3 = vpop.f32.mrf.mxu3  ;;  %v6043_v55 = vpop.f32.mrf.mxu2 }
 0x703   : > { %v3548_v57 = vadd.f32 %v3528_v3, %v3482_v28  ;;  %v3845_v28 = vld [vmem:[%s6178_s14] sm:$0xf]  ;;  %v3346_v3 = vadd.f32 %v6016_v51, %v6020_v5 }
 0x704   : > { %v3863_v18 = vsel %vm623_vm0, %v3845_v28, 0 }
 0x705   : > { %3872 = vmatpush.bf16.msrb.mxu0 %v3863_v18  ;;  %v3596_v52 = vpop.f32.mrf.mxu0  ;;  %v3614_v24 = vadd.f32 %v3594_v22, %v3548_v57 }
 0x706   : > { %v3663_v8 = vpop.f32.mrf.mxu1 }
 0x707   : > { %v3681_v25 = vadd.f32 %v3661_v41, %v3614_v24 }
 0x70a   : > { %v3530_v20 = vpop.f32.mrf.mxu3  ;;  %v3727_v40 = vpop.f32.mrf.mxu2 }
 0x70d   : > { %v3599_v11 = vpop.f32.mrf.mxu0 }
 0x70e   : > { %v3666_v63 = vpop.f32.mrf.mxu1 }
 0x712   : > { %v3533_v49 = vpop.f32.mrf.mxu3  ;;  %v3729_v46 = vpop.f32.mrf.mxu2 }
 0x713   : > { %v3550_v32 = vadd.f32 %v3533_v49, %v3484_v15  ;;  %v3419_v49 = vadd.f32 %v6018_v12, %v3346_v3 }
 0x715   : > { %v3601_v57 = vpop.f32.mrf.mxu0  ;;  %v3485_v41 = vadd.f32 %v6024_v14, %v3419_v49 }
 0x716   : > { %v3668_v51 = vpop.f32.mrf.mxu1 }
 0x71a   : > { %v3535_v47 = vpop.f32.mrf.mxu3  ;;  %v3732_v33 = vpop.f32.mrf.mxu2 }
 0x71b   : > { %v3551_v28 = vadd.f32 %v3535_v47, %v3485_v41 }
 0x71d   : > { %v3617_v4 = vadd.f32 %v3601_v57, %v3551_v28  ;;  %v3604_v12 = vpop.f32.mrf.mxu0 }
 0x71f   : > { %v3684_v24 = vadd.f32 %v3668_v51, %v3617_v4 }
 0x722   : > { %v3538_v62 = vpop.f32.mrf.mxu3  ;;  %v3734_v5 = vpop.f32.mrf.mxu2 }
 0x723   : > { %v6039_v16 = vadd.f32 %v3538_v62, %v3486_v35  ;;  %v3549_v35 = vadd.f32 %v3530_v20, %v3483_v56 }
 0x725   : > { %v3615_v54 = vadd.f32 %v3596_v52, %v3549_v35  ;;  %v3616_v52 = vadd.f32 %v3599_v11, %v3550_v32  ;;  %v3351_v35 = vadd.f32 %v6026_v27, %v6030_v29  ;;  %v3618_v29 = vadd.f32 %v3604_v12, %v6039_v16 }
 0x727   : > { %v3682_v7 = vadd.f32 %v3663_v8, %v3615_v54  ;;  %v3750_v54 = vadd.f32 %v3734_v5, %v3684_v24 }
 0x729   : > { %v3748_v9 = vadd.f32 %v3729_v46, %v3682_v7  ;;  %v3683_v46 = vadd.f32 %v3666_v63, %v3616_v52 }
 0x72a   : > { %v6045_v17 = vpop.f32.mrf.mxu3 }
 0x72b   : > { %v3749_v56 = vadd.f32 %v3732_v33, %v3683_v46 }
 0x732   : > { %v3543_v26 = vpop.f32.mrf.mxu3 }
 0x733   : > { %v6051_v15 = vadd.f32 %v3543_v26, %v3488_v10  ;;  %v3747_v10 = vadd.f32 %v3727_v40, %v3681_v25  ;;  %v3737_v25 = vpop.f32.mrf.mxu2 }
 0x73a   : > { %v6054_v38 = vpop.f32.mrf.mxu3 }
 0x73b   : > { %v3739_v49 = vpop.f32.mrf.mxu2 }
 0x742   : > { %v3793_v0 = vpop.f32.mrf.mxu3 }
 0x743   : > { %v3813_v36 = vadd.f32 %v3793_v0, %v3747_v10  ;;  %v3671_v0 = vpop.f32.mrf.mxu1  ;;  %v3421_v10 = vadd.f32 %v6028_v6, %v3351_v35  ;;  %v3742_v52 = vpop.f32.mrf.mxu2 }
 0x745   : > { %v3825_v62 = vadd.f32 %v6062_v30, %v3813_v36  ;;  %v3487_v63 = vadd.f32 %v6033_v21, %v3421_v10  ;;  %v3606_v36 = vpop.f32.mrf.mxu0  ;;  %v3356_v21 = vadd.f32 %v6037_v19, %v6035_v23 }
 0x747   : > { %v3833_v26 = vmax.f32 %v3825_v62, 0.0  ;;  %v3553_v33 = vadd.f32 %v6045_v17, %v3487_v63  ;;  %v3685_v62 = vadd.f32 %v3671_v0, %v3618_v29  ;;  %v3423_v28 = vadd.f32 %v6041_v37, %v3356_v21 }
 0x749   : > { %v3619_v6 = vadd.f32 %v3606_v36, %v3553_v33  ;;  %v4299_v36 = vld [vmem:[%s6179_s15] ss:$0 sm:$0xff] }
 0x74a   : > { %v3795_v20 = vpop.f32.mrf.mxu3 }
 0x74b   : > { %v3814_v22 = vadd.f32 %v3795_v20, %v3748_v9  ;;  %v3673_v20 = vpop.f32.mrf.mxu1 }
 0x74d   : > { %v3826_v40 = vadd.f32 %v6062_v30, %v3814_v22  ;;  %v3751_v22 = vadd.f32 %v3737_v25, %v3685_v62  ;;  %v3609_v51 = vpop.f32.mrf.mxu0 }
 0x74e   : > { %v3620_v19 = vadd.f32 %v3609_v51, %v6051_v15 }
 0x74f   : > { %v3834_v18 = vmax.f32 %v3826_v40, 0.0  ;;  %v3686_v40 = vadd.f32 %v3673_v20, %v3619_v6 }
 0x751   : > { %v3841_v48 = vpack.c.bf16 %v3834_v18, %v3833_v26  ;;  %v3752_v17 = vadd.f32 %v3739_v49, %v3686_v40 }
 0x752   : > { %v3798_v8 = vpop.f32.mrf.mxu3 }
 0x753   : > { %4235 = vmatmul.msk.bf16.vlgmr.msrb.gmra.mxu0 %vm574_vm1, %v3841_v48  ;;  %v3815_v14 = vadd.f32 %v3798_v8, %v3749_v56  ;;  %v3676_v18 = vpop.f32.mrf.mxu1  ;;  %v3489_v48 = vadd.f32 %v6043_v55, %v3423_v28  ;;  %v3744_v55 = vpop.f32.mrf.mxu2 }
 0x755   : > { %v3827_v32 = vadd.f32 %v6062_v30, %v3815_v14  ;;  %v3555_v46 = vadd.f32 %v6054_v38, %v3489_v48  ;;  %v3611_v35 = vpop.f32.mrf.mxu0  ;;  %v3687_v14 = vadd.f32 %v3676_v18, %v3620_v19 }
 0x757   : > { %v3835_v7 = vmax.f32 %v3827_v32, 0.0  ;;  %v3621_v37 = vadd.f32 %v3611_v35, %v3555_v46  ;;  %v3753_v24 = vadd.f32 %v3742_v52, %v3687_v14 }
 0x75a   : > { %v3800_v47 = vpop.f32.mrf.mxu3 }
 0x75b   : > { %v3816_v11 = vadd.f32 %v3800_v47, %v3750_v54  ;;  %v3678_v0 = vpop.f32.mrf.mxu1 }
 0x75c   : > { %v3688_v54 = vadd.f32 %v3678_v0, %v3621_v37 }
 0x75d   : > { %v3828_v3 = vadd.f32 %v6062_v30, %v3816_v11 }
 0x75e   : > { %v3754_v47 = vadd.f32 %v3744_v55, %v3688_v54 }
 0x75f   : > { %v3836_v27 = vmax.f32 %v3828_v3, 0.0 }
 0x761   : > { %v3842_v9 = vpack.c.bf16 %v3836_v27, %v3835_v7 }
 0x762   : > { %v3803_v57 = vpop.f32.mrf.mxu3 }
 0x763   : > { %4236 = vmatmul.msk.bf16.gmra.mxu0 %vm574_vm1, %v3842_v9  ;;  %v3817_v41 = vadd.f32 %v3803_v57, %v3751_v22 }
 0x765   : > { %v3829_v16 = vadd.f32 %v6062_v30, %v3817_v41 }
 0x767   : > { %v3837_v4 = vmax.f32 %v3829_v16, 0.0 }
 0x76a   : > { %v3805_v5 = vpop.f32.mrf.mxu3 }
 0x76b   : > { %v3818_v26 = vadd.f32 %v3805_v5, %v3752_v17 }
 0x76d   : > { %v3830_v8 = vadd.f32 %v6062_v30, %v3818_v26 }
 0x76f   : > { %v3838_v23 = vmax.f32 %v3830_v8, 0.0 }
 0x771   : > { %v3843_v12 = vpack.c.bf16 %v3838_v23, %v3837_v4 }
 0x772   : > { %v3808_v56 = vpop.f32.mrf.mxu3 }
 0x773   : > { %4237 = vmatmul.msk.bf16.gmra.mxu0 %vm574_vm1, %v3843_v12  ;;  %v3819_v25 = vadd.f32 %v3808_v56, %v3753_v24 }
 0x775   : > { %v3831_v10 = vadd.f32 %v6062_v30, %v3819_v25 }
 0x777   : > { %v3839_v11 = vmax.f32 %v3831_v10, 0.0 }
 0x77a   : > { %v3810_v38 = vpop.f32.mrf.mxu3 }
 0x77b   : > { %v3820_v32 = vadd.f32 %v3810_v38, %v3754_v47 }
 0x77d   : > { %v3832_v15 = vadd.f32 %v6062_v30, %v3820_v32 }
 0x77f   : > { %v3840_v63 = vmax.f32 %v3832_v15, 0.0 }
 0x781   : > { %v3844_v3 = vpack.c.bf16 %v3840_v63, %v3839_v11 }
 0x783   : > { %4238 = vmatmul.msk.bf16.gmra.mxu0 %vm574_vm1, %v3844_v3 }
 0x7d0   : > { %v3874_v33 = vpop.f32.mrf.mxu0 }
 0x7d1   : > { %v3875_v7 = vadd.f32 %v4299_v36, %v3874_v33 }
 0x7d3   : > { %v3894_v27 = vadd.f32 %v3875_v7, %v3132_v61 }
 0x7d5   : > { %v3902_v29 = vmax.f32 %v3894_v27, 0.0 }
 0x7d7   : > { %3910 = vst.msk [vmem:[%s6098_s26] sm:$0xff] %vm3164_vm3, %v3902_v29 }
 0x7d8   : > { %v3876_v30 = vpop.f32.mrf.mxu0 }
 0x7d9   : > { %v3877_v9 = vadd.f32 %v4299_v36, %v3876_v30 }
 0x7db   : > { %v3895_v20 = vadd.f32 %v3877_v9, %v3133_v13 }
 0x7dd   : > { %v3903_v57 = vmax.f32 %v3895_v20, 0.0 }
 0x7df   : > { %3911 = vst.msk [vmem:[%s6098_s26 + $0x8] sm:$0xff] %vm3164_vm3, %v3903_v57 }
 0x7e0   : > { %v3879_v31 = vpop.f32.mrf.mxu0 }
 0x7e1   : > { %v3880_v61 = vadd.f32 %v4299_v36, %v3879_v31 }
 0x7e3   : > { %v3896_v49 = vadd.f32 %v3880_v61, %v3134_v45 }
 0x7e5   : > { %v3904_v62 = vmax.f32 %v3896_v49, 0.0 }
 0x7e7   : > { %3912 = vst.msk [vmem:[%s6098_s26 + $0x10] sm:$0xff] %vm3164_vm3, %v3904_v62 }
 0x7e8   : > { %v3881_v6 = vpop.f32.mrf.mxu0 }
 0x7e9   : > { %v3882_v22 = vadd.f32 %v4299_v36, %v3881_v6 }
 0x7eb   : > { %v3897_v21 = vadd.f32 %v3882_v22, %v3135_v58 }
 0x7ed   : > { %v3905_v60 = vmax.f32 %v3897_v21, 0.0 }
 0x7ef   : > { %3913 = vst.msk [vmem:[%s6098_s26 + $0x18] sm:$0xff] %vm3164_vm3, %v3905_v60 }
 0x7f0   : > { %v3884_v13 = vpop.f32.mrf.mxu0 }
 0x7f1   : > { %v3885_v41 = vadd.f32 %v4299_v36, %v3884_v13 }
 0x7f3   : > { %v3898_v50 = vadd.f32 %v3885_v41, %v3136_v43 }
 0x7f5   : > { %v3906_v45 = vmax.f32 %v3898_v50, 0.0 }
 0x7f7   : > { %3914 = vst.msk [vmem:[%s6098_s26 + $0x20] sm:$0xff] %vm3164_vm3, %v3906_v45 }
 0x7f8   : > { %v3886_v40 = vpop.f32.mrf.mxu0 }
 0x7f9   : > { %v3887_v51 = vadd.f32 %v4299_v36, %v3886_v40 }
 0x7fb   : > { %v3899_v44 = vadd.f32 %v3887_v51, %v3137_v53 }
 0x7fd   : > { %v3907_v58 = vmax.f32 %v3899_v44, 0.0 }
 0x7ff   : > { %3915 = vst.msk [vmem:[%s6098_s26 + $0x28] sm:$0xff] %vm3164_vm3, %v3907_v58 }
 0x800   : > { %v3889_v17 = vpop.f32.mrf.mxu0 }
 0x801   : > { %v3890_v5 = vadd.f32 %v4299_v36, %v3889_v17 }
 0x803   : > { %v3900_v39 = vadd.f32 %v3890_v5, %v3138_v34 }
 0x805   : > { %v3908_v43 = vmax.f32 %v3900_v39, 0.0 }
 0x807   : > { %3916 = vst.msk [vmem:[%s6098_s26 + $0x30] sm:$0xff] %vm3164_vm3, %v3908_v43 }
 0x808   : > { %v3891_v42 = vpop.f32.mrf.mxu0 }
 0x809   : > { %v3892_v53 = vadd.f32 %v4299_v36, %v3891_v42 }
 0x80b   : > { %v3901_v28 = vadd.f32 %v3892_v53, %v3139_v2 }
 0x80d   : > { %v3909_v16 = vmax.f32 %v3901_v28, 0.0 }
 0x80f   : > { %3917 = vst.msk [vmem:[%s6098_s26 + $0x38] sm:$0xff] %vm3164_vm3, %v3909_v16 }
 0x810   : > { %4359 = shalt.err (!%p4356_p3)
}
 0x811   : > { %s4397_s20 = smov 128   ;;  %s4398_s26 = smov 8  }
 0x812   : > { %4251 = dma.vmem_to_hbm [thread:$0]  (%p4522_p5), %s3932_s19, 1024, %s3934_s23, %s3919_s25, %s4397_s20, %s4397_s20, %s4398_s26  }
 0x813 PF: > { %p4257_p4 = scmp.ge.s32.totalorder %s4394_s24, 2  ;;  %s3948_s28 = sand.u32 1, %s4382_s21  }
 0x814   : > { %s3949_s3 = scalar_lea.sflag [#allocation5], %s3948_s28 }
 0x815   : > { %p4254_p7 = pnand %p4257_p4, %p4526_p6 }
 0x817   : > { %p4255_p8 = pneg %p4254_p7 }
 0x819   : > { %4377 = dma.done.wait (%p4255_p8), %s3949_s3, 1024  }
 0x81a   : > { %4379 = vsyncadd (%p4255_p8), %s3949_s3, 4294966272  ;;  %s6272_s1 = sld [smem:[#allocation7_spill]]  ;;  %p26_p9 = scmp.ge.s32.totalorder %s4509_s27, 4  }
 0x81b   : > { %s6273_s23 = sld [smem:[#allocation8_spill]]  ;;  %s6274_s21 = smov %s4386_s22 }
 0x81c   : > { %s6276_s24 = smov %s4509_s27  ;;  %28 = sbr.rel (!%p26_p9) target bundleno = 8 (0x8), region = 139 }
 0x820   : > { %s6275_s22 = smov %s6272_s1 }
 0x821   :  { %3955 = vsyncpa [#allocation5], 1 }
 0x822   :  { %3957 = vsyncpa [#allocation5 + $0x1], 1 }

</bundles_post_ra>
